<compile_context>
chip_gen: v5e
topology: v5e:2x2
jax: 0.10.0
libtpu: 0.0.40
codegen_flags: <defaults>
</compile_context>

<pallas_src>
import functools
import random as pyrandom

import jax
import jax.numpy as jnp
from jax.experimental import pallas as pl
from jax.experimental.pallas import tpu as pltpu


# ---------------------------------------------------------------------------
# Kernel: fused two-stage linear head with K-tiled first matmul.
#   acc(B,Dh) f32 scratch accumulates x_tile @ W1_tile; on the last K step the
#   bias/ReLU/dropout(eval) and the second matmul + bias are applied and the
#   lane-dense (B, Dout) logits slab is stored.
# ---------------------------------------------------------------------------
def _head_mlp_kernel(x_ref, w1_ref, b1_ref, w2_ref, b2_ref, o_ref, acc_ref,
                     *, relu_mid, k_axis):
    k = pl.program_id(k_axis)

    @pl.when(k == 0)
    def _():
        acc_ref[...] = jnp.zeros_like(acc_ref)

    # hidden partial sum: bf16 x bf16 -> f32 accumulation on the MXU
    acc_ref[...] += jnp.dot(x_ref[...], w1_ref[...],
                            preferred_element_type=jnp.float32)

    @pl.when(k == pl.num_programs(k_axis) - 1)
    def _():
        h = acc_ref[...] + b1_ref[...]          # bias in f32
        if relu_mid:
            h = jnp.maximum(h, 0.0)             # relu(ego(x))
        # nn.Dropout(0.5) in eval mode == identity.
        o = jnp.dot(h.astype(w2_ref.dtype), w2_ref[...],
                    preferred_element_type=jnp.float32)
        o_ref[...] = (o + b2_ref[...]).astype(o_ref.dtype)


def _fused_head(x, w1, b1, w2, b2, *, relu_mid, tk):
    """Single head: x (B,Din) bf16 -> logits slab (B,Dout) f32, K-tiled."""
    B, Din = x.shape
    Dh = w1.shape[1]
    Dout = w2.shape[1]
    kt = Din // tk
    kernel = functools.partial(_head_mlp_kernel, relu_mid=relu_mid, k_axis=0)
    return pl.pallas_call(
        kernel,
        out_shape=jax.ShapeDtypeStruct((B, Dout), jnp.float32),
        grid=(kt,),
        in_specs=[
            pl.BlockSpec((B, tk), lambda k: (0, k)),
            pl.BlockSpec((tk, Dh), lambda k: (k, 0)),
            pl.BlockSpec((1, Dh), lambda k: (0, 0)),
            pl.BlockSpec((Dh, Dout), lambda k: (0, 0)),
            pl.BlockSpec((1, Dout), lambda k: (0, 0)),
        ],
        out_specs=pl.BlockSpec((B, Dout), lambda k: (0, 0)),
        scratch_shapes=[pltpu.VMEM((B, Dh), jnp.float32)],
        compiler_params=pltpu.CompilerParams(
            dimension_semantics=("arbitrary",)),
    )(x, w1, b1, w2, b2)


def _fused_heads_stacked(x, w1, b1, w2, b2, *, relu_mid, tk):
    """H identical heads in one pipelined call.

    x  : (H, B, Din) bf16       w1: (H, Din, Dh) bf16   b1: (H, 1, Dh) f32
    w2 : (H, Dh, Dout) bf16     b2: (H, 1, Dout) f32    -> (H, B, Dout) f32
    Head axis is "parallel" (2 TCs on v7x), K axis is "arbitrary".
    """
    H, B, Din = x.shape
    Dh = w1.shape[2]
    Dout = w2.shape[2]
    kt = Din // tk
    kernel = functools.partial(_head_mlp_kernel, relu_mid=relu_mid, k_axis=1)
    sq = pl.Squeezed()
    return pl.pallas_call(
        kernel,
        out_shape=jax.ShapeDtypeStruct((H, B, Dout), jnp.float32),
        grid=(H, kt),
        in_specs=[
            pl.BlockSpec((sq, B, tk), lambda h, k: (h, 0, k)),
            pl.BlockSpec((sq, tk, Dh), lambda h, k: (h, k, 0)),
            pl.BlockSpec((sq, 1, Dh), lambda h, k: (h, 0, 0)),
            pl.BlockSpec((sq, Dh, Dout), lambda h, k: (h, 0, 0)),
            pl.BlockSpec((sq, 1, Dout), lambda h, k: (h, 0, 0)),
        ],
        out_specs=pl.BlockSpec((sq, B, Dout), lambda h, k: (h, 0, 0)),
        scratch_shapes=[pltpu.VMEM((B, Dh), jnp.float32)],
        compiler_params=pltpu.CompilerParams(
            dimension_semantics=("parallel", "arbitrary")),
    )(x, w1, b1, w2, b2)


def _round_up(n, m):
    return ((n + m - 1) // m) * m


def _pick_tk(din, target=2048):
    """Largest 128-multiple K tile that divides Din and is <= target."""
    if din <= target:
        return din
    for cand in range(target, 127, -128):
        if din % cand == 0:
            return cand
    return din  # fall back: whole reduction in one block


class BaseModelPallas:
    """Deterministic-weight Pallas version of BaseModel (hidden_size=400)."""

    def __init__(self, key, in_shape, hidden_size=400):
        B, C, T, H, W = in_shape
        d_ego = C * T * H * W
        d_frame = C * H * W

        # lane-padded dims; zero padding keeps the math identical.
        self.ego_hidden_p = _round_up(hidden_size, 128)   # 400 -> 512
        self.wt_hidden_p = _round_up(1000, 128)           # 1000 -> 1024
        self.out_p = 128                                  # lane-dense logits slab

        ks = jax.random.split(key, 6)

        def pad2(w, rows_p, cols_p):
            r, c = w.shape
            return jnp.pad(w, ((0, rows_p - r), (0, cols_p - c)))

        # --- ego path: r3d_18 stand-in (d_ego -> 400) + ego_involve_fc(400 -> 3)
        ego_w = jax.random.normal(ks[0], (d_ego, hidden_size), jnp.float32) * 0.02
        self.ego_w = pad2(ego_w, d_ego, self.ego_hidden_p).astype(jnp.bfloat16)
        self.ego_b = jnp.zeros((1, self.ego_hidden_p), jnp.float32)
        # create_linear_layer(400, 3): weight ~ N(0,1), bias = 0
        ego_fc_w = jax.random.normal(ks[1], (hidden_size, 3), jnp.float32)
        self.ego_fc_w = pad2(ego_fc_w, self.ego_hidden_p, self.out_p).astype(jnp.bfloat16)
        self.ego_fc_b = jnp.zeros((1, self.out_p), jnp.float32)

        # --- weather / timing WTmodels: convnext_large stand-in (d_frame -> 1000)
        #     + Linear(1000, 3) / Linear(1000, 2); stacked along a head axis.
        wt_w = jax.random.normal(ks[2], (d_frame, 1000), jnp.float32) * 0.02
        tm_w = jax.random.normal(ks[4], (d_frame, 1000), jnp.float32) * 0.02
        self.wt_w = jnp.stack([
            pad2(wt_w, d_frame, self.wt_hidden_p),
            pad2(tm_w, d_frame, self.wt_hidden_p),
        ]).astype(jnp.bfloat16)                                  # (2, d_frame, 1024)
        self.wt_b = jnp.zeros((2, 1, self.wt_hidden_p), jnp.float32)
        wt_cls_w = jax.random.normal(ks[3], (1000, 3), jnp.float32) * 0.02
        tm_cls_w = jax.random.normal(ks[5], (1000, 2), jnp.float32) * 0.02
        self.wt_cls_w = jnp.stack([
            pad2(wt_cls_w, self.wt_hidden_p, self.out_p),
            pad2(tm_cls_w, self.wt_hidden_p, self.out_p),
        ]).astype(jnp.bfloat16)                                  # (2, 1024, 128)
        self.wt_cls_b = jnp.zeros((2, 1, self.out_p), jnp.float32)

        self.tk_ego = _pick_tk(d_ego)
        self.tk_frame = _pick_tk(d_frame)

    def __call__(self, x, weather_frame_idx, timing_frame_idx):
        B = x.shape[0]
        # glue: flatten / frame-slice in plain JAX (frame indices are static
        # Python ints, mirroring np.random.randint selection); cast activations
        # to bf16 so both MXU operands are bf16 (accumulation stays f32).
        x_ego = x.reshape(B, -1).astype(jnp.bfloat16)
        frames = jnp.stack([
            x[:, :, weather_frame_idx, :, :].reshape(B, -1),
            x[:, :, timing_frame_idx, :, :].reshape(B, -1),
        ]).astype(jnp.bfloat16)                                  # (2, B, d_frame)

        # ego_output = ego_involve_fc(dropout(relu(ego(x))))
        ego_pad = _fused_head(
            x_ego, self.ego_w, self.ego_b, self.ego_fc_w, self.ego_fc_b,
            relu_mid=True, tk=self.tk_ego)

        # weather / timing = classifier(backbone(frame)); both heads in ONE
        # pipelined pallas_call (head axis "parallel" -> megacore on v7x).
        wt_pad = _fused_heads_stacked(
            frames, self.wt_w, self.wt_b, self.wt_cls_w, self.wt_cls_b,
            relu_mid=False, tk=self.tk_frame)

        ego_output = ego_pad[:, :3]
        weather_output = wt_pad[0, :, :3]
        timing_output = wt_pad[1, :, :2]
        return ego_output, weather_output, timing_output


if __name__ == "__main__":
    key = jax.random.PRNGKey(0)
    k_x, k_p = jax.random.split(key)

    # small shapes consistent with an NCTHW video input
    B, C, T, H, W = 2, 3, 8, 16, 16
    x = jax.random.normal(k_x, (B, C, T, H, W), jnp.float32)

    model = BaseModelPallas(k_p, (B, C, T, H, W), hidden_size=400)

    # deterministic stand-in for np.random.randint(50) frame selection
    rng = pyrandom.Random(0)
    weather_i = rng.randrange(T)
    timing_i = rng.randrange(T)

    ego_out, weather_out, timing_out = model(x, weather_i, timing_i)
    jax.block_until_ready((ego_out, weather_out, timing_out))

    assert ego_out.shape == (B, 3)
    assert weather_out.shape == (B, 3)
    assert timing_out.shape == (B, 2)
    assert ego_out.dtype == jnp.float32

    print("KERNEL_OK")
</pallas_src>

<mosaic_0001>
module attributes {stable_mosaic.version = 11 : i64} {
  func.func @_head_mlp_kernel(%arg0: i32, %arg1: memref<2x2048xbf16, #tpu.memory_space<vmem>>, %arg2: memref<2048x512xbf16, #tpu.memory_space<vmem>>, %arg3: memref<1x512xf32, #tpu.memory_space<vmem>>, %arg4: memref<512x128xbf16, #tpu.memory_space<vmem>>, %arg5: memref<1x128xf32, #tpu.memory_space<vmem>>, %arg6: memref<2x128xf32, #tpu.memory_space<vmem>>, %arg7: memref<2x512xf32, #tpu.memory_space<vmem>>) attributes {dimension_semantics = [#tpu.dimension_semantics<arbitrary>], iteration_bounds = array<i64: 3>, scalar_prefetch = 0 : i64, scratch_operands = 1 : i64, tpu.core_type = #tpu.core_type<tc>, window_params = [{transform_indices = @transform_0, window_bounds = array<i64: 2, 2048>}, {transform_indices = @transform_1, window_bounds = array<i64: 2048, 512>}, {pipeline_mode = #tpu.pipeline_mode<synchronous>, transform_indices = @transform_2, window_bounds = array<i64: 1, 512>}, {pipeline_mode = #tpu.pipeline_mode<synchronous>, transform_indices = @transform_3, window_bounds = array<i64: 512, 128>}, {pipeline_mode = #tpu.pipeline_mode<synchronous>, transform_indices = @transform_4, window_bounds = array<i64: 1, 128>}, {pipeline_mode = #tpu.pipeline_mode<synchronous>, transform_indices = @transform_5, window_bounds = array<i64: 2, 128>}]} {
    %c0_i32 = arith.constant 0 : i32
    %0 = arith.cmpi eq, %arg0, %c0_i32 : i32
    %1 = arith.extui %0 : i1 to i32
    %c0_i32_0 = arith.constant 0 : i32
    %2 = arith.cmpi ne, %1, %c0_i32_0 : i32
    scf.if %2 {
      %cst_9 = arith.constant 0.000000e+00 : f32
      %12 = vector.broadcast %cst_9 : f32 to vector<2x512xf32>
      %c0_10 = arith.constant 0 : index
      %c0_11 = arith.constant 0 : index
      %13 = vector.load %arg7[%c0_10, %c0_11] : memref<2x512xf32, #tpu.memory_space<vmem>>, vector<2x512xf32>
      tpu.vector_store %arg7[%c0_10, %c0_11], %12 {strides = array<i32>} : memref<2x512xf32, #tpu.memory_space<vmem>>, vector<2x512xf32>,
    } else {
    }
    %c0 = arith.constant 0 : index
    %c0_1 = arith.constant 0 : index
    %3 = vector.load %arg7[%c0, %c0_1] : memref<2x512xf32, #tpu.memory_space<vmem>>, vector<2x512xf32>
    %c0_2 = arith.constant 0 : index
    %c0_3 = arith.constant 0 : index
    %4 = vector.load %arg1[%c0_2, %c0_3] : memref<2x2048xbf16, #tpu.memory_space<vmem>>, vector<2x2048xbf16>
    %c0_4 = arith.constant 0 : index
    %c0_5 = arith.constant 0 : index
    %5 = vector.load %arg2[%c0_4, %c0_5] : memref<2048x512xbf16, #tpu.memory_space<vmem>>, vector<2048x512xbf16>
    %cst = arith.constant dense<0.000000e+00> : vector<2x512xf32>
    %6 = tpu.matmul %4, %5, %cst {dimension_numbers = #tpu.dot_dimension_numbers<[1], [0], [0], [1], [0, 0, 1, 1], [], []>} : vector<2x2048xbf16>, vector<2048x512xbf16>, vector<2x512xf32> -> vector<2x512xf32>
    %7 = arith.addf %3, %6 : vector<2x512xf32>
    %c0_6 = arith.constant 0 : index
    %c0_7 = arith.constant 0 : index
    %8 = vector.load %arg7[%c0_6, %c0_7] : memref<2x512xf32, #tpu.memory_space<vmem>>, vector<2x512xf32>
    tpu.vector_store %arg7[%c0_6, %c0_7], %7 {strides = array<i32>} : memref<2x512xf32, #tpu.memory_space<vmem>>, vector<2x512xf32>,
    %c2_i32 = arith.constant 2 : i32
    %9 = arith.cmpi eq, %arg0, %c2_i32 : i32
    %10 = arith.extui %9 : i1 to i32
    %c0_i32_8 = arith.constant 0 : i32
    %11 = arith.cmpi ne, %10, %c0_i32_8 : i32
    scf.if %11 {
      %c0_9 = arith.constant 0 : index
      %c0_10 = arith.constant 0 : index
      %12 = vector.load %arg7[%c0_9, %c0_10] : memref<2x512xf32, #tpu.memory_space<vmem>>, vector<2x512xf32>
      %c0_11 = arith.constant 0 : index
      %c0_12 = arith.constant 0 : index
      %13 = vector.load %arg3[%c0_11, %c0_12] : memref<1x512xf32, #tpu.memory_space<vmem>>, vector<1x512xf32>
      %14 = vector.broadcast %13 : vector<1x512xf32> to vector<2x512xf32>
      %15 = arith.addf %12, %14 : vector<2x512xf32>
      %cst_13 = arith.constant 0.000000e+00 : f32
      %16 = vector.broadcast %cst_13 : f32 to vector<2x512xf32>
      %17 = arith.maximumf %15, %16 : vector<2x512xf32>
      %18 = arith.truncf %17 : vector<2x512xf32> to vector<2x512xbf16>
      %c0_14 = arith.constant 0 : index
      %c0_15 = arith.constant 0 : index
      %19 = vector.load %arg4[%c0_14, %c0_15] : memref<512x128xbf16, #tpu.memory_space<vmem>>, vector<512x128xbf16>
      %cst_16 = arith.constant dense<0.000000e+00> : vector<2x128xf32>
      %20 = tpu.matmul %18, %19, %cst_16 {dimension_numbers = #tpu.dot_dimension_numbers<[1], [0], [0], [1], [0, 0, 1, 1], [], []>} : vector<2x512xbf16>, vector<512x128xbf16>, vector<2x128xf32> -> vector<2x128xf32>
      %c0_17 = arith.constant 0 : index
      %c0_18 = arith.constant 0 : index
      %21 = vector.load %arg5[%c0_17, %c0_18] : memref<1x128xf32, #tpu.memory_space<vmem>>, vector<1x128xf32>
      %22 = vector.broadcast %21 : vector<1x128xf32> to vector<2x128xf32>
      %23 = arith.addf %20, %22 : vector<2x128xf32>
      %c0_19 = arith.constant 0 : index
      %c0_20 = arith.constant 0 : index
      %24 = vector.load %arg6[%c0_19, %c0_20] : memref<2x128xf32, #tpu.memory_space<vmem>>, vector<2x128xf32>
      tpu.vector_store %arg6[%c0_19, %c0_20], %23 {strides = array<i32>} : memref<2x128xf32, #tpu.memory_space<vmem>>, vector<2x128xf32>,
    } else {
    }
    return
  }
  func.func @transform_0(%arg0: i32) -> (i32, i32) {
    %c0_i32 = arith.constant 0 : i32
    %c0_i32_0 = arith.constant 0 : i32
    return %c0_i32, %arg0 : i32, i32
  }
  func.func @transform_1(%arg0: i32) -> (i32, i32) {
    %c0_i32 = arith.constant 0 : i32
    %c0_i32_0 = arith.constant 0 : i32
    return %arg0, %c0_i32 : i32, i32
  }
  func.func @transform_2(%arg0: i32) -> (i32, i32) {
    %c0_i32 = arith.constant 0 : i32
    %c0_i32_0 = arith.constant 0 : i32
    %c0_i32_1 = arith.constant 0 : i32
    return %c0_i32, %c0_i32_0 : i32, i32
  }
  func.func @transform_3(%arg0: i32) -> (i32, i32) {
    %c0_i32 = arith.constant 0 : i32
    %c0_i32_0 = arith.constant 0 : i32
    %c0_i32_1 = arith.constant 0 : i32
    return %c0_i32, %c0_i32_0 : i32, i32
  }
  func.func @transform_4(%arg0: i32) -> (i32, i32) {
    %c0_i32 = arith.constant 0 : i32
    %c0_i32_0 = arith.constant 0 : i32
    %c0_i32_1 = arith.constant 0 : i32
    return %c0_i32, %c0_i32_0 : i32, i32
  }
  func.func @transform_5(%arg0: i32) -> (i32, i32) {
    %c0_i32 = arith.constant 0 : i32
    %c0_i32_0 = arith.constant 0 : i32
    %c0_i32_1 = arith.constant 0 : i32
    return %c0_i32, %c0_i32_0 : i32, i32
  }
}

</mosaic_0001>

<bundles_post_ra>
// kernel: tpu_custom_call.1
= control target key start
LH: loop header
LB: loop body
LE: loop exit
PB: predicated region body
PF: predicated region fallthrough
CT: control target
= control target key end

     0   :  { %s9132_s0 = inlined_call_operand.hbm [shape: bf16[2,6144], index: 0, kind: input, shape index: {}]   ;;  %s9133_s1 = inlined_call_operand.hbm [shape: bf16[6144,512], index: 1, kind: input, shape index: {}]   ;;  %s9134_s2 = inlined_call_operand.hbm [shape: f32[1,512], index: 2, kind: input, shape index: {}]   ;;  %s9135_s3 = inlined_call_operand.hbm [shape: bf16[512,128], index: 3, kind: input, shape index: {}]   ;;  %s9136_s4 = inlined_call_operand.hbm [shape: f32[1,128], index: 4, kind: input, shape index: {}]   ;;  %s9137_s5 = inlined_call_operand.hbm [shape: f32[2,128], index: 5, kind: output, shape index: {}]  }
   0x1   :  { %9138 = sst [smem:[#allocation18_spill]] %s9134_s2 }
   0x2   :  { %10 = vsyncpa [#allocation4], 0 }
   0x3   :  { %12 = vsyncpa [#allocation4 + $0x1], 0 }
   0x4   :  { %13 = vsyncpa [#allocation7], 0 }
   0x5   :  { %15 = vsyncpa [#allocation7 + $0x1], 0 }
   0x6   :  { %16 = vsyncpa [#allocation10], 0 }
   0x7   :  { %17 = vsyncpa [#allocation5], 0  ;;  %s7868_s18 = smov 0   ;;  %s7870_s19 = smov 0  }
   0x8   :  { %s7872_s20 = smov 0   ;;  %s7874_s21 = smov 0  }
   0x9 LB: > { %s7887_s22 = sadd.s32 4294967295, %s7827_s21   ;;  %p43_p0 = scmp.ne.s32.totalorder %s7819_s19, %s7815_s18  ;;  %s7827_s21 = sphi %s7874_s21, %s9148_s21   ;;  %s7823_s20 = sphi %s7872_s20, %s9147_s20   ;;  %s7819_s19 = sphi %s7870_s19, %s9146_s19   ;;  %s7815_s18 = sphi %s7868_s18, %s9145_s18  }
   0xa   : > { %p44_p1 = scmp.eq.s32.totalorder %s7887_s22, 0  ;;  %p4742_p2 = scmp.ge.s32.totalorder %s7827_s21, 1 }
   0xb   : > { %p164_p3 = scmp.lt.s32.totalorder %s7827_s21, 4  ;;  %p4743_p4 = scmp.ne.s32.totalorder %s7887_s22, 0 }
   0xc   : > { %p7896_p5 = por %p44_p1, %p43_p0  ;;  %s9140_s2 = sld [smem:[#allocation18_spill]] }
   0xd   : > { %p7903_p6 = pnand %p4742_p2, %p164_p3  ;;  %s7829_s28 = smov [#allocation8]  }
   0xe   : > { %s178_s29 = sshll.u32 %s7829_s28, 4  ;;  %s187_s7 = sshll.u32 %s9135_s3, 4  ;;  %s179_s29 = int_to_ptr.vmem [resolvable:$true] %s178_s29  ;;  %s188_s7 = int_to_ptr.hbm [resolvable:$true] %s187_s7 }
   0xf   : > { %p7507_p7 = pneg %p7903_p6  ;;  %s7830_s9 = smov [#allocation9]  }
  0x10   : > { %s189_s10 = sshll.u32 %s7830_s9, 4  ;;  %s7831_s11 = smov 64   ;;  %s190_s10 = int_to_ptr.vmem [resolvable:$true] %s189_s10 }
  0x11   : > { %p7914_p8 = pnand %p7507_p7, %p44_p1  ;;  %s7832_s12 = smov 4  }
  0x12   : > { %s176_s26 = sshll.u32 %s9140_s2, 4  ;;  %s202_s15 = sshll.u32 %s9136_s4, 4  ;;  %s177_s26 = int_to_ptr.hbm [resolvable:$true] %s176_s26  ;;  %s203_s15 = int_to_ptr.hbm [resolvable:$true] %s202_s15 }
  0x13   : > { %7510 = dma.hbm_to_vmem [thread:$0]  (!%p7914_p8), %s177_s26, 64, %s179_s29, [#allocation7]  }
  0x14   : > { %7513 = dma.hbm_to_vmem [thread:$0]  (!%p7914_p8), %s188_s7, 4096, %s190_s10, [#allocation10], %s7831_s11, %s7831_s11, %s7832_s12  }
  0x15   : > { %s7833_s16 = smov [#allocation11]   ;;  %s7928_s18 = sadd.s32 1, %s7827_s21  }
  0x16   : > { %s204_s17 = sshll.u32 %s7833_s16, 4  ;;  %s27_s24 = ssub.s32 %s7827_s21, %s7928_s18  ;;  %s205_s17 = int_to_ptr.vmem [resolvable:$true] %s204_s17 }
  0x17   : > { %7516 = dma.hbm_to_vmem [thread:$0]  (!%p7914_p8), %s203_s15, 16, %s205_s17, [#allocation10]  }
  0x18   : > { %s30_s25 = sadd.s32 1, %s7823_s20  ;;  %p28_p9 = scmp.eq.s32.totalorder %s27_s24, 0 }
  0x19   : > { %p37_p10 = scmp.ne.s32.totalorder %s7823_s20, %s7819_s19  ;;  %p38_p11 = scmp.eq.s32.totalorder %s7827_s21, 0 }
  0x1a   : > { %p7527_p12 = scmp.lt.s32.totalorder %s7827_s21, 3  ;;  %s215_s28 = sand.u32 1, %s7823_s20  }
  0x1b   : > { %s7938_s26 = scalar_select %p28_p9, %s7823_s20, %s30_s25  }
  0x1c   : > { %p39_p13 = por %p38_p11, %p37_p10  ;;  %s4747_s29 = sshll.u32 %s215_s28, 4 }
  0x1d   : > { %s4748_s30 = sshll.u32 %s7827_s21, 4  ;;  %s219_s9 = scalar_lea.vmem [#allocation3], %s4747_s29 }
  0x1e   : > { %s223_s8 = scalar_lea.hbm %s9132_s0, %s4748_s30  ;;  %s227_s10 = sshll.u32 %s219_s9, 4  ;;  %s228_s10 = int_to_ptr.vmem [resolvable:$true] %s227_s10 }
  0x1f   : > { %s225_s11 = sshll.u32 %s223_s8, 4  ;;  %p7945_p0 = pnand %p7527_p12, %p39_p13  ;;  %s226_s11 = int_to_ptr.hbm [resolvable:$true] %s225_s11 }
  0x20   : > { %s4749_s13 = sshll.u32 %s215_s28, 12  ;;  %s234_s14 = sand.u32 1, %s7827_s21  }
  0x21   : > { %s216_s15 = scalar_lea.sflag [#allocation4], %s215_s28  ;;  %s7689_s16 = sshra.s32 %s226_s11, 4  ;;  %s7690_s16 = int_to_ptr.hbm [resolvable:$true] %s7689_s16 }
  0x22   : > { %s7691_s17 = scalar_lea.hbm %s7690_s16, 16  ;;  %p7693_p3 = pneg %p7945_p0 }
  0x23   : > { %p7692_p2 = scmp.ne.s32.totalorder %s7690_s16, %s7691_s17  ;;  %s7696_s29 = scalar_lea.hbm %s9132_s0, 48 }
  0x24   : > { %p7697_p9 = scmp.lt.s32.totalorder %s7690_s16, %s9132_s0  ;;  %p7698_p10 = scmp.lt.s32.totalorder %s7696_s29, %s7691_s17 }
  0x25   : > { %p7694_p7 = pnand %p7693_p3, %p7692_p2 }
  0x26   : > { %p7699_p11 = por %p7698_p10, %p7697_p9 }
  0x27   : > { %p7695_p8 = pneg %p7694_p7 }
  0x29   : > { %p7700_p12 = pnand %p7699_p11, %p7695_p8 }
  0x2b   : > { %7703 = shalt.err (!%p7700_p12)
}
  0x2c   : > { %7520 = dma.hbm_to_vmem [thread:$0]  (!%p7945_p0), %s226_s11, 256, %s228_s10, %s216_s15  }
  0x2d   : > { %s238_s28 = scalar_lea.vmem [#allocation6], %s4749_s13  ;;  %s6942_s8 = sshll.u32 %s7827_s21, 12 }
  0x2e   : > { %s247_s7 = sshll.u32 %s238_s28, 4  ;;  %s244_s25 = scalar_lea.hbm %s9133_s1, %s6942_s8  ;;  %s248_s7 = int_to_ptr.vmem [resolvable:$true] %s247_s7 }
  0x2f   : > { %s245_s2 = sshll.u32 %s244_s25, 4  ;;  %s235_s16 = scalar_lea.sflag [#allocation7], %s234_s14  ;;  %s246_s2 = int_to_ptr.hbm [resolvable:$true] %s245_s2 }
  0x30   : > { %s7719_s17 = sshra.s32 %s246_s2, 4  ;;  %s7726_s13 = scalar_lea.hbm %s9133_s1, 12288  ;;  %s7720_s17 = int_to_ptr.hbm [resolvable:$true] %s7719_s17 }
  0x31   : > { %s7721_s29 = scalar_lea.hbm %s7720_s17, 4096  ;;  %p7727_p8 = scmp.lt.s32.totalorder %s7720_s17, %s9133_s1 }
  0x32   : > { %p7722_p13 = scmp.ne.s32.totalorder %s7720_s17, %s7721_s29  ;;  %p7728_p9 = scmp.lt.s32.totalorder %s7726_s13, %s7721_s29 }
  0x34   : > { %p7724_p2 = pnand %p7722_p13, %p7693_p3  ;;  %p7729_p10 = por %p7728_p9, %p7727_p8 }
  0x36   : > { %p7725_p7 = pneg %p7724_p2 }
  0x38   : > { %p7730_p11 = pnand %p7729_p10, %p7725_p7 }
  0x3a   : > { %7733 = shalt.err (!%p7730_p11)
}
  0x3b   : > { %s7834_s14 = smov 256   ;;  %s7835_s30 = smov 16  }
  0x3c   : > { %7523 = dma.hbm_to_vmem [thread:$0]  (!%p7945_p0), %s246_s2, 65536, %s248_s7, %s235_s16, %s7834_s14, %s7834_s14, %s7835_s30  }
  0x3d   : > { %259 = sbr.rel (%p7903_p6) target bundleno = 926 (0x39e), region = 40  ;;  %s261_s6 = sand.u32 (!%p7903_p6), 1, %s7819_s19  }
  0x3e   : > { %s4754_s28 = sshll.u32 (!%p7903_p6), %s261_s6, 4  ;;  %s262_s8 = scalar_lea.sflag (!%p7903_p6), [#allocation4], %s261_s6 }
  0x3f   : > { %s7981_s9 = scalar_lea.vmem (!%p7903_p6), [#allocation3], %s4754_s28 }
  0x42   : > { %7794 = dma.done.wait (%p7896_p5), %s262_s8, 256  }
  0x43   : > { %7796 = vsyncadd (%p7896_p5), %s262_s8, 4294967040  ;;  %s271_s24 = sand.u32 1, %s7887_s22   ;;  %s4755_s12 = sshll.u32 %s261_s6, 12 }
  0x44   : > { %s272_s2 = scalar_lea.sflag [#allocation7], %s271_s24  ;;  %s7988_s7 = scalar_lea.vmem [#allocation6], %s4755_s12 }
  0x45   : > { %7798 = dma.done.wait (%p7896_p5), %s272_s2, 65536  }
  0x46   : > { %7800 = vsyncadd (%p7896_p5), %s272_s2, 4294901760 }
  0x47   : > { %7802 = dma.done.wait (%p44_p1), [#allocation7], 64  }
  0x48   : > { %7804 = vsyncadd (%p44_p1), [#allocation7], 4294967232 }
  0x49   : > { %7806 = dma.done.wait (%p44_p1), [#allocation10], 4112  }
  0x4a   : > { %7808 = vsyncadd (%p44_p1), [#allocation10], 4294963184  ;;  %323 = sbr.rel (%p4743_p4) target bundleno = 81 (0x51), region = 64 }
  0x4f   : > { %v7836_v0 = vmov 0.0  }
  0x50   : > { %324 = vst [vmem:[#allocation2] sm:$0xff] %v7836_v0 }
  0x51 PF: > { %v4874_v1 = vld [vmem:[%s7988_s7 + $0xe0] sm:$0xf]  ;;  %v6973_v2 = vld [vmem:[%s7988_s7 + $0xec] sm:$0xf0]  ;;  %vm4275_vm0 = vcmask 1041408   ;;  %vm4277_vm1 = vcmask 1045508  }
  0x52   : > { %v5002_v3 = vld [vmem:[%s7988_s7 + $0x1e0] sm:$0xf]  ;;  %v4875_v4 = vor.u32 %v6973_v2, %v4874_v1  ;;  %v7005_v5 = vld [vmem:[%s7988_s7 + $0x1ec] sm:$0xf0]  ;;  %vm4279_vm2 = vcmask 1043456   ;;  %p6808_p1 = scmp.ne.s32.totalorder %s7887_s22, 2 }
  0x53   : > { %v5130_v6 = vld [vmem:[%s7988_s7 + $0x2e0] sm:$0xf]  ;;  %v7037_v7 = vld [vmem:[%s7988_s7 + $0x2ec] sm:$0xf0]  ;;  %v5003_v8 = vor.u32 %v7005_v5, %v5002_v3 }
  0x54   : > { %v5131_v9 = vor.u32 %v7037_v7, %v5130_v6  ;;  %v5258_v10 = vld [vmem:[%s7988_s7 + $0x3e0] sm:$0xf]  ;;  %v7069_v11 = vld [vmem:[%s7988_s7 + $0x3ec] sm:$0xf0]  ;;  %3436 = vmatpush.bf16.msra.mxu0 %v4875_v4 }
  0x55   : > { %v4858_v12 = vld [vmem:[%s7988_s7 + $0xc0] sm:$0xf]  ;;  %v5259_v13 = vor.u32 %v7069_v11, %v5258_v10  ;;  %v6969_v14 = vld [vmem:[%s7988_s7 + $0xcc] sm:$0xf0]  ;;  %3449 = vmatpush.bf16.msra.mxu1 %v5003_v8 }
  0x56   : > { %v4986_v15 = vld [vmem:[%s7988_s7 + $0x1c0] sm:$0xf]  ;;  %v7001_v16 = vld [vmem:[%s7988_s7 + $0x1cc] sm:$0xf0]  ;;  %3462 = vmatpush.bf16.msra.mxu2 %v5131_v9  ;;  %v4859_v17 = vor.u32 %v6969_v14, %v4858_v12 }
  0x57   : > { %v4987_v18 = vor.u32 %v7001_v16, %v4986_v15  ;;  %v5114_v19 = vld [vmem:[%s7988_s7 + $0x2c0] sm:$0xf]  ;;  %v7033_v20 = vld [vmem:[%s7988_s7 + $0x2cc] sm:$0xf0]  ;;  %3475 = vmatpush.bf16.msra.mxu3 %v5259_v13 }
  0x58   : > { %v5242_v21 = vld [vmem:[%s7988_s7 + $0x3c0] sm:$0xf]  ;;  %v5115_v22 = vor.u32 %v7033_v20, %v5114_v19  ;;  %v7065_v23 = vld [vmem:[%s7988_s7 + $0x3cc] sm:$0xf0]  ;;  %3437 = vmatpush.bf16.msra.mxu0 %v4859_v17 }
  0x59   : > { %v4842_v24 = vld [vmem:[%s7988_s7 + $0xa0] sm:$0xf]  ;;  %v6965_v25 = vld [vmem:[%s7988_s7 + $0xac] sm:$0xf0]  ;;  %v5243_v26 = vor.u32 %v7065_v23, %v5242_v21  ;;  %3450 = vmatpush.bf16.msra.mxu1 %v4987_v18 }
  0x5a   : > { %v4970_v27 = vld [vmem:[%s7988_s7 + $0x1a0] sm:$0xf]  ;;  %v6997_v28 = vld [vmem:[%s7988_s7 + $0x1ac] sm:$0xf0]  ;;  %v4843_v30 = vor.u32 %v6965_v25, %v4842_v24  ;;  %3463 = vmatpush.bf16.msra.mxu2 %v5115_v22 }
  0x5b   : > { %v5098_v29 = vld [vmem:[%s7988_s7 + $0x2a0] sm:$0xf]  ;;  %v7029_v31 = vld [vmem:[%s7988_s7 + $0x2ac] sm:$0xf0]  ;;  %v4971_v34 = vor.u32 %v6997_v28, %v4970_v27  ;;  %3476 = vmatpush.bf16.msra.mxu3 %v5243_v26 }
  0x5c   : > { %v5226_v32 = vld [vmem:[%s7988_s7 + $0x3a0] sm:$0xf]  ;;  %v7061_v33 = vld [vmem:[%s7988_s7 + $0x3ac] sm:$0xf0]  ;;  %v5099_v35 = vor.u32 %v7029_v31, %v5098_v29  ;;  %3438 = vmatpush.bf16.msra.mxu0 %v4843_v30 }
  0x5d   : > { %v4826_v36 = vld [vmem:[%s7988_s7 + $0x80] sm:$0xf]  ;;  %v6961_v37 = vld [vmem:[%s7988_s7 + $0x8c] sm:$0xf0]  ;;  %v5227_v39 = vor.u32 %v7061_v33, %v5226_v32  ;;  %3451 = vmatpush.bf16.msra.mxu1 %v4971_v34 }
  0x5e   : > { %v4954_v38 = vld [vmem:[%s7988_s7 + $0x180] sm:$0xf]  ;;  %v6993_v40 = vld [vmem:[%s7988_s7 + $0x18c] sm:$0xf0]  ;;  %v4827_v45 = vor.u32 %v6961_v37, %v4826_v36  ;;  %3464 = vmatpush.bf16.msra.mxu2 %v5099_v35 }
  0x5f   : > { %v5082_v41 = vld [vmem:[%s7988_s7 + $0x280] sm:$0xf]  ;;  %v7025_v42 = vld [vmem:[%s7988_s7 + $0x28c] sm:$0xf0]  ;;  %v4955_v46 = vor.u32 %v6993_v40, %v4954_v38  ;;  %3477 = vmatpush.bf16.msra.mxu3 %v5227_v39 }
  0x60   : > { %v5210_v43 = vld [vmem:[%s7988_s7 + $0x380] sm:$0xf]  ;;  %v7057_v44 = vld [vmem:[%s7988_s7 + $0x38c] sm:$0xf0]  ;;  %v5083_v47 = vor.u32 %v7025_v42, %v5082_v41  ;;  %3439 = vmatpush.bf16.msra.mxu0 %v4827_v45 }
  0x61   : > { %v4810_v48 = vld [vmem:[%s7988_s7 + $0x60] sm:$0xf]  ;;  %v6957_v49 = vld [vmem:[%s7988_s7 + $0x6c] sm:$0xf0]  ;;  %v5211_v51 = vor.u32 %v7057_v44, %v5210_v43  ;;  %3452 = vmatpush.bf16.msra.mxu1 %v4955_v46 }
  0x62   : > { %v4938_v50 = vld [vmem:[%s7988_s7 + $0x160] sm:$0xf]  ;;  %v6989_v52 = vld [vmem:[%s7988_s7 + $0x16c] sm:$0xf0]  ;;  %v4811_v57 = vor.u32 %v6957_v49, %v4810_v48  ;;  %3465 = vmatpush.bf16.msra.mxu2 %v5083_v47 }
  0x63   : > { %v5066_v53 = vld [vmem:[%s7988_s7 + $0x260] sm:$0xf]  ;;  %v7021_v54 = vld [vmem:[%s7988_s7 + $0x26c] sm:$0xf0]  ;;  %v4939_v58 = vor.u32 %v6989_v52, %v4938_v50  ;;  %3478 = vmatpush.bf16.msra.mxu3 %v5211_v51 }
  0x64   : > { %v5194_v55 = vld [vmem:[%s7988_s7 + $0x360] sm:$0xf]  ;;  %v7053_v56 = vld [vmem:[%s7988_s7 + $0x36c] sm:$0xf0]  ;;  %v5067_v59 = vor.u32 %v7021_v54, %v5066_v53  ;;  %3440 = vmatpush.bf16.msra.mxu0 %v4811_v57 }
  0x65   : > { %v4794_v60 = vld [vmem:[%s7988_s7 + $0x40] sm:$0xf]  ;;  %v6953_v61 = vld [vmem:[%s7988_s7 + $0x4c] sm:$0xf0]  ;;  %v5195_v63 = vor.u32 %v7053_v56, %v5194_v55  ;;  %3453 = vmatpush.bf16.msra.mxu1 %v4939_v58 }
  0x66   : > { %v4922_v62 = vld [vmem:[%s7988_s7 + $0x140] sm:$0xf]  ;;  %v6985_v0 = vld [vmem:[%s7988_s7 + $0x14c] sm:$0xf0]  ;;  %v4795_v5 = vor.u32 %v6953_v61, %v4794_v60  ;;  %3466 = vmatpush.bf16.msra.mxu2 %v5067_v59 }
  0x67   : > { %v5050_v1 = vld [vmem:[%s7988_s7 + $0x240] sm:$0xf]  ;;  %v7017_v2 = vld [vmem:[%s7988_s7 + $0x24c] sm:$0xf0]  ;;  %v4923_v6 = vor.u32 %v6985_v0, %v4922_v62  ;;  %3479 = vmatpush.bf16.msra.mxu3 %v5195_v63 }
  0x68   : > { %v5178_v3 = vld [vmem:[%s7988_s7 + $0x340] sm:$0xf]  ;;  %v7049_v4 = vld [vmem:[%s7988_s7 + $0x34c] sm:$0xf0]  ;;  %v5051_v7 = vor.u32 %v7017_v2, %v5050_v1  ;;  %3441 = vmatpush.bf16.msra.mxu0 %v4795_v5 }
  0x69   : > { %v4778_v8 = vld [vmem:[%s7988_s7 + $0x20] sm:$0xf]  ;;  %v6949_v9 = vld [vmem:[%s7988_s7 + $0x2c] sm:$0xf0]  ;;  %v5179_v11 = vor.u32 %v7049_v4, %v5178_v3  ;;  %3454 = vmatpush.bf16.msra.mxu1 %v4923_v6 }
  0x6a   : > { %v4906_v10 = vld [vmem:[%s7988_s7 + $0x120] sm:$0xf]  ;;  %v6981_v12 = vld [vmem:[%s7988_s7 + $0x12c] sm:$0xf0]  ;;  %v4779_v17 = vor.u32 %v6949_v9, %v4778_v8  ;;  %3467 = vmatpush.bf16.msra.mxu2 %v5051_v7 }
  0x6b   : > { %v5034_v13 = vld [vmem:[%s7988_s7 + $0x220] sm:$0xf]  ;;  %v7013_v14 = vld [vmem:[%s7988_s7 + $0x22c] sm:$0xf0]  ;;  %v4907_v20 = vor.u32 %v6981_v12, %v4906_v10  ;;  %3480 = vmatpush.bf16.msra.mxu3 %v5179_v11 }
  0x6c   : > { %v5162_v15 = vld [vmem:[%s7988_s7 + $0x320] sm:$0xf]  ;;  %v7045_v16 = vld [vmem:[%s7988_s7 + $0x32c] sm:$0xf0]  ;;  %v5035_v21 = vor.u32 %v7013_v14, %v5034_v13  ;;  %3442 = vmatpush.bf16.msra.mxu0 %v4779_v17 }
  0x6d   : > { %v4762_v18 = vld [vmem:[%s7988_s7] sm:$0xf]  ;;  %v6945_v19 = vld [vmem:[%s7988_s7 + $0xc] sm:$0xf0]  ;;  %v5163_v25 = vor.u32 %v7045_v16, %v5162_v15  ;;  %3455 = vmatpush.bf16.msra.mxu1 %v4907_v20 }
  0x6e   : > { %v4890_v22 = vld [vmem:[%s7988_s7 + $0x100] sm:$0xf]  ;;  %v6977_v23 = vld [vmem:[%s7988_s7 + $0x10c] sm:$0xf0]  ;;  %v4763_v32 = vor.u32 %v6945_v19, %v4762_v18  ;;  %3468 = vmatpush.bf16.msra.mxu2 %v5035_v21 }
  0x6f   : > { %v5018_v24 = vld [vmem:[%s7988_s7 + $0x200] sm:$0xf]  ;;  %v7009_v26 = vld [vmem:[%s7988_s7 + $0x20c] sm:$0xf0]  ;;  %v4891_v36 = vor.u32 %v6977_v23, %v4890_v22  ;;  %3481 = vmatpush.bf16.msra.mxu3 %v5163_v25 }
  0x70   : > { %v5146_v27 = vld [vmem:[%s7988_s7 + $0x300] sm:$0xf]  ;;  %v7041_v28 = vld [vmem:[%s7988_s7 + $0x30c] sm:$0xf0]  ;;  %v5019_v37 = vor.u32 %v7009_v26, %v5018_v24  ;;  %3443 = vmatpush.bf16.msra.mxu0 %v4763_v32 }
  0x71   : > { %v5386_v29 = vld [vmem:[%s7988_s7 + $0x4e0] sm:$0xf]  ;;  %v7101_v30 = vld [vmem:[%s7988_s7 + $0x4ec] sm:$0xf0]  ;;  %v5147_v40 = vor.u32 %v7041_v28, %v5146_v27  ;;  %3456 = vmatpush.bf16.msra.mxu1 %v4891_v36 }
  0x72   : > { %v5514_v31 = vld [vmem:[%s7988_s7 + $0x5e0] sm:$0xf]  ;;  %v7133_v33 = vld [vmem:[%s7988_s7 + $0x5ec] sm:$0xf0]  ;;  %v5387_v41 = vor.u32 %v7101_v30, %v5386_v29  ;;  %3469 = vmatpush.bf16.msra.mxu2 %v5019_v37 }
  0x73   : > { %v5642_v34 = vld [vmem:[%s7988_s7 + $0x6e0] sm:$0xf]  ;;  %v7165_v35 = vld [vmem:[%s7988_s7 + $0x6ec] sm:$0xf0]  ;;  %v5515_v42 = vor.u32 %v7133_v33, %v5514_v31  ;;  %3482 = vmatpush.bf16.msra.mxu3 %v5147_v40 }
  0x74   : > { %v5770_v38 = vld [vmem:[%s7988_s7 + $0x7e0] sm:$0xf]  ;;  %v7197_v39 = vld [vmem:[%s7988_s7 + $0x7ec] sm:$0xf0]  ;;  %v5643_v43 = vor.u32 %v7165_v35, %v5642_v34  ;;  %3488 = vmatpush.bf16.msrb.mxu0 %v5387_v41 }
  0x75   : > { %v5370_v44 = vld [vmem:[%s7988_s7 + $0x4c0] sm:$0xf]  ;;  %v7097_v45 = vld [vmem:[%s7988_s7 + $0x4cc] sm:$0xf0]  ;;  %v5771_v47 = vor.u32 %v7197_v39, %v5770_v38  ;;  %3501 = vmatpush.bf16.msrb.mxu1 %v5515_v42 }
  0x76   : > { %v5498_v46 = vld [vmem:[%s7988_s7 + $0x5c0] sm:$0xf]  ;;  %v7129_v48 = vld [vmem:[%s7988_s7 + $0x5cc] sm:$0xf0]  ;;  %v5371_v53 = vor.u32 %v7097_v45, %v5370_v44  ;;  %3514 = vmatpush.bf16.msrb.mxu2 %v5643_v43 }
  0x77   : > { %v5626_v49 = vld [vmem:[%s7988_s7 + $0x6c0] sm:$0xf]  ;;  %v7161_v50 = vld [vmem:[%s7988_s7 + $0x6cc] sm:$0xf0]  ;;  %v5499_v56 = vor.u32 %v7129_v48, %v5498_v46  ;;  %3527 = vmatpush.bf16.msrb.mxu3 %v5771_v47 }
  0x78   : > { %v5754_v51 = vld [vmem:[%s7988_s7 + $0x7c0] sm:$0xf]  ;;  %v7193_v52 = vld [vmem:[%s7988_s7 + $0x7cc] sm:$0xf0]  ;;  %v5627_v57 = vor.u32 %v7161_v50, %v5626_v49  ;;  %3489 = vmatpush.bf16.msrb.mxu0 %v5371_v53 }
  0x79   : > { %v5354_v54 = vld [vmem:[%s7988_s7 + $0x4a0] sm:$0xf]  ;;  %v7093_v55 = vld [vmem:[%s7988_s7 + $0x4ac] sm:$0xf0]  ;;  %v5755_v61 = vor.u32 %v7193_v52, %v5754_v51  ;;  %3502 = vmatpush.bf16.msrb.mxu1 %v5499_v56 }
  0x7a   : > { %v5482_v58 = vld [vmem:[%s7988_s7 + $0x5a0] sm:$0xf]  ;;  %v7125_v59 = vld [vmem:[%s7988_s7 + $0x5ac] sm:$0xf0]  ;;  %v5355_v2 = vor.u32 %v7093_v55, %v5354_v54  ;;  %3515 = vmatpush.bf16.msrb.mxu2 %v5627_v57 }
  0x7b   : > { %v326_v60 = vld [vmem:[%s7981_s9] sm:$0xff]  ;;  %v5483_v3 = vor.u32 %v7125_v59, %v5482_v58  ;;  %3528 = vmatpush.bf16.msrb.mxu3 %v5755_v61 }
  0x7c   : > { %v5610_v62 = vld [vmem:[%s7988_s7 + $0x6a0] sm:$0xf]  ;;  %v7157_v63 = vld [vmem:[%s7988_s7 + $0x6ac] sm:$0xf0]  ;;  %841 = vst [vmem:[#allocation1] ss:$9 sm:$0xff] %v326_v60  ;;  %3490 = vmatpush.bf16.msrb.mxu0 %v5355_v2 }
  0x7d   : > { %v5738_v0 = vld [vmem:[%s7988_s7 + $0x7a0] sm:$0xf]  ;;  %v7189_v1 = vld [vmem:[%s7988_s7 + $0x7ac] sm:$0xf0]  ;;  %v5611_v4 = vor.u32 %v7157_v63, %v5610_v62  ;;  %3503 = vmatpush.bf16.msrb.mxu1 %v5483_v3  ;;  %v327_v62 = vld [vmem:[%s7981_s9 + $0x8] sm:$0xff] }
  0x7e   : > { %v5338_v5 = vld [vmem:[%s7988_s7 + $0x480] sm:$0xf]  ;;  %v7089_v6 = vld [vmem:[%s7988_s7 + $0x48c] sm:$0xf0]  ;;  %v5739_v8 = vor.u32 %v7189_v1, %v5738_v0 }
  0x7f   : > { %v5466_v7 = vld [vmem:[%s7988_s7 + $0x580] sm:$0xf]  ;;  %v7121_v9 = vld [vmem:[%s7988_s7 + $0x58c] sm:$0xf0]  ;;  %v5339_v15 = vor.u32 %v7089_v6, %v5338_v5  ;;  %3516 = vmatpush.bf16.msrb.mxu2 %v5611_v4 }
  0x80   : > { %v5594_v10 = vld [vmem:[%s7988_s7 + $0x680] sm:$0xf]  ;;  %v7153_v11 = vld [vmem:[%s7988_s7 + $0x68c] sm:$0xf0]  ;;  %v5467_v19 = vor.u32 %v7121_v9, %v5466_v7  ;;  %3529 = vmatpush.bf16.msrb.mxu3 %v5739_v8 }
  0x81   : > { %v5722_v12 = vld [vmem:[%s7988_s7 + $0x780] sm:$0xf]  ;;  %v7185_v13 = vld [vmem:[%s7988_s7 + $0x78c] sm:$0xf0]  ;;  %v5595_v20 = vor.u32 %v7153_v11, %v5594_v10  ;;  %3491 = vmatpush.bf16.msrb.mxu0 %v5339_v15 }
  0x82   : > { %v5322_v14 = vld [vmem:[%s7988_s7 + $0x460] sm:$0xf]  ;;  %v7085_v16 = vld [vmem:[%s7988_s7 + $0x46c] sm:$0xf0]  ;;  %v5723_v24 = vor.u32 %v7185_v13, %v5722_v12  ;;  %3504 = vmatpush.bf16.msrb.mxu1 %v5467_v19 }
  0x83   : > { %v5450_v17 = vld [vmem:[%s7988_s7 + $0x560] sm:$0xf]  ;;  %v7117_v18 = vld [vmem:[%s7988_s7 + $0x56c] sm:$0xf0]  ;;  %v5323_v30 = vor.u32 %v7085_v16, %v5322_v14  ;;  %3517 = vmatpush.bf16.msrb.mxu2 %v5595_v20  ;;  %v8143_v61 = vld [vmem:[#allocation1 + $0x36] sm:$0xff] }
  0x84   : > { %v8105_v21 = vld [vmem:[#allocation1 + $0x12] sm:$0xff]  ;;  %v8107_v22 = vld [vmem:[#allocation1] sm:$0xff]  ;;  %v8114_v27 = vld [vmem:[#allocation1 + $0x9] sm:$0xff]  ;;  %v5451_v31 = vor.u32 %v7117_v18, %v5450_v17  ;;  %3530 = vmatpush.bf16.msrb.mxu3 %v5723_v24 }
  0x85   : > { %v8109_v23 = vld [vmem:[#allocation1 + $0x1b] sm:$0xff]  ;;  %v5578_v25 = vld [vmem:[%s7988_s7 + $0x660] sm:$0xf]  ;;  %3470 = vmatmul.bf16.vlgmr.msra.gmra.mxu2 %v8105_v21  ;;  %3444 = vmatmul.bf16.vlgmr.msra.gmra.mxu0 %v8107_v22  ;;  %v8146_v1 = vld [vmem:[#allocation1 + $0x24] sm:$0xff] }
  0x86   : > { %v7149_v26 = vld [vmem:[%s7988_s7 + $0x66c] sm:$0xf0]  ;;  %v5706_v28 = vld [vmem:[%s7988_s7 + $0x760] sm:$0xf]  ;;  %3483 = vmatmul.bf16.vlgmr.msra.gmra.mxu3 %v8109_v23  ;;  %3457 = vmatmul.bf16.vlgmr.msra.gmra.mxu1 %v8114_v27 }
  0x87   : > { %v7181_v29 = vld [vmem:[%s7988_s7 + $0x76c] sm:$0xf0]  ;;  %v5579_v32 = vor.u32 %v7149_v26, %v5578_v25  ;;  %v5306_v33 = vld [vmem:[%s7988_s7 + $0x440] sm:$0xf]  ;;  %3492 = vmatpush.bf16.msrb.mxu0 %v5323_v30  ;;  %3505 = vmatpush.bf16.msrb.mxu1 %v5451_v31 }
  0x88   : > { %v7081_v34 = vld [vmem:[%s7988_s7 + $0x44c] sm:$0xf0]  ;;  %v5434_v35 = vld [vmem:[%s7988_s7 + $0x540] sm:$0xf]  ;;  %v5707_v36 = vor.u32 %v7181_v29, %v5706_v28 }
  0x89   : > { %v7113_v37 = vld [vmem:[%s7988_s7 + $0x54c] sm:$0xf0]  ;;  %v5562_v38 = vld [vmem:[%s7988_s7 + $0x640] sm:$0xf]  ;;  %v5307_v42 = vor.u32 %v7081_v34, %v5306_v33  ;;  %3518 = vmatpush.bf16.msrb.mxu2 %v5579_v32 }
  0x8a   : > { %v7145_v39 = vld [vmem:[%s7988_s7 + $0x64c] sm:$0xf0]  ;;  %v5690_v40 = vld [vmem:[%s7988_s7 + $0x740] sm:$0xf]  ;;  %v5435_v44 = vor.u32 %v7113_v37, %v5434_v35  ;;  %3531 = vmatpush.bf16.msrb.mxu3 %v5707_v36 }
  0x8b   : > { %v7177_v41 = vld [vmem:[%s7988_s7 + $0x74c] sm:$0xf0]  ;;  %v5290_v43 = vld [vmem:[%s7988_s7 + $0x420] sm:$0xf]  ;;  %v5563_v45 = vor.u32 %v7145_v39, %v5562_v38  ;;  %3493 = vmatpush.bf16.msrb.mxu0 %v5307_v42 }
  0x8c   : > { %v7077_v46 = vld [vmem:[%s7988_s7 + $0x42c] sm:$0xf0]  ;;  %v5418_v47 = vld [vmem:[%s7988_s7 + $0x520] sm:$0xf]  ;;  %v5691_v49 = vor.u32 %v7177_v41, %v5690_v40  ;;  %3506 = vmatpush.bf16.msrb.mxu1 %v5435_v44 }
  0x8d   : > { %v7109_v48 = vld [vmem:[%s7988_s7 + $0x52c] sm:$0xf0]  ;;  %v5546_v50 = vld [vmem:[%s7988_s7 + $0x620] sm:$0xf]  ;;  %v5291_v56 = vor.u32 %v7077_v46, %v5290_v43  ;;  %3519 = vmatpush.bf16.msrb.mxu2 %v5563_v45 }
  0x8e   : > { %v7141_v51 = vld [vmem:[%s7988_s7 + $0x62c] sm:$0xf0]  ;;  %v5674_v52 = vld [vmem:[%s7988_s7 + $0x720] sm:$0xf]  ;;  %v5419_v63 = vor.u32 %v7109_v48, %v5418_v47  ;;  %3532 = vmatpush.bf16.msrb.mxu3 %v5691_v49 }
  0x8f   : > { %v7173_v53 = vld [vmem:[%s7988_s7 + $0x72c] sm:$0xf0]  ;;  %v5274_v54 = vld [vmem:[%s7988_s7 + $0x400] sm:$0xf]  ;;  %v5547_v0 = vor.u32 %v7141_v51, %v5546_v50  ;;  %3494 = vmatpush.bf16.msrb.mxu0 %v5291_v56 }
  0x90   : > { %v7073_v55 = vld [vmem:[%s7988_s7 + $0x40c] sm:$0xf0]  ;;  %v5402_v57 = vld [vmem:[%s7988_s7 + $0x500] sm:$0xf]  ;;  %v5675_v4 = vor.u32 %v7173_v53, %v5674_v52  ;;  %3507 = vmatpush.bf16.msrb.mxu1 %v5419_v63 }
  0x91   : > { %v7105_v58 = vld [vmem:[%s7988_s7 + $0x50c] sm:$0xf0]  ;;  %v5530_v59 = vld [vmem:[%s7988_s7 + $0x600] sm:$0xf]  ;;  %v5275_v10 = vor.u32 %v7073_v55, %v5274_v54  ;;  %3520 = vmatpush.bf16.msrb.mxu2 %v5547_v0 }
  0x92   : > { %v7137_v60 = vld [vmem:[%s7988_s7 + $0x60c] sm:$0xf0]  ;;  %v8150_v3 = vld [vmem:[#allocation1 + $0x2d] sm:$0xff]  ;;  %v5403_v14 = vor.u32 %v7105_v58, %v5402_v57  ;;  %3533 = vmatpush.bf16.msrb.mxu3 %v5675_v4 }
  0x93   : > { %v8148_v2 = vld [vmem:[#allocation1 + $0x3f] sm:$0xff]  ;;  %v5658_v5 = vld [vmem:[%s7988_s7 + $0x700] sm:$0xf]  ;;  %v5531_v15 = vor.u32 %v7137_v60, %v5530_v59  ;;  %3495 = vmatpush.bf16.msrb.mxu0 %v5275_v10 }
  0x94   : > { %v7169_v6 = vld [vmem:[%s7988_s7 + $0x70c] sm:$0xf0]  ;;  %851 = vst [vmem:[#allocation1] ss:$9 sm:$0xff] %v327_v62  ;;  %v5898_v7 = vld [vmem:[%s7988_s7 + $0x8e0] sm:$0xf]  ;;  %3508 = vmatpush.bf16.msrb.mxu1 %v5403_v14 }
  0x95   : > { %v7229_v8 = vld [vmem:[%s7988_s7 + $0x8ec] sm:$0xf0]  ;;  %v6026_v9 = vld [vmem:[%s7988_s7 + $0x9e0] sm:$0xf]  ;;  %v5659_v18 = vor.u32 %v7169_v6, %v5658_v5  ;;  %3521 = vmatpush.bf16.msrb.mxu2 %v5531_v15 }
  0x96   : > { %v7261_v11 = vld [vmem:[%s7988_s7 + $0x9ec] sm:$0xf0]  ;;  %v6154_v12 = vld [vmem:[%s7988_s7 + $0xae0] sm:$0xf]  ;;  %v5899_v19 = vor.u32 %v7229_v8, %v5898_v7  ;;  %3496 = vmatmul.bf16.vlgmr.msrb.gmra.mxu0 %v8146_v1 }
  0x97   : > { %v7293_v13 = vld [vmem:[%s7988_s7 + $0xaec] sm:$0xf0]  ;;  %v6282_v16 = vld [vmem:[%s7988_s7 + $0xbe0] sm:$0xf]  ;;  %v6027_v20 = vor.u32 %v7261_v11, %v6026_v9  ;;  %3534 = vmatpush.bf16.msrb.mxu3 %v5659_v18  ;;  %3509 = vmatmul.bf16.vlgmr.msrb.gmra.mxu1 %v8150_v3 }
  0x98   : > { %v7325_v17 = vld [vmem:[%s7988_s7 + $0xbec] sm:$0xf0]  ;;  %v6155_v24 = vor.u32 %v7293_v13, %v6154_v12  ;;  %v5882_v25 = vld [vmem:[%s7988_s7 + $0x8c0] sm:$0xf]  ;;  %3540 = vmatpush.bf16.msra.mxu0 %v5899_v19  ;;  %3522 = vmatmul.bf16.vlgmr.msrb.gmra.mxu2 %v8143_v61 }
  0x99   : > { %v7225_v26 = vld [vmem:[%s7988_s7 + $0x8cc] sm:$0xf0]  ;;  %v6010_v28 = vld [vmem:[%s7988_s7 + $0x9c0] sm:$0xf]  ;;  %v6283_v29 = vor.u32 %v7325_v17, %v6282_v16  ;;  %3553 = vmatpush.bf16.msra.mxu1 %v6027_v20 }
  0x9a   : > { %v7257_v30 = vld [vmem:[%s7988_s7 + $0x9cc] sm:$0xf0]  ;;  %v6138_v31 = vld [vmem:[%s7988_s7 + $0xac0] sm:$0xf]  ;;  %v5883_v35 = vor.u32 %v7225_v26, %v5882_v25  ;;  %3566 = vmatpush.bf16.msra.mxu2 %v6155_v24  ;;  %3535 = vmatmul.bf16.vlgmr.msrb.gmra.mxu3 %v8148_v2 }
  0x9b   : > { %v7289_v32 = vld [vmem:[%s7988_s7 + $0xacc] sm:$0xf0]  ;;  %v6266_v33 = vld [vmem:[%s7988_s7 + $0xbc0] sm:$0xf]  ;;  %v6011_v36 = vor.u32 %v7257_v30, %v6010_v28  ;;  %3579 = vmatpush.bf16.msra.mxu3 %v6283_v29 }
  0x9c   : > { %v7321_v34 = vld [vmem:[%s7988_s7 + $0xbcc] sm:$0xf0]  ;;  %v6139_v37 = vor.u32 %v7289_v32, %v6138_v31  ;;  %v5866_v38 = vld [vmem:[%s7988_s7 + $0x8a0] sm:$0xf]  ;;  %3541 = vmatpush.bf16.msra.mxu0 %v5883_v35 }
  0x9d   : > { %v7221_v39 = vld [vmem:[%s7988_s7 + $0x8ac] sm:$0xf0]  ;;  %v5994_v40 = vld [vmem:[%s7988_s7 + $0x9a0] sm:$0xf]  ;;  %v6267_v41 = vor.u32 %v7321_v34, %v6266_v33  ;;  %3554 = vmatpush.bf16.msra.mxu1 %v6011_v36 }
  0x9e   : > { %v7253_v42 = vld [vmem:[%s7988_s7 + $0x9ac] sm:$0xf0]  ;;  %v6122_v43 = vld [vmem:[%s7988_s7 + $0xaa0] sm:$0xf]  ;;  %v5867_v47 = vor.u32 %v7221_v39, %v5866_v38  ;;  %3567 = vmatpush.bf16.msra.mxu2 %v6139_v37 }
  0x9f   : > { %v7285_v44 = vld [vmem:[%s7988_s7 + $0xaac] sm:$0xf0]  ;;  %v6250_v45 = vld [vmem:[%s7988_s7 + $0xba0] sm:$0xf]  ;;  %v5995_v48 = vor.u32 %v7253_v42, %v5994_v40  ;;  %3580 = vmatpush.bf16.msra.mxu3 %v6267_v41 }
  0xa0   : > { %v7317_v46 = vld [vmem:[%s7988_s7 + $0xbac] sm:$0xf0]  ;;  %v6123_v49 = vor.u32 %v7285_v44, %v6122_v43  ;;  %v5850_v50 = vld [vmem:[%s7988_s7 + $0x880] sm:$0xf]  ;;  %3542 = vmatpush.bf16.msra.mxu0 %v5867_v47 }
  0xa1   : > { %v7217_v51 = vld [vmem:[%s7988_s7 + $0x88c] sm:$0xf0]  ;;  %v5978_v52 = vld [vmem:[%s7988_s7 + $0x980] sm:$0xf]  ;;  %v6251_v53 = vor.u32 %v7317_v46, %v6250_v45  ;;  %3555 = vmatpush.bf16.msra.mxu1 %v5995_v48 }
  0xa2   : > { %v7249_v54 = vld [vmem:[%s7988_s7 + $0x98c] sm:$0xf0]  ;;  %v6106_v55 = vld [vmem:[%s7988_s7 + $0xa80] sm:$0xf]  ;;  %v5851_v59 = vor.u32 %v7217_v51, %v5850_v50  ;;  %3568 = vmatpush.bf16.msra.mxu2 %v6123_v49 }
  0xa3   : > { %v7281_v56 = vld [vmem:[%s7988_s7 + $0xa8c] sm:$0xf0]  ;;  %v6234_v57 = vld [vmem:[%s7988_s7 + $0xb80] sm:$0xf]  ;;  %v5979_v60 = vor.u32 %v7249_v54, %v5978_v52  ;;  %3581 = vmatpush.bf16.msra.mxu3 %v6251_v53 }
  0xa4   : > { %v7313_v58 = vld [vmem:[%s7988_s7 + $0xb8c] sm:$0xf0]  ;;  %v6107_v62 = vor.u32 %v7281_v56, %v6106_v55  ;;  %v5834_v63 = vld [vmem:[%s7988_s7 + $0x860] sm:$0xf]  ;;  %3543 = vmatpush.bf16.msra.mxu0 %v5851_v59 }
  0xa5   : > { %v7213_v0 = vld [vmem:[%s7988_s7 + $0x86c] sm:$0xf0]  ;;  %v5962_v4 = vld [vmem:[%s7988_s7 + $0x960] sm:$0xf]  ;;  %v6235_v5 = vor.u32 %v7313_v58, %v6234_v57  ;;  %3556 = vmatpush.bf16.msra.mxu1 %v5979_v60 }
  0xa6   : > { %v7245_v6 = vld [vmem:[%s7988_s7 + $0x96c] sm:$0xf0]  ;;  %v6090_v7 = vld [vmem:[%s7988_s7 + $0xa60] sm:$0xf]  ;;  %v5835_v11 = vor.u32 %v7213_v0, %v5834_v63  ;;  %3569 = vmatpush.bf16.msra.mxu2 %v6107_v62 }
  0xa7   : > { %v7277_v8 = vld [vmem:[%s7988_s7 + $0xa6c] sm:$0xf0]  ;;  %v6218_v9 = vld [vmem:[%s7988_s7 + $0xb60] sm:$0xf]  ;;  %v5963_v12 = vor.u32 %v7245_v6, %v5962_v4  ;;  %3582 = vmatpush.bf16.msra.mxu3 %v6235_v5 }
  0xa8   : > { %v7309_v10 = vld [vmem:[%s7988_s7 + $0xb6c] sm:$0xf0]  ;;  %v6091_v13 = vor.u32 %v7277_v8, %v6090_v7  ;;  %v5818_v14 = vld [vmem:[%s7988_s7 + $0x840] sm:$0xf]  ;;  %3544 = vmatpush.bf16.msra.mxu0 %v5835_v11 }
  0xa9   : > { %v7209_v15 = vld [vmem:[%s7988_s7 + $0x84c] sm:$0xf0]  ;;  %v5946_v16 = vld [vmem:[%s7988_s7 + $0x940] sm:$0xf]  ;;  %v6219_v17 = vor.u32 %v7309_v10, %v6218_v9  ;;  %3557 = vmatpush.bf16.msra.mxu1 %v5963_v12 }
  0xaa   : > { %v7241_v18 = vld [vmem:[%s7988_s7 + $0x94c] sm:$0xf0]  ;;  %v6074_v19 = vld [vmem:[%s7988_s7 + $0xa40] sm:$0xf]  ;;  %v5819_v26 = vor.u32 %v7209_v15, %v5818_v14  ;;  %3570 = vmatpush.bf16.msra.mxu2 %v6091_v13 }
  0xab   : > { %v7273_v20 = vld [vmem:[%s7988_s7 + $0xa4c] sm:$0xf0]  ;;  %v6202_v24 = vld [vmem:[%s7988_s7 + $0xb40] sm:$0xf]  ;;  %v5947_v28 = vor.u32 %v7241_v18, %v5946_v16  ;;  %3583 = vmatpush.bf16.msra.mxu3 %v6219_v17 }
  0xac   : > { %v7305_v25 = vld [vmem:[%s7988_s7 + $0xb4c] sm:$0xf0]  ;;  %v6075_v29 = vor.u32 %v7273_v20, %v6074_v19  ;;  %v5802_v30 = vld [vmem:[%s7988_s7 + $0x820] sm:$0xf]  ;;  %3545 = vmatpush.bf16.msra.mxu0 %v5819_v26 }
  0xad   : > { %v7205_v31 = vld [vmem:[%s7988_s7 + $0x82c] sm:$0xf0]  ;;  %v5930_v32 = vld [vmem:[%s7988_s7 + $0x920] sm:$0xf]  ;;  %v6203_v33 = vor.u32 %v7305_v25, %v6202_v24  ;;  %3558 = vmatpush.bf16.msra.mxu1 %v5947_v28 }
  0xae   : > { %v7237_v34 = vld [vmem:[%s7988_s7 + $0x92c] sm:$0xf0]  ;;  %v6058_v35 = vld [vmem:[%s7988_s7 + $0xa20] sm:$0xf]  ;;  %v5803_v39 = vor.u32 %v7205_v31, %v5802_v30  ;;  %3571 = vmatpush.bf16.msra.mxu2 %v6075_v29 }
  0xaf   : > { %v7269_v36 = vld [vmem:[%s7988_s7 + $0xa2c] sm:$0xf0]  ;;  %v6186_v37 = vld [vmem:[%s7988_s7 + $0xb20] sm:$0xf]  ;;  %v5931_v42 = vor.u32 %v7237_v34, %v5930_v32  ;;  %3584 = vmatpush.bf16.msra.mxu3 %v6203_v33 }
  0xb0   : > { %v7301_v38 = vld [vmem:[%s7988_s7 + $0xb2c] sm:$0xf0]  ;;  %v5786_v40 = vld [vmem:[%s7988_s7 + $0x800] sm:$0xf]  ;;  %v6059_v43 = vor.u32 %v7269_v36, %v6058_v35  ;;  %3546 = vmatpush.bf16.msra.mxu0 %v5803_v39 }
  0xb1   : > { %v7201_v41 = vld [vmem:[%s7988_s7 + $0x80c] sm:$0xf0]  ;;  %v5914_v44 = vld [vmem:[%s7988_s7 + $0x900] sm:$0xf]  ;;  %v6187_v47 = vor.u32 %v7301_v38, %v6186_v37  ;;  %3559 = vmatpush.bf16.msra.mxu1 %v5931_v42 }
  0xb2   : > { %v7233_v45 = vld [vmem:[%s7988_s7 + $0x90c] sm:$0xf0]  ;;  %v6042_v46 = vld [vmem:[%s7988_s7 + $0xa00] sm:$0xf]  ;;  %v5787_v54 = vor.u32 %v7201_v41, %v5786_v40  ;;  %3572 = vmatpush.bf16.msra.mxu2 %v6059_v43 }
  0xb3   : > { %v7265_v48 = vld [vmem:[%s7988_s7 + $0xa0c] sm:$0xf0]  ;;  %v6170_v49 = vld [vmem:[%s7988_s7 + $0xb00] sm:$0xf]  ;;  %v5915_v58 = vor.u32 %v7233_v45, %v5914_v44  ;;  %3585 = vmatpush.bf16.msra.mxu3 %v6187_v47 }
  0xb4   : > { %v7297_v50 = vld [vmem:[%s7988_s7 + $0xb0c] sm:$0xf0]  ;;  %v6410_v51 = vld [vmem:[%s7988_s7 + $0xce0] sm:$0xf]  ;;  %v6043_v59 = vor.u32 %v7265_v48, %v6042_v46  ;;  %3547 = vmatpush.bf16.msra.mxu0 %v5787_v54 }
  0xb5   : > { %v7357_v52 = vld [vmem:[%s7988_s7 + $0xcec] sm:$0xf0]  ;;  %v6538_v53 = vld [vmem:[%s7988_s7 + $0xde0] sm:$0xf]  ;;  %v6171_v63 = vor.u32 %v7297_v50, %v6170_v49  ;;  %3560 = vmatpush.bf16.msra.mxu1 %v5915_v58 }
  0xb6   : > { %v7389_v55 = vld [vmem:[%s7988_s7 + $0xdec] sm:$0xf0]  ;;  %v6666_v56 = vld [vmem:[%s7988_s7 + $0xee0] sm:$0xf]  ;;  %v6411_v0 = vor.u32 %v7357_v52, %v6410_v51  ;;  %3573 = vmatpush.bf16.msra.mxu2 %v6043_v59 }
  0xb7   : > { %v7421_v57 = vld [vmem:[%s7988_s7 + $0xeec] sm:$0xf0]  ;;  %v6794_v60 = vld [vmem:[%s7988_s7 + $0xfe0] sm:$0xf]  ;;  %v6539_v4 = vor.u32 %v7389_v55, %v6538_v53  ;;  %3586 = vmatpush.bf16.msra.mxu3 %v6171_v63 }
  0xb8   : > { %v7453_v62 = vld [vmem:[%s7988_s7 + $0xfec] sm:$0xf0]  ;;  %v6667_v5 = vor.u32 %v7421_v57, %v6666_v56  ;;  %v6394_v6 = vld [vmem:[%s7988_s7 + $0xcc0] sm:$0xf]  ;;  %3592 = vmatpush.bf16.msrb.mxu0 %v6411_v0 }
  0xb9   : > { %v7353_v7 = vld [vmem:[%s7988_s7 + $0xccc] sm:$0xf0]  ;;  %v6522_v8 = vld [vmem:[%s7988_s7 + $0xdc0] sm:$0xf]  ;;  %v6795_v9 = vor.u32 %v7453_v62, %v6794_v60  ;;  %3605 = vmatpush.bf16.msrb.mxu1 %v6539_v4 }
  0xba   : > { %v7385_v10 = vld [vmem:[%s7988_s7 + $0xdcc] sm:$0xf0]  ;;  %v6650_v11 = vld [vmem:[%s7988_s7 + $0xec0] sm:$0xf]  ;;  %v6395_v19 = vor.u32 %v7353_v7, %v6394_v6  ;;  %3618 = vmatpush.bf16.msrb.mxu2 %v6667_v5 }
  0xbb   : > { %v7417_v12 = vld [vmem:[%s7988_s7 + $0xecc] sm:$0xf0]  ;;  %v6778_v14 = vld [vmem:[%s7988_s7 + $0xfc0] sm:$0xf]  ;;  %v6523_v20 = vor.u32 %v7385_v10, %v6522_v8  ;;  %3631 = vmatpush.bf16.msrb.mxu3 %v6795_v9 }
  0xbc   : > { %v852_v13 = vld [vmem:[#allocation1] sm:$0xff]  ;;  %v854_v16 = vld [vmem:[#allocation1 + $0x12] sm:$0xff]  ;;  %v853_v17 = vld [vmem:[#allocation1 + $0x9] sm:$0xff]  ;;  %v6651_v24 = vor.u32 %v7417_v12, %v6650_v11  ;;  %3593 = vmatpush.bf16.msrb.mxu0 %v6395_v19 }
  0xbd   : > { %v7449_v15 = vld [vmem:[%s7988_s7 + $0xfcc] sm:$0xf0]  ;;  %v6378_v25 = vld [vmem:[%s7988_s7 + $0xca0] sm:$0xf]  ;;  %3548 = vmatmul.bf16.vlgmr.msra.gmra.mxu0 %v852_v13  ;;  %3574 = vmatmul.bf16.vlgmr.msra.gmra.mxu2 %v854_v16 }
  0xbe   : > { %v855_v18 = vld [vmem:[#allocation1 + $0x1b] sm:$0xff]  ;;  %v6506_v28 = vld [vmem:[%s7988_s7 + $0xda0] sm:$0xf]  ;;  %v6779_v29 = vor.u32 %v7449_v15, %v6778_v14  ;;  %3561 = vmatmul.bf16.vlgmr.msra.gmra.mxu1 %v853_v17  ;;  %3619 = vmatpush.bf16.msrb.mxu2 %v6651_v24 }
  0xbf   : > { %v7349_v26 = vld [vmem:[%s7988_s7 + $0xcac] sm:$0xf0]  ;;  %v6634_v31 = vld [vmem:[%s7988_s7 + $0xea0] sm:$0xf]  ;;  %3587 = vmatmul.bf16.vlgmr.msra.gmra.mxu3 %v855_v18  ;;  %3606 = vmatpush.bf16.msrb.mxu1 %v6523_v20 }
  0xc0   : > { %v7381_v30 = vld [vmem:[%s7988_s7 + $0xdac] sm:$0xf0]  ;;  %v6762_v33 = vld [vmem:[%s7988_s7 + $0xfa0] sm:$0xf]  ;;  %v6379_v35 = vor.u32 %v7349_v26, %v6378_v25  ;;  %3632 = vmatpush.bf16.msrb.mxu3 %v6779_v29 }
  0xc1   : > { %v7413_v32 = vld [vmem:[%s7988_s7 + $0xeac] sm:$0xf0]  ;;  %v6507_v36 = vor.u32 %v7381_v30, %v6506_v28  ;;  %v6362_v38 = vld [vmem:[%s7988_s7 + $0xc80] sm:$0xf] }
  0xc2   : > { %v7445_v34 = vld [vmem:[%s7988_s7 + $0xfac] sm:$0xf0]  ;;  %v6635_v37 = vor.u32 %v7413_v32, %v6634_v31  ;;  %v6490_v40 = vld [vmem:[%s7988_s7 + $0xd80] sm:$0xf]  ;;  %3594 = vmatpush.bf16.msrb.mxu0 %v6379_v35 }
  0xc3   : > { %v7345_v39 = vld [vmem:[%s7988_s7 + $0xc8c] sm:$0xf0]  ;;  %v6763_v41 = vor.u32 %v7445_v34, %v6762_v33  ;;  %v6618_v43 = vld [vmem:[%s7988_s7 + $0xe80] sm:$0xf]  ;;  %3607 = vmatpush.bf16.msrb.mxu1 %v6507_v36 }
  0xc4   : > { %v7377_v42 = vld [vmem:[%s7988_s7 + $0xd8c] sm:$0xf0]  ;;  %v6746_v45 = vld [vmem:[%s7988_s7 + $0xf80] sm:$0xf]  ;;  %v6363_v47 = vor.u32 %v7345_v39, %v6362_v38  ;;  %3620 = vmatpush.bf16.msrb.mxu2 %v6635_v37  ;;  %v6971_v39 = vld [vmem:[%s7988_s7 + $0xe4] sm:$0xf] }
  0xc5   : > { %v7409_v44 = vld [vmem:[%s7988_s7 + $0xe8c] sm:$0xf0]  ;;  %v6491_v48 = vor.u32 %v7377_v42, %v6490_v40  ;;  %v6346_v50 = vld [vmem:[%s7988_s7 + $0xc60] sm:$0xf]  ;;  %3633 = vmatpush.bf16.msrb.mxu3 %v6763_v41  ;;  %v4876_v40 = vld [vmem:[%s7988_s7 + $0xf0] sm:$0xf0] }
  0xc6   : > { %v7441_v46 = vld [vmem:[%s7988_s7 + $0xf8c] sm:$0xf0]  ;;  %v6619_v49 = vor.u32 %v7409_v44, %v6618_v43  ;;  %v6474_v52 = vld [vmem:[%s7988_s7 + $0xd60] sm:$0xf]  ;;  %3595 = vmatpush.bf16.msrb.mxu0 %v6363_v47  ;;  %v7003_v41 = vld [vmem:[%s7988_s7 + $0x1e4] sm:$0xf] }
  0xc7   : > { %v7341_v51 = vld [vmem:[%s7988_s7 + $0xc6c] sm:$0xf0]  ;;  %v6747_v53 = vor.u32 %v7441_v46, %v6746_v45  ;;  %v6602_v55 = vld [vmem:[%s7988_s7 + $0xe60] sm:$0xf]  ;;  %3608 = vmatpush.bf16.msrb.mxu1 %v6491_v48  ;;  %v5004_v43 = vld [vmem:[%s7988_s7 + $0x1f0] sm:$0xf0] }
  0xc8   : > { %v7373_v54 = vld [vmem:[%s7988_s7 + $0xd6c] sm:$0xf0]  ;;  %v6730_v57 = vld [vmem:[%s7988_s7 + $0xf60] sm:$0xf]  ;;  %v6347_v59 = vor.u32 %v7341_v51, %v6346_v50  ;;  %3621 = vmatpush.bf16.msrb.mxu2 %v6619_v49  ;;  %v7035_v44 = vld [vmem:[%s7988_s7 + $0x2e4] sm:$0xf]  ;;  %v4879_v51 = vor.u32 %v6971_v39, %v4876_v40 }
  0xc9   : > { %v7405_v56 = vld [vmem:[%s7988_s7 + $0xe6c] sm:$0xf0]  ;;  %v6475_v60 = vor.u32 %v7373_v54, %v6474_v52  ;;  %v6330_v63 = vld [vmem:[%s7988_s7 + $0xc40] sm:$0xf]  ;;  %3634 = vmatpush.bf16.msrb.mxu3 %v6747_v53  ;;  %v5132_v45 = vld [vmem:[%s7988_s7 + $0x2f0] sm:$0xf0]  ;;  %v5007_v52 = vor.u32 %v7003_v41, %v5004_v43 }
  0xca   : > { %v7437_v58 = vld [vmem:[%s7988_s7 + $0xf6c] sm:$0xf0]  ;;  %v6603_v62 = vor.u32 %v7405_v56, %v6602_v55  ;;  %v6458_v4 = vld [vmem:[%s7988_s7 + $0xd40] sm:$0xf]  ;;  %3596 = vmatpush.bf16.msrb.mxu0 %v6347_v59  ;;  %v7067_v48 = vld [vmem:[%s7988_s7 + $0x3e4] sm:$0xf]  ;;  %v5135_v53 = vor.u32 %v7035_v44, %v5132_v45 }
  0xcb   : > { %v7337_v0 = vld [vmem:[%s7988_s7 + $0xc4c] sm:$0xf0]  ;;  %v6731_v5 = vor.u32 %v7437_v58, %v6730_v57  ;;  %v6586_v7 = vld [vmem:[%s7988_s7 + $0xe40] sm:$0xf]  ;;  %3609 = vmatpush.bf16.msrb.mxu1 %v6475_v60  ;;  %v5260_v49 = vld [vmem:[%s7988_s7 + $0x3f0] sm:$0xf0] }
  0xcc   : > { %v7369_v6 = vld [vmem:[%s7988_s7 + $0xd4c] sm:$0xf0]  ;;  %v6714_v9 = vld [vmem:[%s7988_s7 + $0xf40] sm:$0xf]  ;;  %v6331_v11 = vor.u32 %v7337_v0, %v6330_v63  ;;  %3622 = vmatpush.bf16.msrb.mxu2 %v6603_v62  ;;  %v6967_v54 = vld [vmem:[%s7988_s7 + $0xc4] sm:$0xf]  ;;  %v5263_v57 = vor.u32 %v7067_v48, %v5260_v49 }
  0xcd   : > { %v7401_v8 = vld [vmem:[%s7988_s7 + $0xe4c] sm:$0xf0]  ;;  %v6459_v12 = vor.u32 %v7369_v6, %v6458_v4  ;;  %v6314_v14 = vld [vmem:[%s7988_s7 + $0xc20] sm:$0xf]  ;;  %3635 = vmatpush.bf16.msrb.mxu3 %v6731_v5  ;;  %v4860_v55 = vld [vmem:[%s7988_s7 + $0xd0] sm:$0xf0] }
  0xce   : > { %v7433_v10 = vld [vmem:[%s7988_s7 + $0xf4c] sm:$0xf0]  ;;  %v6587_v13 = vor.u32 %v7401_v8, %v6586_v7  ;;  %v6442_v16 = vld [vmem:[%s7988_s7 + $0xd20] sm:$0xf]  ;;  %3597 = vmatpush.bf16.msrb.mxu0 %v6331_v11  ;;  %v6999_v56 = vld [vmem:[%s7988_s7 + $0x1c4] sm:$0xf]  ;;  %v4863_v7 = vor.u32 %v6967_v54, %v4860_v55 }
  0xcf   : > { %v7333_v15 = vld [vmem:[%s7988_s7 + $0xc2c] sm:$0xf0]  ;;  %v6715_v17 = vor.u32 %v7433_v10, %v6714_v9  ;;  %v6570_v19 = vld [vmem:[%s7988_s7 + $0xe20] sm:$0xf]  ;;  %3610 = vmatpush.bf16.msrb.mxu1 %v6459_v12  ;;  %v4988_v58 = vld [vmem:[%s7988_s7 + $0x1d0] sm:$0xf0] }
  0xd0   : > { %v7365_v18 = vld [vmem:[%s7988_s7 + $0xd2c] sm:$0xf0]  ;;  %v6698_v24 = vld [vmem:[%s7988_s7 + $0xf20] sm:$0xf]  ;;  %v6315_v26 = vor.u32 %v7333_v15, %v6314_v14  ;;  %3623 = vmatpush.bf16.msrb.mxu2 %v6587_v13  ;;  %v7031_v59 = vld [vmem:[%s7988_s7 + $0x2c4] sm:$0xf]  ;;  %v4991_v8 = vor.u32 %v6999_v56, %v4988_v58 }
  0xd1   : > { %v7397_v20 = vld [vmem:[%s7988_s7 + $0xe2c] sm:$0xf0]  ;;  %v6298_v28 = vld [vmem:[%s7988_s7 + $0xc00] sm:$0xf]  ;;  %v6443_v30 = vor.u32 %v7365_v18, %v6442_v16  ;;  %3636 = vmatpush.bf16.msrb.mxu3 %v6715_v17  ;;  %v5116_v60 = vld [vmem:[%s7988_s7 + $0x2d0] sm:$0xf0] }
  0xd2   : > { %v7429_v25 = vld [vmem:[%s7988_s7 + $0xf2c] sm:$0xf0]  ;;  %v6571_v31 = vor.u32 %v7397_v20, %v6570_v19  ;;  %v6426_v32 = vld [vmem:[%s7988_s7 + $0xd00] sm:$0xf]  ;;  %3598 = vmatpush.bf16.msrb.mxu0 %v6315_v26  ;;  %v856_v62 = vld [vmem:[#allocation1 + $0x24] sm:$0xff]  ;;  %v5119_v9 = vor.u32 %v7031_v59, %v5116_v60 }
  0xd3   : > { %v7329_v29 = vld [vmem:[%s7988_s7 + $0xc0c] sm:$0xf0]  ;;  %v6554_v34 = vld [vmem:[%s7988_s7 + $0xe00] sm:$0xf]  ;;  %v6699_v35 = vor.u32 %v7429_v25, %v6698_v24  ;;  %3611 = vmatpush.bf16.msrb.mxu1 %v6443_v30  ;;  %v7063_v63 = vld [vmem:[%s7988_s7 + $0x3c4] sm:$0xf] }
  0xd4   : > { %v7361_v33 = vld [vmem:[%s7988_s7 + $0xd0c] sm:$0xf0]  ;;  %v6682_v37 = vld [vmem:[%s7988_s7 + $0xf00] sm:$0xf]  ;;  %v6299_v42 = vor.u32 %v7329_v29, %v6298_v28  ;;  %3624 = vmatpush.bf16.msrb.mxu2 %v6571_v31  ;;  %v5244_v0 = vld [vmem:[%s7988_s7 + $0x3d0] sm:$0xf0] }
  0xd5   : > { %v7393_v36 = vld [vmem:[%s7988_s7 + $0xe0c] sm:$0xf0]  ;;  %v6427_v46 = vor.u32 %v7361_v33, %v6426_v32  ;;  %3637 = vmatpush.bf16.msrb.mxu3 %v6699_v35  ;;  %v858_v4 = vld [vmem:[#allocation1 + $0x36] sm:$0xff]  ;;  %v857_v5 = vld [vmem:[#allocation1 + $0x2d] sm:$0xff]  ;;  %v5247_v13 = vor.u32 %v7063_v63, %v5244_v0 }
  0xd6   : > { %v7425_v38 = vld [vmem:[%s7988_s7 + $0xf0c] sm:$0xf0]  ;;  %v6555_v47 = vor.u32 %v7393_v36, %v6554_v34  ;;  %3599 = vmatpush.bf16.msrb.mxu0 %v6299_v42  ;;  %v6963_v10 = vld [vmem:[%s7988_s7 + $0xa4] sm:$0xf]  ;;  %v4844_v11 = vld [vmem:[%s7988_s7 + $0xb0] sm:$0xf0] }
  0xd7   : > { %v6683_v50 = vor.u32 %v7425_v38, %v6682_v37  ;;  %3612 = vmatpush.bf16.msrb.mxu1 %v6427_v46  ;;  %v859_v6 = vld [vmem:[#allocation1 + $0x3f] sm:$0xff]  ;;  %v6995_v12 = vld [vmem:[%s7988_s7 + $0x1a4] sm:$0xf]  ;;  %v4847_v19 = vor.u32 %v6963_v10, %v4844_v11 }
  0xd8   : > { %3625 = vmatpush.bf16.msrb.mxu2 %v6555_v47  ;;  %v4972_v14 = vld [vmem:[%s7988_s7 + $0x1b0] sm:$0xf0]  ;;  %v7027_v15 = vld [vmem:[%s7988_s7 + $0x2a4] sm:$0xf] }
  0xd9   : > { %3638 = vmatpush.bf16.msrb.mxu3 %v6683_v50  ;;  %3600 = vmatmul.bf16.vlgmr.msrb.gmra.mxu0 %v856_v62  ;;  %v5100_v16 = vld [vmem:[%s7988_s7 + $0x2b0] sm:$0xf0]  ;;  %v7059_v17 = vld [vmem:[%s7988_s7 + $0x3a4] sm:$0xf]  ;;  %v4975_v20 = vor.u32 %v6995_v12, %v4972_v14 }
  0xda   : > { %3644 = vmatpush.bf16.msra.mxu0 %v4879_v51  ;;  %3613 = vmatmul.bf16.vlgmr.msrb.gmra.mxu1 %v857_v5  ;;  %v5228_v18 = vld [vmem:[%s7988_s7 + $0x3b0] sm:$0xf0]  ;;  %v5103_v24 = vor.u32 %v7027_v15, %v5100_v16  ;;  %v6959_v25 = vld [vmem:[%s7988_s7 + $0x84] sm:$0xf] }
  0xdb   : > { %3657 = vmatpush.bf16.msra.mxu1 %v5007_v52  ;;  %3626 = vmatmul.bf16.vlgmr.msrb.gmra.mxu2 %v858_v4  ;;  %v4828_v26 = vld [vmem:[%s7988_s7 + $0x90] sm:$0xf0]  ;;  %v6991_v28 = vld [vmem:[%s7988_s7 + $0x184] sm:$0xf]  ;;  %v5231_v29 = vor.u32 %v7059_v17, %v5228_v18 }
  0xdc   : > { %3670 = vmatpush.bf16.msra.mxu2 %v5135_v53  ;;  %3639 = vmatmul.bf16.vlgmr.msrb.gmra.mxu3 %v859_v6  ;;  %v4956_v30 = vld [vmem:[%s7988_s7 + $0x190] sm:$0xf0]  ;;  %v7023_v31 = vld [vmem:[%s7988_s7 + $0x284] sm:$0xf]  ;;  %v4831_v35 = vor.u32 %v6959_v25, %v4828_v26 }
  0xdd   : > { %3683 = vmatpush.bf16.msra.mxu3 %v5263_v57  ;;  %v5084_v32 = vld [vmem:[%s7988_s7 + $0x290] sm:$0xf0]  ;;  %v7055_v33 = vld [vmem:[%s7988_s7 + $0x384] sm:$0xf]  ;;  %v4959_v36 = vor.u32 %v6991_v28, %v4956_v30 }
  0xde   : > { %3645 = vmatpush.bf16.msra.mxu0 %v4863_v7  ;;  %v5212_v34 = vld [vmem:[%s7988_s7 + $0x390] sm:$0xf0]  ;;  %v5087_v37 = vor.u32 %v7023_v31, %v5084_v32  ;;  %v6955_v38 = vld [vmem:[%s7988_s7 + $0x64] sm:$0xf] }
  0xdf   : > { %3658 = vmatpush.bf16.msra.mxu1 %v4991_v8  ;;  %v4812_v39 = vld [vmem:[%s7988_s7 + $0x70] sm:$0xf0]  ;;  %v6987_v40 = vld [vmem:[%s7988_s7 + $0x164] sm:$0xf]  ;;  %v5215_v41 = vor.u32 %v7055_v33, %v5212_v34 }
  0xe0   : > { %3671 = vmatpush.bf16.msra.mxu2 %v5119_v9  ;;  %v4940_v42 = vld [vmem:[%s7988_s7 + $0x170] sm:$0xf0]  ;;  %v7019_v43 = vld [vmem:[%s7988_s7 + $0x264] sm:$0xf]  ;;  %v4815_v47 = vor.u32 %v6955_v38, %v4812_v39 }
  0xe1   : > { %3684 = vmatpush.bf16.msra.mxu3 %v5247_v13  ;;  %v5068_v44 = vld [vmem:[%s7988_s7 + $0x270] sm:$0xf0]  ;;  %v7051_v45 = vld [vmem:[%s7988_s7 + $0x364] sm:$0xf]  ;;  %v4943_v48 = vor.u32 %v6987_v40, %v4940_v42 }
  0xe2   : > { %3646 = vmatpush.bf16.msra.mxu0 %v4847_v19  ;;  %v5196_v46 = vld [vmem:[%s7988_s7 + $0x370] sm:$0xf0]  ;;  %v5071_v49 = vor.u32 %v7019_v43, %v5068_v44  ;;  %v6951_v50 = vld [vmem:[%s7988_s7 + $0x44] sm:$0xf] }
  0xe3   : > { %3659 = vmatpush.bf16.msra.mxu1 %v4975_v20  ;;  %v4796_v51 = vld [vmem:[%s7988_s7 + $0x50] sm:$0xf0]  ;;  %v6983_v52 = vld [vmem:[%s7988_s7 + $0x144] sm:$0xf]  ;;  %v5199_v53 = vor.u32 %v7051_v45, %v5196_v46 }
  0xe4   : > { %3672 = vmatpush.bf16.msra.mxu2 %v5103_v24  ;;  %v4924_v54 = vld [vmem:[%s7988_s7 + $0x150] sm:$0xf0]  ;;  %v7015_v55 = vld [vmem:[%s7988_s7 + $0x244] sm:$0xf]  ;;  %v4799_v59 = vor.u32 %v6951_v50, %v4796_v51 }
  0xe5   : > { %3685 = vmatpush.bf16.msra.mxu3 %v5231_v29  ;;  %v5052_v56 = vld [vmem:[%s7988_s7 + $0x250] sm:$0xf0]  ;;  %v7047_v57 = vld [vmem:[%s7988_s7 + $0x344] sm:$0xf]  ;;  %v4927_v60 = vor.u32 %v6983_v52, %v4924_v54 }
  0xe6   : > { %3647 = vmatpush.bf16.msra.mxu0 %v4831_v35  ;;  %v5180_v58 = vld [vmem:[%s7988_s7 + $0x350] sm:$0xf0]  ;;  %v5055_v62 = vor.u32 %v7015_v55, %v5052_v56  ;;  %v6947_v63 = vld [vmem:[%s7988_s7 + $0x24] sm:$0xf] }
  0xe7   : > { %3660 = vmatpush.bf16.msra.mxu1 %v4959_v36  ;;  %v4780_v0 = vld [vmem:[%s7988_s7 + $0x30] sm:$0xf0]  ;;  %v6979_v4 = vld [vmem:[%s7988_s7 + $0x124] sm:$0xf]  ;;  %v5183_v5 = vor.u32 %v7047_v57, %v5180_v58 }
  0xe8   : > { %3673 = vmatpush.bf16.msra.mxu2 %v5087_v37  ;;  %v4908_v6 = vld [vmem:[%s7988_s7 + $0x130] sm:$0xf0]  ;;  %v7011_v7 = vld [vmem:[%s7988_s7 + $0x224] sm:$0xf]  ;;  %v4783_v11 = vor.u32 %v6947_v63, %v4780_v0 }
  0xe9   : > { %3686 = vmatpush.bf16.msra.mxu3 %v5215_v41  ;;  %v5036_v8 = vld [vmem:[%s7988_s7 + $0x230] sm:$0xf0]  ;;  %v7043_v9 = vld [vmem:[%s7988_s7 + $0x324] sm:$0xf]  ;;  %v4911_v14 = vor.u32 %v6979_v4, %v4908_v6 }
  0xea   : > { %3648 = vmatpush.bf16.msra.mxu0 %v4815_v47  ;;  %v5164_v10 = vld [vmem:[%s7988_s7 + $0x330] sm:$0xf0]  ;;  %v6943_v12 = vld [vmem:[%s7988_s7 + $0x4] sm:$0xf]  ;;  %v5039_v15 = vor.u32 %v7011_v7, %v5036_v8 }
  0xeb   : > { %3661 = vmatpush.bf16.msra.mxu1 %v4943_v48  ;;  %v4764_v13 = vld [vmem:[%s7988_s7 + $0x10] sm:$0xf0]  ;;  %v6975_v16 = vld [vmem:[%s7988_s7 + $0x104] sm:$0xf]  ;;  %v5167_v19 = vor.u32 %v7043_v9, %v5164_v10 }
  0xec   : > { %3674 = vmatpush.bf16.msra.mxu2 %v5071_v49  ;;  %v4892_v17 = vld [vmem:[%s7988_s7 + $0x110] sm:$0xf0]  ;;  %v7007_v18 = vld [vmem:[%s7988_s7 + $0x204] sm:$0xf]  ;;  %v4767_v30 = vor.u32 %v6943_v12, %v4764_v13 }
  0xed   : > { %3687 = vmatpush.bf16.msra.mxu3 %v5199_v53  ;;  %v5020_v20 = vld [vmem:[%s7988_s7 + $0x210] sm:$0xf0]  ;;  %v7039_v24 = vld [vmem:[%s7988_s7 + $0x304] sm:$0xf]  ;;  %v4895_v34 = vor.u32 %v6975_v16, %v4892_v17 }
  0xee   : > { %3649 = vmatpush.bf16.msra.mxu0 %v4799_v59  ;;  %v5148_v25 = vld [vmem:[%s7988_s7 + $0x310] sm:$0xf0]  ;;  %v7099_v26 = vld [vmem:[%s7988_s7 + $0x4e4] sm:$0xf]  ;;  %v5023_v35 = vor.u32 %v7007_v18, %v5020_v20 }
  0xef   : > { %3662 = vmatpush.bf16.msra.mxu1 %v4927_v60  ;;  %v5388_v28 = vld [vmem:[%s7988_s7 + $0x4f0] sm:$0xf0]  ;;  %v7131_v29 = vld [vmem:[%s7988_s7 + $0x5e4] sm:$0xf]  ;;  %v5151_v38 = vor.u32 %v7039_v24, %v5148_v25 }
  0xf0   : > { %3675 = vmatpush.bf16.msra.mxu2 %v5055_v62  ;;  %v5516_v31 = vld [vmem:[%s7988_s7 + $0x5f0] sm:$0xf0]  ;;  %v7163_v32 = vld [vmem:[%s7988_s7 + $0x6e4] sm:$0xf]  ;;  %v5391_v39 = vor.u32 %v7099_v26, %v5388_v28 }
  0xf1   : > { %3688 = vmatpush.bf16.msra.mxu3 %v5183_v5  ;;  %v5644_v33 = vld [vmem:[%s7988_s7 + $0x6f0] sm:$0xf0]  ;;  %v7195_v36 = vld [vmem:[%s7988_s7 + $0x7e4] sm:$0xf]  ;;  %v5519_v40 = vor.u32 %v7131_v29, %v5516_v31 }
  0xf2   : > { %3650 = vmatpush.bf16.msra.mxu0 %v4783_v11  ;;  %v5772_v37 = vld [vmem:[%s7988_s7 + $0x7f0] sm:$0xf0]  ;;  %v5647_v41 = vor.u32 %v7163_v32, %v5644_v33  ;;  %v7095_v42 = vld [vmem:[%s7988_s7 + $0x4c4] sm:$0xf] }
  0xf3   : > { %3663 = vmatpush.bf16.msra.mxu1 %v4911_v14  ;;  %v5372_v43 = vld [vmem:[%s7988_s7 + $0x4d0] sm:$0xf0]  ;;  %v7127_v44 = vld [vmem:[%s7988_s7 + $0x5c4] sm:$0xf]  ;;  %v5775_v45 = vor.u32 %v7195_v36, %v5772_v37 }
  0xf4   : > { %3676 = vmatpush.bf16.msra.mxu2 %v5039_v15  ;;  %v5500_v46 = vld [vmem:[%s7988_s7 + $0x5d0] sm:$0xf0]  ;;  %v7159_v47 = vld [vmem:[%s7988_s7 + $0x6c4] sm:$0xf]  ;;  %v5375_v51 = vor.u32 %v7095_v42, %v5372_v43 }
  0xf5   : > { %3689 = vmatpush.bf16.msra.mxu3 %v5167_v19  ;;  %v5628_v48 = vld [vmem:[%s7988_s7 + $0x6d0] sm:$0xf0]  ;;  %v7191_v49 = vld [vmem:[%s7988_s7 + $0x7c4] sm:$0xf]  ;;  %v5503_v52 = vor.u32 %v7127_v44, %v5500_v46 }
  0xf6   : > { %3651 = vmatpush.bf16.msra.mxu0 %v4767_v30  ;;  %v5756_v50 = vld [vmem:[%s7988_s7 + $0x7d0] sm:$0xf0]  ;;  %v5631_v53 = vor.u32 %v7159_v47, %v5628_v48  ;;  %v7091_v54 = vld [vmem:[%s7988_s7 + $0x4a4] sm:$0xf] }
  0xf7   : > { %3664 = vmatpush.bf16.msra.mxu1 %v4895_v34  ;;  %v5356_v55 = vld [vmem:[%s7988_s7 + $0x4b0] sm:$0xf0]  ;;  %v7123_v56 = vld [vmem:[%s7988_s7 + $0x5a4] sm:$0xf]  ;;  %v5759_v57 = vor.u32 %v7191_v49, %v5756_v50 }
  0xf8   : > { %3677 = vmatpush.bf16.msra.mxu2 %v5023_v35  ;;  %v5484_v58 = vld [vmem:[%s7988_s7 + $0x5b0] sm:$0xf0]  ;;  %v7155_v59 = vld [vmem:[%s7988_s7 + $0x6a4] sm:$0xf]  ;;  %v5359_v0 = vor.u32 %v7091_v54, %v5356_v55 }
  0xf9   : > { %3690 = vmatpush.bf16.msra.mxu3 %v5151_v38  ;;  %v5612_v60 = vld [vmem:[%s7988_s7 + $0x6b0] sm:$0xf0]  ;;  %v7187_v62 = vld [vmem:[%s7988_s7 + $0x7a4] sm:$0xf]  ;;  %3652 = vmatmul.bf16.vlgmr.msra.gmra.mxu0 %v8107_v22  ;;  %v5487_v4 = vor.u32 %v7123_v56, %v5484_v58 }
  0xfa   : > { %3696 = vmatpush.bf16.msrb.mxu0 %v5391_v39  ;;  %v5740_v63 = vld [vmem:[%s7988_s7 + $0x7b0] sm:$0xf0]  ;;  %3665 = vmatmul.bf16.vlgmr.msra.gmra.mxu1 %v8114_v27  ;;  %v5615_v5 = vor.u32 %v7155_v59, %v5612_v60  ;;  %v7087_v6 = vld [vmem:[%s7988_s7 + $0x484] sm:$0xf] }
  0xfb   : > { %3709 = vmatpush.bf16.msrb.mxu1 %v5519_v40  ;;  %3678 = vmatmul.bf16.vlgmr.msra.gmra.mxu2 %v8105_v21  ;;  %v5340_v7 = vld [vmem:[%s7988_s7 + $0x490] sm:$0xf0]  ;;  %v7119_v8 = vld [vmem:[%s7988_s7 + $0x584] sm:$0xf]  ;;  %v5743_v9 = vor.u32 %v7187_v62, %v5740_v63 }
  0xfc   : > { %3722 = vmatpush.bf16.msrb.mxu2 %v5647_v41  ;;  %3691 = vmatmul.bf16.vlgmr.msra.gmra.mxu3 %v8109_v23  ;;  %v5468_v10 = vld [vmem:[%s7988_s7 + $0x590] sm:$0xf0]  ;;  %v7151_v11 = vld [vmem:[%s7988_s7 + $0x684] sm:$0xf]  ;;  %v5343_v15 = vor.u32 %v7087_v6, %v5340_v7 }
  0xfd   : > { %3735 = vmatpush.bf16.msrb.mxu3 %v5775_v45  ;;  %v5596_v12 = vld [vmem:[%s7988_s7 + $0x690] sm:$0xf0]  ;;  %v7183_v13 = vld [vmem:[%s7988_s7 + $0x784] sm:$0xf]  ;;  %v5471_v16 = vor.u32 %v7119_v8, %v5468_v10 }
  0xfe   : > { %3697 = vmatpush.bf16.msrb.mxu0 %v5375_v51  ;;  %v5724_v14 = vld [vmem:[%s7988_s7 + $0x790] sm:$0xf0]  ;;  %v5599_v17 = vor.u32 %v7151_v11, %v5596_v12  ;;  %v7083_v18 = vld [vmem:[%s7988_s7 + $0x464] sm:$0xf] }
  0xff   : > { %3710 = vmatpush.bf16.msrb.mxu1 %v5503_v52  ;;  %v5324_v19 = vld [vmem:[%s7988_s7 + $0x470] sm:$0xf0]  ;;  %v7115_v20 = vld [vmem:[%s7988_s7 + $0x564] sm:$0xf]  ;;  %v5727_v24 = vor.u32 %v7183_v13, %v5724_v14 }
 0x100   : > { %3723 = vmatpush.bf16.msrb.mxu2 %v5631_v53  ;;  %v5452_v25 = vld [vmem:[%s7988_s7 + $0x570] sm:$0xf0]  ;;  %v7147_v26 = vld [vmem:[%s7988_s7 + $0x664] sm:$0xf]  ;;  %v5327_v31 = vor.u32 %v7083_v18, %v5324_v19 }
 0x101   : > { %3736 = vmatpush.bf16.msrb.mxu3 %v5759_v57  ;;  %v5580_v28 = vld [vmem:[%s7988_s7 + $0x670] sm:$0xf0]  ;;  %v7179_v29 = vld [vmem:[%s7988_s7 + $0x764] sm:$0xf]  ;;  %v5455_v32 = vor.u32 %v7115_v20, %v5452_v25 }
 0x102   : > { %3698 = vmatpush.bf16.msrb.mxu0 %v5359_v0  ;;  %v5708_v30 = vld [vmem:[%s7988_s7 + $0x770] sm:$0xf0]  ;;  %v5583_v33 = vor.u32 %v7147_v26, %v5580_v28  ;;  %v7079_v34 = vld [vmem:[%s7988_s7 + $0x444] sm:$0xf]  ;;  %v3445_v44 = vpop.f32.mrf.mxu0 }
 0x103   : > { %3711 = vmatpush.bf16.msrb.mxu1 %v5487_v4  ;;  %v5308_v35 = vld [vmem:[%s7988_s7 + $0x450] sm:$0xf0]  ;;  %v7111_v36 = vld [vmem:[%s7988_s7 + $0x544] sm:$0xf]  ;;  %v5711_v37 = vor.u32 %v7179_v29, %v5708_v30  ;;  %v3458_v50 = vpop.f32.mrf.mxu1 }
 0x104   : > { %3724 = vmatpush.bf16.msrb.mxu2 %v5615_v5  ;;  %v5436_v38 = vld [vmem:[%s7988_s7 + $0x550] sm:$0xf0]  ;;  %v7143_v39 = vld [vmem:[%s7988_s7 + $0x644] sm:$0xf]  ;;  %v5311_v43 = vor.u32 %v7079_v34, %v5308_v35  ;;  %v3459_v55 = vadd.f32 %v3458_v50, %v3445_v44 }
 0x105   : > { %3737 = vmatpush.bf16.msrb.mxu3 %v5743_v9  ;;  %v5564_v40 = vld [vmem:[%s7988_s7 + $0x650] sm:$0xf0]  ;;  %v7175_v41 = vld [vmem:[%s7988_s7 + $0x744] sm:$0xf]  ;;  %v5439_v45 = vor.u32 %v7111_v36, %v5436_v38 }
 0x106   : > { %3699 = vmatpush.bf16.msrb.mxu0 %v5343_v15  ;;  %v5692_v42 = vld [vmem:[%s7988_s7 + $0x750] sm:$0xf0]  ;;  %v5567_v46 = vor.u32 %v7143_v39, %v5564_v40  ;;  %v7075_v47 = vld [vmem:[%s7988_s7 + $0x424] sm:$0xf] }
 0x107   : > { %3712 = vmatpush.bf16.msrb.mxu1 %v5471_v16  ;;  %v5292_v48 = vld [vmem:[%s7988_s7 + $0x430] sm:$0xf0]  ;;  %v7107_v49 = vld [vmem:[%s7988_s7 + $0x524] sm:$0xf]  ;;  %v5695_v51 = vor.u32 %v7175_v41, %v5692_v42 }
 0x108   : > { %3725 = vmatpush.bf16.msrb.mxu2 %v5599_v17  ;;  %v5420_v52 = vld [vmem:[%s7988_s7 + $0x530] sm:$0xf0]  ;;  %v7139_v53 = vld [vmem:[%s7988_s7 + $0x624] sm:$0xf]  ;;  %v5295_v58 = vor.u32 %v7075_v47, %v5292_v48  ;;  %v3471_v6 = vpop.f32.mrf.mxu2 }
 0x109   : > { %3738 = vmatpush.bf16.msrb.mxu3 %v5727_v24  ;;  %v5548_v54 = vld [vmem:[%s7988_s7 + $0x630] sm:$0xf0]  ;;  %v7171_v56 = vld [vmem:[%s7988_s7 + $0x724] sm:$0xf]  ;;  %v5423_v62 = vor.u32 %v7107_v49, %v5420_v52  ;;  %v3472_v11 = vadd.f32 %v3471_v6, %v3459_v55  ;;  %v3484_v12 = vpop.f32.mrf.mxu3 }
 0x10a   : > { %3700 = vmatpush.bf16.msrb.mxu0 %v5327_v31  ;;  %v5676_v57 = vld [vmem:[%s7988_s7 + $0x730] sm:$0xf0]  ;;  %v7071_v59 = vld [vmem:[%s7988_s7 + $0x404] sm:$0xf]  ;;  %v5551_v63 = vor.u32 %v7139_v53, %v5548_v54  ;;  %v3447_v24 = vpop.f32.mrf.mxu0 }
 0x10b   : > { %3713 = vmatpush.bf16.msrb.mxu1 %v5455_v32  ;;  %v5276_v60 = vld [vmem:[%s7988_s7 + $0x410] sm:$0xf0]  ;;  %v7103_v0 = vld [vmem:[%s7988_s7 + $0x504] sm:$0xf]  ;;  %v5679_v7 = vor.u32 %v7171_v56, %v5676_v57  ;;  %v8424_v20 = vadd.f32 %v3484_v12, %v3472_v11  ;;  %v3460_v30 = vpop.f32.mrf.mxu1 }
 0x10c   : > { %3726 = vmatpush.bf16.msrb.mxu2 %v5583_v33  ;;  %v5404_v4 = vld [vmem:[%s7988_s7 + $0x510] sm:$0xf0]  ;;  %v7135_v5 = vld [vmem:[%s7988_s7 + $0x604] sm:$0xf]  ;;  %v5279_v16 = vor.u32 %v7071_v59, %v5276_v60 }
 0x10d   : > { %3739 = vmatpush.bf16.msrb.mxu3 %v5711_v37  ;;  %v5532_v8 = vld [vmem:[%s7988_s7 + $0x610] sm:$0xf0]  ;;  %v7167_v9 = vld [vmem:[%s7988_s7 + $0x704] sm:$0xf]  ;;  %v5407_v25 = vor.u32 %v7103_v0, %v5404_v4 }
 0x10e   : > { %3701 = vmatpush.bf16.msrb.mxu0 %v5311_v43  ;;  %v5660_v10 = vld [vmem:[%s7988_s7 + $0x710] sm:$0xf0]  ;;  %v7227_v13 = vld [vmem:[%s7988_s7 + $0x8e4] sm:$0xf]  ;;  %v5535_v26 = vor.u32 %v7135_v5, %v5532_v8 }
 0x10f   : > { %3714 = vmatpush.bf16.msrb.mxu1 %v5439_v45  ;;  %v5900_v14 = vld [vmem:[%s7988_s7 + $0x8f0] sm:$0xf0]  ;;  %v7259_v15 = vld [vmem:[%s7988_s7 + $0x9e4] sm:$0xf]  ;;  %v5663_v31 = vor.u32 %v7167_v9, %v5660_v10 }
 0x110   : > { %3727 = vmatpush.bf16.msrb.mxu2 %v5567_v46  ;;  %v6028_v17 = vld [vmem:[%s7988_s7 + $0x9f0] sm:$0xf0]  ;;  %v7291_v18 = vld [vmem:[%s7988_s7 + $0xae4] sm:$0xf]  ;;  %v5903_v32 = vor.u32 %v7227_v13, %v5900_v14  ;;  %v3473_v44 = vpop.f32.mrf.mxu2 }
 0x111   : > { %3740 = vmatpush.bf16.msrb.mxu3 %v5695_v51  ;;  %v6156_v19 = vld [vmem:[%s7988_s7 + $0xaf0] sm:$0xf0]  ;;  %v7323_v28 = vld [vmem:[%s7988_s7 + $0xbe4] sm:$0xf]  ;;  %v6031_v33 = vor.u32 %v7259_v15, %v6028_v17  ;;  %v3486_v46 = vpop.f32.mrf.mxu3 }
 0x112   : > { %3702 = vmatpush.bf16.msrb.mxu0 %v5295_v58  ;;  %v6284_v29 = vld [vmem:[%s7988_s7 + $0xbf0] sm:$0xf0]  ;;  %v6159_v34 = vor.u32 %v7291_v18, %v6156_v19  ;;  %v7223_v35 = vld [vmem:[%s7988_s7 + $0x8c4] sm:$0xf] }
 0x113   : > { %3715 = vmatpush.bf16.msrb.mxu1 %v5423_v62  ;;  %v5884_v36 = vld [vmem:[%s7988_s7 + $0x8d0] sm:$0xf0]  ;;  %v7255_v37 = vld [vmem:[%s7988_s7 + $0x9c4] sm:$0xf]  ;;  %v6287_v38 = vor.u32 %v7323_v28, %v6284_v29  ;;  %v3497_v11 = vpop.f32.mrf.mxu0 }
 0x114   : > { %3728 = vmatpush.bf16.msrb.mxu2 %v5551_v63  ;;  %v6012_v39 = vld [vmem:[%s7988_s7 + $0x9d0] sm:$0xf0]  ;;  %v7287_v40 = vld [vmem:[%s7988_s7 + $0xac4] sm:$0xf]  ;;  %v5887_v45 = vor.u32 %v7223_v35, %v5884_v36  ;;  %v3498_v17 = vadd.f32 %v3497_v11, %v8424_v20  ;;  %v3510_v18 = vpop.f32.mrf.mxu1 }
 0x115   : > { %3741 = vmatpush.bf16.msrb.mxu3 %v5679_v7  ;;  %v6140_v41 = vld [vmem:[%s7988_s7 + $0xad0] sm:$0xf0]  ;;  %v7319_v42 = vld [vmem:[%s7988_s7 + $0xbc4] sm:$0xf]  ;;  %v6015_v47 = vor.u32 %v7255_v37, %v6012_v39 }
 0x116   : > { %3703 = vmatpush.bf16.msrb.mxu0 %v5279_v16  ;;  %v6268_v43 = vld [vmem:[%s7988_s7 + $0xbd0] sm:$0xf0]  ;;  %v6143_v48 = vor.u32 %v7287_v40, %v6140_v41  ;;  %v7219_v49 = vld [vmem:[%s7988_s7 + $0x8a4] sm:$0xf]  ;;  %v3511_v30 = vadd.f32 %v3510_v18, %v3498_v17 }
 0x117   : > { %3716 = vmatpush.bf16.msrb.mxu1 %v5407_v25  ;;  %v5868_v50 = vld [vmem:[%s7988_s7 + $0x8b0] sm:$0xf0]  ;;  %v7251_v51 = vld [vmem:[%s7988_s7 + $0x9a4] sm:$0xf]  ;;  %v6271_v52 = vor.u32 %v7319_v42, %v6268_v43 }
 0x118   : > { %3729 = vmatpush.bf16.msrb.mxu2 %v5535_v26  ;;  %v5996_v53 = vld [vmem:[%s7988_s7 + $0x9b0] sm:$0xf0]  ;;  %v7283_v54 = vld [vmem:[%s7988_s7 + $0xaa4] sm:$0xf]  ;;  %v5871_v58 = vor.u32 %v7219_v49, %v5868_v50 }
 0x119   : > { %3742 = vmatpush.bf16.msrb.mxu3 %v5663_v31  ;;  %v6124_v55 = vld [vmem:[%s7988_s7 + $0xab0] sm:$0xf0]  ;;  %3704 = vmatmul.bf16.vlgmr.msrb.gmra.mxu0 %v8146_v1  ;;  %v7315_v56 = vld [vmem:[%s7988_s7 + $0xba4] sm:$0xf]  ;;  %v5999_v59 = vor.u32 %v7251_v51, %v5996_v53 }
 0x11a   : > { %3748 = vmatpush.bf16.msra.mxu0 %v5903_v32  ;;  %v6252_v57 = vld [vmem:[%s7988_s7 + $0xbb0] sm:$0xf0]  ;;  %3717 = vmatmul.bf16.vlgmr.msrb.gmra.mxu1 %v8150_v3  ;;  %v6127_v60 = vor.u32 %v7283_v54, %v6124_v55  ;;  %v7215_v62 = vld [vmem:[%s7988_s7 + $0x884] sm:$0xf] }
 0x11b   : > { %3761 = vmatpush.bf16.msra.mxu1 %v6031_v33  ;;  %3730 = vmatmul.bf16.vlgmr.msrb.gmra.mxu2 %v8143_v61  ;;  %v5852_v63 = vld [vmem:[%s7988_s7 + $0x890] sm:$0xf0]  ;;  %v7247_v0 = vld [vmem:[%s7988_s7 + $0x984] sm:$0xf]  ;;  %v6255_v4 = vor.u32 %v7315_v56, %v6252_v57  ;;  %v3523_v36 = vpop.f32.mrf.mxu2 }
 0x11c   : > { %3774 = vmatpush.bf16.msra.mxu2 %v6159_v34  ;;  %3743 = vmatmul.bf16.vlgmr.msrb.gmra.mxu3 %v8148_v2  ;;  %v5980_v5 = vld [vmem:[%s7988_s7 + $0x990] sm:$0xf0]  ;;  %v7279_v6 = vld [vmem:[%s7988_s7 + $0xa84] sm:$0xf]  ;;  %v5855_v10 = vor.u32 %v7215_v62, %v5852_v63  ;;  %v3524_v41 = vadd.f32 %v3523_v36, %v3511_v30  ;;  %v3512_v53 = vpop.f32.mrf.mxu1 }
 0x11d   : > { %3787 = vmatpush.bf16.msra.mxu3 %v6287_v38  ;;  %v6108_v7 = vld [vmem:[%s7988_s7 + $0xa90] sm:$0xf0]  ;;  %v7311_v8 = vld [vmem:[%s7988_s7 + $0xb84] sm:$0xf]  ;;  %v5983_v12 = vor.u32 %v7247_v0, %v5980_v5  ;;  %v3536_v42 = vpop.f32.mrf.mxu3 }
 0x11e   : > { %3749 = vmatpush.bf16.msra.mxu0 %v5887_v45  ;;  %v6236_v9 = vld [vmem:[%s7988_s7 + $0xb90] sm:$0xf0]  ;;  %v6111_v13 = vor.u32 %v7279_v6, %v6108_v7  ;;  %v7211_v14 = vld [vmem:[%s7988_s7 + $0x864] sm:$0xf]  ;;  %v8473_v46 = vadd.f32 %v3536_v42, %v3524_v41 }
 0x11f   : > { %3762 = vmatpush.bf16.msra.mxu1 %v6015_v47  ;;  %v5836_v15 = vld [vmem:[%s7988_s7 + $0x870] sm:$0xf0]  ;;  %v7243_v16 = vld [vmem:[%s7988_s7 + $0x964] sm:$0xf]  ;;  %v6239_v19 = vor.u32 %v7311_v8, %v6236_v9  ;;  %v3499_v47 = vpop.f32.mrf.mxu0 }
 0x120   : > { %3775 = vmatpush.bf16.msra.mxu2 %v6143_v48  ;;  %v5964_v24 = vld [vmem:[%s7988_s7 + $0x970] sm:$0xf0]  ;;  %v7275_v25 = vld [vmem:[%s7988_s7 + $0xa64] sm:$0xf]  ;;  %v5839_v31 = vor.u32 %v7211_v14, %v5836_v15 }
 0x121   : > { %3788 = vmatpush.bf16.msra.mxu3 %v6271_v52  ;;  %v6092_v26 = vld [vmem:[%s7988_s7 + $0xa70] sm:$0xf0]  ;;  %v7307_v28 = vld [vmem:[%s7988_s7 + $0xb64] sm:$0xf]  ;;  %v5967_v20 = vor.u32 %v7243_v16, %v5964_v24 }
 0x122   : > { %3750 = vmatpush.bf16.msra.mxu0 %v5871_v58  ;;  %v6220_v29 = vld [vmem:[%s7988_s7 + $0xb70] sm:$0xf0]  ;;  %v6095_v32 = vor.u32 %v7275_v25, %v6092_v26  ;;  %v7207_v33 = vld [vmem:[%s7988_s7 + $0x844] sm:$0xf] }
 0x123   : > { %3763 = vmatpush.bf16.msra.mxu1 %v5999_v59  ;;  %v5820_v34 = vld [vmem:[%s7988_s7 + $0x850] sm:$0xf0]  ;;  %v7239_v35 = vld [vmem:[%s7988_s7 + $0x944] sm:$0xf]  ;;  %v6223_v37 = vor.u32 %v7307_v28, %v6220_v29  ;;  %v3525_v8 = vpop.f32.mrf.mxu2 }
 0x124   : > { %3776 = vmatpush.bf16.msra.mxu2 %v6127_v60  ;;  %v5948_v38 = vld [vmem:[%s7988_s7 + $0x950] sm:$0xf0]  ;;  %v7271_v39 = vld [vmem:[%s7988_s7 + $0xa44] sm:$0xf]  ;;  %v5823_v45 = vor.u32 %v7207_v33, %v5820_v34 }
 0x125   : > { %3789 = vmatpush.bf16.msra.mxu3 %v6255_v4  ;;  %v6076_v40 = vld [vmem:[%s7988_s7 + $0xa50] sm:$0xf0]  ;;  %v7303_v43 = vld [vmem:[%s7988_s7 + $0xb44] sm:$0xf]  ;;  %v5951_v48 = vor.u32 %v7239_v35, %v5948_v38 }
 0x126   : > { %3751 = vmatpush.bf16.msra.mxu0 %v5855_v10  ;;  %v6204_v44 = vld [vmem:[%s7988_s7 + $0xb50] sm:$0xf0]  ;;  %v6079_v49 = vor.u32 %v7271_v39, %v6076_v40  ;;  %v7203_v50 = vld [vmem:[%s7988_s7 + $0x824] sm:$0xf] }
 0x127   : > { %3764 = vmatpush.bf16.msra.mxu1 %v5983_v12  ;;  %v5804_v51 = vld [vmem:[%s7988_s7 + $0x830] sm:$0xf0]  ;;  %v7235_v52 = vld [vmem:[%s7988_s7 + $0x924] sm:$0xf]  ;;  %v6207_v54 = vor.u32 %v7303_v43, %v6204_v44 }
 0x128   : > { %3777 = vmatpush.bf16.msra.mxu2 %v6111_v13  ;;  %v5932_v55 = vld [vmem:[%s7988_s7 + $0x930] sm:$0xf0]  ;;  %v7267_v56 = vld [vmem:[%s7988_s7 + $0xa24] sm:$0xf]  ;;  %v5807_v60 = vor.u32 %v7203_v50, %v5804_v51  ;;  %v3538_v13 = vpop.f32.mrf.mxu3 }
 0x129   : > { %3790 = vmatpush.bf16.msra.mxu3 %v6239_v19  ;;  %v6060_v57 = vld [vmem:[%s7988_s7 + $0xa30] sm:$0xf0]  ;;  %v7299_v58 = vld [vmem:[%s7988_s7 + $0xb24] sm:$0xf]  ;;  %v5935_v0 = vor.u32 %v7235_v52, %v5932_v55  ;;  %v7576_v55 = vld [vmem:[#allocation1 + $0x9] sm:$0xff] }
 0x12a   : > { %3752 = vmatpush.bf16.msra.mxu0 %v5839_v31  ;;  %v6188_v59 = vld [vmem:[%s7988_s7 + $0xb30] sm:$0xf0]  ;;  %v7199_v62 = vld [vmem:[%s7988_s7 + $0x804] sm:$0xf]  ;;  %v6063_v4 = vor.u32 %v7267_v56, %v6060_v57 }
 0x12b   : > { %3765 = vmatpush.bf16.msra.mxu1 %v5967_v20  ;;  %v5788_v63 = vld [vmem:[%s7988_s7 + $0x810] sm:$0xf0]  ;;  %v7231_v5 = vld [vmem:[%s7988_s7 + $0x904] sm:$0xf]  ;;  %v6191_v9 = vor.u32 %v7299_v58, %v6188_v59  ;;  %v7577_v58 = vld [vmem:[#allocation1 + $0x1b] sm:$0xff] }
 0x12c   : > { %3778 = vmatpush.bf16.msra.mxu2 %v6095_v32  ;;  %v5916_v6 = vld [vmem:[%s7988_s7 + $0x910] sm:$0xf0]  ;;  %v7263_v7 = vld [vmem:[%s7988_s7 + $0xa04] sm:$0xf]  ;;  %v5791_v17 = vor.u32 %v7199_v62, %v5788_v63 }
 0x12d   : > { %3791 = vmatpush.bf16.msra.mxu3 %v6223_v37  ;;  %v6044_v10 = vld [vmem:[%s7988_s7 + $0xa10] sm:$0xf0]  ;;  %v7295_v11 = vld [vmem:[%s7988_s7 + $0xb04] sm:$0xf]  ;;  %v5919_v25 = vor.u32 %v7231_v5, %v5916_v6 }
 0x12e   : > { %3753 = vmatpush.bf16.msra.mxu0 %v5823_v45  ;;  %v6172_v12 = vld [vmem:[%s7988_s7 + $0xb10] sm:$0xf0]  ;;  %v7355_v14 = vld [vmem:[%s7988_s7 + $0xce4] sm:$0xf]  ;;  %v6047_v26 = vor.u32 %v7263_v7, %v6044_v10 }
 0x12f   : > { %3766 = vmatpush.bf16.msra.mxu1 %v5951_v48  ;;  %v6412_v15 = vld [vmem:[%s7988_s7 + $0xcf0] sm:$0xf0]  ;;  %v7387_v16 = vld [vmem:[%s7988_s7 + $0xde4] sm:$0xf]  ;;  %v6175_v30 = vor.u32 %v7295_v11, %v6172_v12 }
 0x130   : > { %3779 = vmatpush.bf16.msra.mxu2 %v6079_v49  ;;  %v6540_v18 = vld [vmem:[%s7988_s7 + $0xdf0] sm:$0xf0]  ;;  %v7419_v19 = vld [vmem:[%s7988_s7 + $0xee4] sm:$0xf]  ;;  %v6415_v31 = vor.u32 %v7355_v14, %v6412_v15 }
 0x131   : > { %3792 = vmatpush.bf16.msra.mxu3 %v6207_v54  ;;  %v6668_v24 = vld [vmem:[%s7988_s7 + $0xef0] sm:$0xf0]  ;;  %v7451_v28 = vld [vmem:[%s7988_s7 + $0xfe4] sm:$0xf]  ;;  %v6543_v20 = vor.u32 %v7387_v16, %v6540_v18 }
 0x132   : > { %3754 = vmatpush.bf16.msra.mxu0 %v5807_v60  ;;  %v6796_v29 = vld [vmem:[%s7988_s7 + $0xff0] sm:$0xf0]  ;;  %v6671_v32 = vor.u32 %v7419_v19, %v6668_v24  ;;  %v7351_v33 = vld [vmem:[%s7988_s7 + $0xcc4] sm:$0xf] }
 0x133   : > { %3767 = vmatpush.bf16.msra.mxu1 %v5935_v0  ;;  %v6396_v34 = vld [vmem:[%s7988_s7 + $0xcd0] sm:$0xf0]  ;;  %v7383_v35 = vld [vmem:[%s7988_s7 + $0xdc4] sm:$0xf]  ;;  %v6799_v36 = vor.u32 %v7451_v28, %v6796_v29 }
 0x134   : > { %3780 = vmatpush.bf16.msra.mxu2 %v6063_v4  ;;  %v6524_v37 = vld [vmem:[%s7988_s7 + $0xdd0] sm:$0xf0]  ;;  %v7415_v38 = vld [vmem:[%s7988_s7 + $0xec4] sm:$0xf]  ;;  %v6399_v42 = vor.u32 %v7351_v33, %v6396_v34 }
 0x135   : > { %3793 = vmatpush.bf16.msra.mxu3 %v6191_v9  ;;  %v6652_v39 = vld [vmem:[%s7988_s7 + $0xed0] sm:$0xf0]  ;;  %v7447_v40 = vld [vmem:[%s7988_s7 + $0xfc4] sm:$0xf]  ;;  %v6527_v43 = vor.u32 %v7383_v35, %v6524_v37 }
 0x136   : > { %3755 = vmatpush.bf16.msra.mxu0 %v5791_v17  ;;  %v6780_v41 = vld [vmem:[%s7988_s7 + $0xfd0] sm:$0xf0]  ;;  %v6655_v44 = vor.u32 %v7415_v38, %v6652_v39  ;;  %v7347_v45 = vld [vmem:[%s7988_s7 + $0xca4] sm:$0xf] }
 0x137   : > { %3768 = vmatpush.bf16.msra.mxu1 %v5919_v25  ;;  %v6380_v47 = vld [vmem:[%s7988_s7 + $0xcb0] sm:$0xf0]  ;;  %v7379_v48 = vld [vmem:[%s7988_s7 + $0xda4] sm:$0xf]  ;;  %v6783_v50 = vor.u32 %v7447_v40, %v6780_v41 }
 0x138   : > { %3781 = vmatpush.bf16.msra.mxu2 %v6047_v26  ;;  %v7574_v49 = vld [vmem:[#allocation1] sm:$0xff]  ;;  %v7411_v52 = vld [vmem:[%s7988_s7 + $0xea4] sm:$0xf]  ;;  %v6383_v59 = vor.u32 %v7347_v45, %v6380_v47 }
 0x139   : > { %3794 = vmatpush.bf16.msra.mxu3 %v6175_v30  ;;  %3756 = vmatmul.bf16.vlgmr.msra.gmra.mxu0 %v7574_v49  ;;  %v6508_v51 = vld [vmem:[%s7988_s7 + $0xdb0] sm:$0xf0]  ;;  %v7575_v54 = vld [vmem:[#allocation1 + $0x12] sm:$0xff] }
 0x13a   : > { %3800 = vmatpush.bf16.msrb.mxu0 %v6415_v31  ;;  %v6636_v53 = vld [vmem:[%s7988_s7 + $0xeb0] sm:$0xf0]  ;;  %3769 = vmatmul.bf16.vlgmr.msra.gmra.mxu1 %v7576_v55  ;;  %v7443_v56 = vld [vmem:[%s7988_s7 + $0xfa4] sm:$0xf]  ;;  %v6511_v60 = vor.u32 %v7379_v48, %v6508_v51  ;;  %v3549_v9 = vpop.f32.mrf.mxu0 }
 0x13b   : > { %3813 = vmatpush.bf16.msrb.mxu1 %v6543_v20  ;;  %3782 = vmatmul.bf16.vlgmr.msra.gmra.mxu2 %v7575_v54  ;;  %v6764_v57 = vld [vmem:[%s7988_s7 + $0xfb0] sm:$0xf0]  ;;  %v6639_v62 = vor.u32 %v7411_v52, %v6636_v53  ;;  %v7343_v63 = vld [vmem:[%s7988_s7 + $0xc84] sm:$0xf]  ;;  %v3550_v12 = vadd.f32 %v3549_v9, %v8473_v46  ;;  %v3562_v14 = vpop.f32.mrf.mxu1 }
 0x13c   : > { %3826 = vmatpush.bf16.msrb.mxu2 %v6671_v32  ;;  %3795 = vmatmul.bf16.vlgmr.msra.gmra.mxu3 %v7577_v58  ;;  %v6364_v0 = vld [vmem:[%s7988_s7 + $0xc90] sm:$0xf0]  ;;  %v7375_v4 = vld [vmem:[%s7988_s7 + $0xd84] sm:$0xf]  ;;  %v6767_v5 = vor.u32 %v7443_v56, %v6764_v57 }
 0x13d   : > { %3839 = vmatpush.bf16.msrb.mxu3 %v6799_v36  ;;  %v6492_v6 = vld [vmem:[%s7988_s7 + $0xd90] sm:$0xf0]  ;;  %v7407_v7 = vld [vmem:[%s7988_s7 + $0xe84] sm:$0xf]  ;;  %v6367_v13 = vor.u32 %v7343_v63, %v6364_v0  ;;  %v3563_v25 = vadd.f32 %v3562_v14, %v3550_v12  ;;  %v4882_v14 = vld [vmem:[%s7988_s7 + $0xe8] sm:$0xf] }
 0x13e   : > { %3801 = vmatpush.bf16.msrb.mxu0 %v6399_v42  ;;  %v6620_v8 = vld [vmem:[%s7988_s7 + $0xe90] sm:$0xf0]  ;;  %v7439_v10 = vld [vmem:[%s7988_s7 + $0xf84] sm:$0xf]  ;;  %v6495_v15 = vor.u32 %v7375_v4, %v6492_v6 }
 0x13f   : > { %3814 = vmatpush.bf16.msrb.mxu1 %v6527_v43  ;;  %v6748_v11 = vld [vmem:[%s7988_s7 + $0xf90] sm:$0xf0]  ;;  %v6623_v16 = vor.u32 %v7407_v7, %v6620_v8  ;;  %v7339_v17 = vld [vmem:[%s7988_s7 + $0xc64] sm:$0xf] }
 0x140   : > { %3827 = vmatpush.bf16.msrb.mxu2 %v6655_v44  ;;  %v6348_v18 = vld [vmem:[%s7988_s7 + $0xc70] sm:$0xf0]  ;;  %v7371_v19 = vld [vmem:[%s7988_s7 + $0xd64] sm:$0xf]  ;;  %v6751_v24 = vor.u32 %v7439_v10, %v6748_v11  ;;  %v3575_v37 = vpop.f32.mrf.mxu2 }
 0x141   : > { %3840 = vmatpush.bf16.msrb.mxu3 %v6783_v50  ;;  %v6476_v26 = vld [vmem:[%s7988_s7 + $0xd70] sm:$0xf0]  ;;  %v7403_v28 = vld [vmem:[%s7988_s7 + $0xe64] sm:$0xf]  ;;  %v6351_v31 = vor.u32 %v7339_v17, %v6348_v18  ;;  %v3576_v41 = vadd.f32 %v3575_v37, %v3563_v25  ;;  %v7038_v25 = vld [vmem:[%s7988_s7 + $0x2f4] sm:$0xf0] }
 0x142   : > { %3802 = vmatpush.bf16.msrb.mxu0 %v6383_v59  ;;  %v6604_v46 = vld [vmem:[%s7988_s7 + $0xe70] sm:$0xf0]  ;;  %v7435_v29 = vld [vmem:[%s7988_s7 + $0xf64] sm:$0xf]  ;;  %v6479_v20 = vor.u32 %v7371_v19, %v6476_v26  ;;  %v3588_v42 = vpop.f32.mrf.mxu3  ;;  %v3551_v45 = vpop.f32.mrf.mxu0  ;;  %v7006_v19 = vld [vmem:[%s7988_s7 + $0x1f4] sm:$0xf0] }
 0x143   : > { %3815 = vmatpush.bf16.msrb.mxu1 %v6511_v60  ;;  %v6732_v30 = vld [vmem:[%s7988_s7 + $0xf70] sm:$0xf0]  ;;  %v6607_v32 = vor.u32 %v7403_v28, %v6604_v46  ;;  %v7335_v33 = vld [vmem:[%s7988_s7 + $0xc44] sm:$0xf]  ;;  %v3564_v48 = vpop.f32.mrf.mxu1  ;;  %v8540_v49 = vadd.f32 %v3588_v42, %v3576_v41  ;;  %v5266_v46 = vld [vmem:[%s7988_s7 + $0x3e8] sm:$0xf] }
 0x144   : > { %3828 = vmatpush.bf16.msrb.mxu2 %v6639_v62  ;;  %v6332_v34 = vld [vmem:[%s7988_s7 + $0xc50] sm:$0xf0]  ;;  %v7367_v35 = vld [vmem:[%s7988_s7 + $0xd44] sm:$0xf]  ;;  %v6735_v36 = vor.u32 %v7435_v29, %v6732_v30  ;;  %v7070_v29 = vld [vmem:[%s7988_s7 + $0x3f4] sm:$0xf0] }
 0x145   : > { %3841 = vmatpush.bf16.msrb.mxu3 %v6767_v5  ;;  %v6460_v38 = vld [vmem:[%s7988_s7 + $0xd50] sm:$0xf0]  ;;  %v7399_v39 = vld [vmem:[%s7988_s7 + $0xe44] sm:$0xf]  ;;  %v6335_v47 = vor.u32 %v7335_v33, %v6332_v34  ;;  %v4866_v33 = vld [vmem:[%s7988_s7 + $0xc8] sm:$0xf] }
 0x146   : > { %3803 = vmatpush.bf16.msrb.mxu0 %v6367_v13  ;;  %v6588_v40 = vld [vmem:[%s7988_s7 + $0xe50] sm:$0xf0]  ;;  %v7431_v43 = vld [vmem:[%s7988_s7 + $0xf44] sm:$0xf]  ;;  %v6463_v50 = vor.u32 %v7367_v35, %v6460_v38  ;;  %v6970_v34 = vld [vmem:[%s7988_s7 + $0xd4] sm:$0xf0] }
 0x147   : > { %3816 = vmatpush.bf16.msrb.mxu1 %v6495_v15  ;;  %v6716_v44 = vld [vmem:[%s7988_s7 + $0xf50] sm:$0xf0]  ;;  %v6591_v51 = vor.u32 %v7399_v39, %v6588_v40  ;;  %v7331_v52 = vld [vmem:[%s7988_s7 + $0xc24] sm:$0xf]  ;;  %v6974_v15 = vld [vmem:[%s7988_s7 + $0xf4] sm:$0xf0]  ;;  %v4867_v42 = vor.u32 %v6970_v34, %v4866_v33 }
 0x148   : > { %3829 = vmatpush.bf16.msrb.mxu2 %v6623_v16  ;;  %v6316_v53 = vld [vmem:[%s7988_s7 + $0xc30] sm:$0xf0]  ;;  %v7363_v54 = vld [vmem:[%s7988_s7 + $0xd24] sm:$0xf]  ;;  %v6719_v55 = vor.u32 %v7431_v43, %v6716_v44  ;;  %v3577_v13 = vpop.f32.mrf.mxu2  ;;  %v5010_v16 = vld [vmem:[%s7988_s7 + $0x1e8] sm:$0xf] }
 0x149   : > { %3842 = vmatpush.bf16.msrb.mxu3 %v6751_v24  ;;  %v6444_v56 = vld [vmem:[%s7988_s7 + $0xd30] sm:$0xf0]  ;;  %v7395_v57 = vld [vmem:[%s7988_s7 + $0xe24] sm:$0xf]  ;;  %v6319_v62 = vor.u32 %v7331_v52, %v6316_v53  ;;  %v5138_v24 = vld [vmem:[%s7988_s7 + $0x2e8] sm:$0xf] }
 0x14a   : > { %3804 = vmatpush.bf16.msrb.mxu0 %v6351_v31  ;;  %v6572_v58 = vld [vmem:[%s7988_s7 + $0xe30] sm:$0xf0]  ;;  %v7427_v59 = vld [vmem:[%s7988_s7 + $0xf24] sm:$0xf]  ;;  %v6447_v4 = vor.u32 %v7363_v54, %v6444_v56  ;;  %v3590_v17 = vpop.f32.mrf.mxu3  ;;  %v4883_v31 = vor.u32 %v6974_v15, %v4882_v14  ;;  %v4994_v35 = vld [vmem:[%s7988_s7 + $0x1c8] sm:$0xf] }
 0x14b   : > { %3817 = vmatpush.bf16.msrb.mxu1 %v6479_v20  ;;  %v6700_v60 = vld [vmem:[%s7988_s7 + $0xf30] sm:$0xf0]  ;;  %v7327_v63 = vld [vmem:[%s7988_s7 + $0xc04] sm:$0xf]  ;;  %v6575_v5 = vor.u32 %v7395_v57, %v6572_v58  ;;  %v5011_v20 = vor.u32 %v7006_v19, %v5010_v16  ;;  %v7002_v37 = vld [vmem:[%s7988_s7 + $0x1d4] sm:$0xf0] }
 0x14c   : > { %3830 = vmatpush.bf16.msrb.mxu2 %v6607_v32  ;;  %v6300_v0 = vld [vmem:[%s7988_s7 + $0xc10] sm:$0xf0]  ;;  %v7359_v6 = vld [vmem:[%s7988_s7 + $0xd04] sm:$0xf]  ;;  %v6703_v9 = vor.u32 %v7427_v59, %v6700_v60  ;;  %v5139_v32 = vor.u32 %v7038_v25, %v5138_v24  ;;  %v5122_v38 = vld [vmem:[%s7988_s7 + $0x2c8] sm:$0xf]  ;;  %v4995_v43 = vor.u32 %v7002_v37, %v4994_v35 }
 0x14d   : > { %3843 = vmatpush.bf16.msrb.mxu3 %v6735_v36  ;;  %v6428_v7 = vld [vmem:[%s7988_s7 + $0xd10] sm:$0xf0]  ;;  %v7391_v8 = vld [vmem:[%s7988_s7 + $0xe04] sm:$0xf]  ;;  %v6303_v18 = vor.u32 %v7327_v63, %v6300_v0  ;;  %v5267_v36 = vor.u32 %v7070_v29, %v5266_v46  ;;  %v7034_v39 = vld [vmem:[%s7988_s7 + $0x2d4] sm:$0xf0] }
 0x14e   : > { %3805 = vmatpush.bf16.msrb.mxu0 %v6335_v47  ;;  %v6556_v10 = vld [vmem:[%s7988_s7 + $0xe10] sm:$0xf0]  ;;  %v7423_v11 = vld [vmem:[%s7988_s7 + $0xf04] sm:$0xf]  ;;  %v6431_v26 = vor.u32 %v7359_v6, %v6428_v7  ;;  %v5250_v40 = vld [vmem:[%s7988_s7 + $0x3c8] sm:$0xf]  ;;  %v5123_v44 = vor.u32 %v7034_v39, %v5122_v38 }
 0x14f   : > { %3818 = vmatpush.bf16.msrb.mxu1 %v6463_v50  ;;  %v6684_v12 = vld [vmem:[%s7988_s7 + $0xf10] sm:$0xf0]  ;;  %v6559_v28 = vor.u32 %v7391_v8, %v6556_v10  ;;  %v7066_v41 = vld [vmem:[%s7988_s7 + $0x3d4] sm:$0xf0]  ;;  %v4850_v45 = vld [vmem:[%s7988_s7 + $0xa8] sm:$0xf] }
 0x150   : > { %3831 = vmatpush.bf16.msrb.mxu2 %v6591_v51  ;;  %v6687_v30 = vor.u32 %v7423_v11, %v6684_v12  ;;  %v6966_v47 = vld [vmem:[%s7988_s7 + $0xb4] sm:$0xf0]  ;;  %v4978_v48 = vld [vmem:[%s7988_s7 + $0x1a8] sm:$0xf]  ;;  %v5251_v51 = vor.u32 %v7066_v41, %v5250_v40  ;;  %v7580_v56 = vld [vmem:[#allocation1 + $0x2d] sm:$0xff] }
 0x151   : > { %3844 = vmatpush.bf16.msrb.mxu3 %v6719_v55  ;;  %v7578_v50 = vld [vmem:[#allocation1 + $0x24] sm:$0xff]  ;;  %v5106_v53 = vld [vmem:[%s7988_s7 + $0x2a8] sm:$0xf]  ;;  %v4851_v60 = vor.u32 %v6966_v47, %v4850_v45 }
 0x152   : > { %3806 = vmatpush.bf16.msrb.mxu0 %v6319_v62  ;;  %v6998_v52 = vld [vmem:[%s7988_s7 + $0x1b4] sm:$0xf0]  ;;  %v7579_v55 = vld [vmem:[#allocation1 + $0x36] sm:$0xff]  ;;  %v7581_v59 = vld [vmem:[#allocation1 + $0x3f] sm:$0xff] }
 0x153   : > { %3819 = vmatpush.bf16.msrb.mxu1 %v6447_v4  ;;  %v7030_v54 = vld [vmem:[%s7988_s7 + $0x2b4] sm:$0xf0]  ;;  %v5234_v57 = vld [vmem:[%s7988_s7 + $0x3a8] sm:$0xf]  ;;  %v4979_v62 = vor.u32 %v6998_v52, %v4978_v48 }
 0x154   : > { %3832 = vmatpush.bf16.msrb.mxu2 %v6575_v5  ;;  %v7062_v58 = vld [vmem:[%s7988_s7 + $0x3b4] sm:$0xf0]  ;;  %v5107_v63 = vor.u32 %v7030_v54, %v5106_v53  ;;  %v4834_v0 = vld [vmem:[%s7988_s7 + $0x88] sm:$0xf] }
 0x155   : > { %3845 = vmatpush.bf16.msrb.mxu3 %v6703_v9  ;;  %v6962_v4 = vld [vmem:[%s7988_s7 + $0x94] sm:$0xf0]  ;;  %v4962_v5 = vld [vmem:[%s7988_s7 + $0x188] sm:$0xf]  ;;  %v5235_v6 = vor.u32 %v7062_v58, %v5234_v57 }
 0x156   : > { %3807 = vmatpush.bf16.msrb.mxu0 %v6303_v18  ;;  %v6994_v7 = vld [vmem:[%s7988_s7 + $0x194] sm:$0xf0]  ;;  %v5090_v8 = vld [vmem:[%s7988_s7 + $0x288] sm:$0xf]  ;;  %v3601_v10 = vpop.f32.mrf.mxu0  ;;  %v4835_v14 = vor.u32 %v6962_v4, %v4834_v0 }
 0x157   : > { %3820 = vmatpush.bf16.msrb.mxu1 %v6431_v26  ;;  %v7026_v9 = vld [vmem:[%s7988_s7 + $0x294] sm:$0xf0]  ;;  %v5218_v11 = vld [vmem:[%s7988_s7 + $0x388] sm:$0xf]  ;;  %v3602_v13 = vadd.f32 %v3601_v10, %v8540_v49  ;;  %v3614_v15 = vpop.f32.mrf.mxu1  ;;  %v4963_v16 = vor.u32 %v6994_v7, %v4962_v5 }
 0x158   : > { %3833 = vmatpush.bf16.msrb.mxu2 %v6559_v28  ;;  %v7058_v12 = vld [vmem:[%s7988_s7 + $0x394] sm:$0xf0]  ;;  %v5091_v17 = vor.u32 %v7026_v9, %v5090_v8  ;;  %v4818_v18 = vld [vmem:[%s7988_s7 + $0x68] sm:$0xf] }
 0x159   : > { %3846 = vmatpush.bf16.msrb.mxu3 %v6687_v30  ;;  %3808 = vmatmul.bf16.vlgmr.msrb.gmra.mxu0 %v7578_v50  ;;  %v6958_v19 = vld [vmem:[%s7988_s7 + $0x74] sm:$0xf0]  ;;  %v4946_v24 = vld [vmem:[%s7988_s7 + $0x168] sm:$0xf]  ;;  %v5219_v25 = vor.u32 %v7058_v12, %v5218_v11  ;;  %v3615_v26 = vadd.f32 %v3614_v15, %v3602_v13 }
 0x15a   : > { %3852 = vmatpush.bf16.msra.mxu0 %v4883_v31  ;;  %3821 = vmatmul.bf16.vlgmr.msrb.gmra.mxu1 %v7580_v56  ;;  %v6990_v28 = vld [vmem:[%s7988_s7 + $0x174] sm:$0xf0]  ;;  %v5074_v46 = vld [vmem:[%s7988_s7 + $0x268] sm:$0xf]  ;;  %v4819_v31 = vor.u32 %v6958_v19, %v4818_v18 }
 0x15b   : > { %3865 = vmatpush.bf16.msra.mxu1 %v5011_v20  ;;  %3834 = vmatmul.bf16.vlgmr.msrb.gmra.mxu2 %v7579_v55  ;;  %v7022_v49 = vld [vmem:[%s7988_s7 + $0x274] sm:$0xf0]  ;;  %v5202_v29 = vld [vmem:[%s7988_s7 + $0x368] sm:$0xf]  ;;  %v4947_v20 = vor.u32 %v6990_v28, %v4946_v24 }
 0x15c   : > { %3878 = vmatpush.bf16.msra.mxu2 %v5139_v32  ;;  %3847 = vmatmul.bf16.vlgmr.msrb.gmra.mxu3 %v7581_v59  ;;  %v7054_v30 = vld [vmem:[%s7988_s7 + $0x374] sm:$0xf0]  ;;  %v5075_v32 = vor.u32 %v7022_v49, %v5074_v46  ;;  %v4802_v33 = vld [vmem:[%s7988_s7 + $0x48] sm:$0xf] }
 0x15d   : > { %3891 = vmatpush.bf16.msra.mxu3 %v5267_v36  ;;  %v6954_v34 = vld [vmem:[%s7988_s7 + $0x54] sm:$0xf0]  ;;  %v4930_v35 = vld [vmem:[%s7988_s7 + $0x148] sm:$0xf]  ;;  %v5203_v36 = vor.u32 %v7054_v30, %v5202_v29 }
 0x15e   : > { %3853 = vmatpush.bf16.msra.mxu0 %v4867_v42  ;;  %v3627_v37 = vpop.f32.mrf.mxu2  ;;  %v6986_v38 = vld [vmem:[%s7988_s7 + $0x154] sm:$0xf0]  ;;  %v5058_v39 = vld [vmem:[%s7988_s7 + $0x248] sm:$0xf]  ;;  %v3603_v45 = vpop.f32.mrf.mxu0  ;;  %v4803_v47 = vor.u32 %v6954_v34, %v4802_v33 }
 0x15f   : > { %3866 = vmatpush.bf16.msra.mxu1 %v4995_v43  ;;  %v7018_v40 = vld [vmem:[%s7988_s7 + $0x254] sm:$0xf0]  ;;  %v3628_v41 = vadd.f32 %v3627_v37, %v3615_v26  ;;  %v3640_v42 = vpop.f32.mrf.mxu3  ;;  %v5186_v43 = vld [vmem:[%s7988_s7 + $0x348] sm:$0xf]  ;;  %v3616_v48 = vpop.f32.mrf.mxu1 }
 0x160   : > { %3879 = vmatpush.bf16.msra.mxu2 %v5123_v44  ;;  %v7050_v44 = vld [vmem:[%s7988_s7 + $0x354] sm:$0xf0]  ;;  %v5059_v52 = vor.u32 %v7018_v40, %v5058_v39  ;;  %v4786_v53 = vld [vmem:[%s7988_s7 + $0x28] sm:$0xf] }
 0x161   : > { %3892 = vmatpush.bf16.msra.mxu3 %v5251_v51  ;;  %v8607_v50 = vadd.f32 %v3640_v42, %v3628_v41  ;;  %v4931_v51 = vor.u32 %v6986_v38, %v4930_v35  ;;  %v6950_v54 = vld [vmem:[%s7988_s7 + $0x34] sm:$0xf0]  ;;  %v4914_v55 = vld [vmem:[%s7988_s7 + $0x128] sm:$0xf]  ;;  %v5187_v56 = vor.u32 %v7050_v44, %v5186_v43 }
 0x162   : > { %3854 = vmatpush.bf16.msra.mxu0 %v4851_v60  ;;  %v6982_v57 = vld [vmem:[%s7988_s7 + $0x134] sm:$0xf0]  ;;  %v5042_v58 = vld [vmem:[%s7988_s7 + $0x228] sm:$0xf] }
 0x163   : > { %3867 = vmatpush.bf16.msra.mxu1 %v4979_v62  ;;  %v7014_v59 = vld [vmem:[%s7988_s7 + $0x234] sm:$0xf0]  ;;  %v5170_v60 = vld [vmem:[%s7988_s7 + $0x328] sm:$0xf]  ;;  %v4915_v5 = vor.u32 %v6982_v57, %v4914_v55 }
 0x164   : > { %3880 = vmatpush.bf16.msra.mxu2 %v5107_v63  ;;  %v7046_v62 = vld [vmem:[%s7988_s7 + $0x334] sm:$0xf0]  ;;  %v4787_v63 = vor.u32 %v6950_v54, %v4786_v53  ;;  %v4770_v0 = vld [vmem:[%s7988_s7 + $0x8] sm:$0xf] }
 0x165   : > { %3893 = vmatpush.bf16.msra.mxu3 %v5235_v6  ;;  %v6946_v4 = vld [vmem:[%s7988_s7 + $0x14] sm:$0xf0]  ;;  %v5043_v6 = vor.u32 %v7014_v59, %v5042_v58  ;;  %v4898_v7 = vld [vmem:[%s7988_s7 + $0x108] sm:$0xf]  ;;  %v5171_v10 = vor.u32 %v7046_v62, %v5170_v60 }
 0x166   : > { %3855 = vmatpush.bf16.msra.mxu0 %v4835_v14  ;;  %v6978_v8 = vld [vmem:[%s7988_s7 + $0x114] sm:$0xf0]  ;;  %v5026_v9 = vld [vmem:[%s7988_s7 + $0x208] sm:$0xf]  ;;  %v3629_v14 = vpop.f32.mrf.mxu2  ;;  %v4771_v19 = vor.u32 %v6946_v4, %v4770_v0 }
 0x167   : > { %3868 = vmatpush.bf16.msra.mxu1 %v4963_v16  ;;  %v7010_v11 = vld [vmem:[%s7988_s7 + $0x214] sm:$0xf0]  ;;  %v5154_v12 = vld [vmem:[%s7988_s7 + $0x308] sm:$0xf]  ;;  %v3642_v18 = vpop.f32.mrf.mxu3  ;;  %v4899_v28 = vor.u32 %v6978_v8, %v4898_v7 }
 0x168   : > { %3881 = vmatpush.bf16.msra.mxu2 %v5091_v17  ;;  %v7042_v13 = vld [vmem:[%s7988_s7 + $0x314] sm:$0xf0]  ;;  %v5394_v15 = vld [vmem:[%s7988_s7 + $0x4e8] sm:$0xf]  ;;  %v5027_v46 = vor.u32 %v7010_v11, %v5026_v9 }
 0x169   : > { %3894 = vmatpush.bf16.msra.mxu3 %v5219_v25  ;;  %v7102_v16 = vld [vmem:[%s7988_s7 + $0x4f4] sm:$0xf0]  ;;  %v5522_v17 = vld [vmem:[%s7988_s7 + $0x5e8] sm:$0xf]  ;;  %v5155_v30 = vor.u32 %v7042_v13, %v5154_v12 }
 0x16a   : > { %3856 = vmatpush.bf16.msra.mxu0 %v4819_v31  ;;  %v7134_v24 = vld [vmem:[%s7988_s7 + $0x5f4] sm:$0xf0]  ;;  %v5650_v25 = vld [vmem:[%s7988_s7 + $0x6e8] sm:$0xf]  ;;  %v5395_v31 = vor.u32 %v7102_v16, %v5394_v15 }
 0x16b   : > { %3869 = vmatpush.bf16.msra.mxu1 %v4947_v20  ;;  %v7166_v26 = vld [vmem:[%s7988_s7 + $0x6f4] sm:$0xf0]  ;;  %v5778_v49 = vld [vmem:[%s7988_s7 + $0x7e8] sm:$0xf]  ;;  %v5523_v20 = vor.u32 %v7134_v24, %v5522_v17 }
 0x16c   : > { %3882 = vmatpush.bf16.msra.mxu2 %v5075_v32  ;;  %v7198_v29 = vld [vmem:[%s7988_s7 + $0x7f4] sm:$0xf0]  ;;  %v5651_v32 = vor.u32 %v7166_v26, %v5650_v25  ;;  %v5378_v33 = vld [vmem:[%s7988_s7 + $0x4c8] sm:$0xf] }
 0x16d   : > { %3895 = vmatpush.bf16.msra.mxu3 %v5203_v36  ;;  %v7098_v34 = vld [vmem:[%s7988_s7 + $0x4d4] sm:$0xf0]  ;;  %v5506_v35 = vld [vmem:[%s7988_s7 + $0x5c8] sm:$0xf]  ;;  %v5779_v36 = vor.u32 %v7198_v29, %v5778_v49 }
 0x16e   : > { %3857 = vmatpush.bf16.msra.mxu0 %v4803_v47  ;;  %v7130_v37 = vld [vmem:[%s7988_s7 + $0x5d4] sm:$0xf0]  ;;  %v5634_v38 = vld [vmem:[%s7988_s7 + $0x6c8] sm:$0xf]  ;;  %v5379_v42 = vor.u32 %v7098_v34, %v5378_v33 }
 0x16f   : > { %3870 = vmatpush.bf16.msra.mxu1 %v4931_v51  ;;  %v7162_v39 = vld [vmem:[%s7988_s7 + $0x6d4] sm:$0xf0]  ;;  %v5762_v40 = vld [vmem:[%s7988_s7 + $0x7c8] sm:$0xf]  ;;  %v5507_v43 = vor.u32 %v7130_v37, %v5506_v35 }
 0x170   : > { %3883 = vmatpush.bf16.msra.mxu2 %v5059_v52  ;;  %v7194_v41 = vld [vmem:[%s7988_s7 + $0x7d4] sm:$0xf0]  ;;  %v5635_v44 = vor.u32 %v7162_v39, %v5634_v38  ;;  %v5362_v45 = vld [vmem:[%s7988_s7 + $0x4a8] sm:$0xf] }
 0x171   : > { %3896 = vmatpush.bf16.msra.mxu3 %v5187_v56  ;;  %v7094_v47 = vld [vmem:[%s7988_s7 + $0x4b4] sm:$0xf0]  ;;  %v5490_v48 = vld [vmem:[%s7988_s7 + $0x5a8] sm:$0xf]  ;;  %v5763_v51 = vor.u32 %v7194_v41, %v5762_v40 }
 0x172   : > { %3858 = vmatpush.bf16.msra.mxu0 %v4787_v63  ;;  %v7126_v52 = vld [vmem:[%s7988_s7 + $0x5b4] sm:$0xf0]  ;;  %v5618_v53 = vld [vmem:[%s7988_s7 + $0x6a8] sm:$0xf]  ;;  %v5363_v57 = vor.u32 %v7094_v47, %v5362_v45 }
 0x173   : > { %3871 = vmatpush.bf16.msra.mxu1 %v4915_v5  ;;  %v7158_v54 = vld [vmem:[%s7988_s7 + $0x6b4] sm:$0xf0]  ;;  %v5746_v55 = vld [vmem:[%s7988_s7 + $0x7a8] sm:$0xf]  ;;  %v5491_v58 = vor.u32 %v7126_v52, %v5490_v48 }
 0x174   : > { %3884 = vmatpush.bf16.msra.mxu2 %v5043_v6  ;;  %v7190_v56 = vld [vmem:[%s7988_s7 + $0x7b4] sm:$0xf0]  ;;  %v5619_v59 = vor.u32 %v7158_v54, %v5618_v53  ;;  %v5346_v60 = vld [vmem:[%s7988_s7 + $0x488] sm:$0xf] }
 0x175   : > { %3897 = vmatpush.bf16.msra.mxu3 %v5171_v10  ;;  %v7090_v62 = vld [vmem:[%s7988_s7 + $0x494] sm:$0xf0]  ;;  %v5474_v63 = vld [vmem:[%s7988_s7 + $0x588] sm:$0xf]  ;;  %v5747_v0 = vor.u32 %v7190_v56, %v5746_v55 }
 0x176   : > { %3859 = vmatpush.bf16.msra.mxu0 %v4771_v19  ;;  %v7122_v4 = vld [vmem:[%s7988_s7 + $0x594] sm:$0xf0]  ;;  %v5602_v5 = vld [vmem:[%s7988_s7 + $0x688] sm:$0xf]  ;;  %v5347_v9 = vor.u32 %v7090_v62, %v5346_v60  ;;  %v3653_v10 = vpop.f32.mrf.mxu0 }
 0x177   : > { %3872 = vmatpush.bf16.msra.mxu1 %v4899_v28  ;;  %v7154_v6 = vld [vmem:[%s7988_s7 + $0x694] sm:$0xf0]  ;;  %v5730_v7 = vld [vmem:[%s7988_s7 + $0x788] sm:$0xf]  ;;  %v5475_v11 = vor.u32 %v7122_v4, %v5474_v63  ;;  %v3666_v16 = vpop.f32.mrf.mxu1 }
 0x178   : > { %3885 = vmatpush.bf16.msra.mxu2 %v5027_v46  ;;  %v7186_v8 = vld [vmem:[%s7988_s7 + $0x794] sm:$0xf0]  ;;  %v5603_v12 = vor.u32 %v7154_v6, %v5602_v5  ;;  %v5330_v13 = vld [vmem:[%s7988_s7 + $0x468] sm:$0xf]  ;;  %v3667_v25 = vadd.f32 %v3666_v16, %v3653_v10 }
 0x179   : > { %3898 = vmatpush.bf16.msra.mxu3 %v5155_v30  ;;  %3860 = vmatmul.bf16.vlgmr.msra.gmra.mxu0 %v8107_v22  ;;  %v7086_v14 = vld [vmem:[%s7988_s7 + $0x474] sm:$0xf0]  ;;  %v5458_v15 = vld [vmem:[%s7988_s7 + $0x568] sm:$0xf]  ;;  %v5731_v17 = vor.u32 %v7186_v8, %v5730_v7 }
 0x17a   : > { %3904 = vmatpush.bf16.msrb.mxu0 %v5395_v31  ;;  %3873 = vmatmul.bf16.vlgmr.msra.gmra.mxu1 %v8114_v27  ;;  %v7118_v18 = vld [vmem:[%s7988_s7 + $0x574] sm:$0xf0]  ;;  %v5586_v19 = vld [vmem:[%s7988_s7 + $0x668] sm:$0xf]  ;;  %v5331_v46 = vor.u32 %v7086_v14, %v5330_v13 }
 0x17b   : > { %3917 = vmatpush.bf16.msrb.mxu1 %v5523_v20  ;;  %3886 = vmatmul.bf16.vlgmr.msra.gmra.mxu2 %v8105_v21  ;;  %v7150_v24 = vld [vmem:[%s7988_s7 + $0x674] sm:$0xf0]  ;;  %v5714_v26 = vld [vmem:[%s7988_s7 + $0x768] sm:$0xf]  ;;  %v5459_v49 = vor.u32 %v7118_v18, %v5458_v15 }
 0x17c   : > { %3930 = vmatpush.bf16.msrb.mxu2 %v5651_v32  ;;  %3899 = vmatmul.bf16.vlgmr.msra.gmra.mxu3 %v8109_v23  ;;  %v7182_v28 = vld [vmem:[%s7988_s7 + $0x774] sm:$0xf0]  ;;  %v5587_v29 = vor.u32 %v7150_v24, %v5586_v19  ;;  %v5314_v30 = vld [vmem:[%s7988_s7 + $0x448] sm:$0xf] }
 0x17d   : > { %3943 = vmatpush.bf16.msrb.mxu3 %v5779_v36  ;;  %v7082_v31 = vld [vmem:[%s7988_s7 + $0x454] sm:$0xf0]  ;;  %v5442_v20 = vld [vmem:[%s7988_s7 + $0x548] sm:$0xf]  ;;  %v5715_v33 = vor.u32 %v7182_v28, %v5714_v26 }
 0x17e   : > { %3905 = vmatpush.bf16.msrb.mxu0 %v5379_v42  ;;  %v3679_v32 = vpop.f32.mrf.mxu2  ;;  %v7114_v34 = vld [vmem:[%s7988_s7 + $0x554] sm:$0xf0]  ;;  %v5570_v35 = vld [vmem:[%s7988_s7 + $0x648] sm:$0xf]  ;;  %v5315_v41 = vor.u32 %v7082_v31, %v5314_v30 }
 0x17f   : > { %3918 = vmatpush.bf16.msrb.mxu1 %v5507_v43  ;;  %v7146_v36 = vld [vmem:[%s7988_s7 + $0x654] sm:$0xf0]  ;;  %v3680_v37 = vadd.f32 %v3679_v32, %v3667_v25  ;;  %v3692_v38 = vpop.f32.mrf.mxu3  ;;  %v5698_v39 = vld [vmem:[%s7988_s7 + $0x748] sm:$0xf]  ;;  %v3655_v43 = vpop.f32.mrf.mxu0 }
 0x180   : > { %3931 = vmatpush.bf16.msrb.mxu2 %v5635_v44  ;;  %v7178_v40 = vld [vmem:[%s7988_s7 + $0x754] sm:$0xf0]  ;;  %v5443_v44 = vor.u32 %v7114_v34, %v5442_v20  ;;  %v5571_v45 = vor.u32 %v7146_v36, %v5570_v35  ;;  %v5298_v47 = vld [vmem:[%s7988_s7 + $0x428] sm:$0xf]  ;;  %v3668_v52 = vpop.f32.mrf.mxu1 }
 0x181   : > { %3944 = vmatpush.bf16.msrb.mxu3 %v5763_v51  ;;  %v8677_v42 = vadd.f32 %v3692_v38, %v3680_v37  ;;  %v7078_v48 = vld [vmem:[%s7988_s7 + $0x434] sm:$0xf0]  ;;  %v5426_v51 = vld [vmem:[%s7988_s7 + $0x528] sm:$0xf]  ;;  %v5699_v53 = vor.u32 %v7178_v40, %v5698_v39 }
 0x182   : > { %3906 = vmatpush.bf16.msrb.mxu0 %v5363_v57  ;;  %v7110_v54 = vld [vmem:[%s7988_s7 + $0x534] sm:$0xf0]  ;;  %v5554_v55 = vld [vmem:[%s7988_s7 + $0x628] sm:$0xf] }
 0x183   : > { %3919 = vmatpush.bf16.msrb.mxu1 %v5491_v58  ;;  %v7142_v56 = vld [vmem:[%s7988_s7 + $0x634] sm:$0xf0]  ;;  %v5682_v57 = vld [vmem:[%s7988_s7 + $0x728] sm:$0xf]  ;;  %v5427_v63 = vor.u32 %v7110_v54, %v5426_v51 }
 0x184   : > { %3932 = vmatpush.bf16.msrb.mxu2 %v5619_v59  ;;  %v7174_v58 = vld [vmem:[%s7988_s7 + $0x734] sm:$0xf0]  ;;  %v5299_v59 = vor.u32 %v7078_v48, %v5298_v47  ;;  %v5282_v60 = vld [vmem:[%s7988_s7 + $0x408] sm:$0xf] }
 0x185   : > { %3945 = vmatpush.bf16.msrb.mxu3 %v5747_v0  ;;  %v7074_v62 = vld [vmem:[%s7988_s7 + $0x414] sm:$0xf0]  ;;  %v5555_v0 = vor.u32 %v7142_v56, %v5554_v55  ;;  %v5410_v4 = vld [vmem:[%s7988_s7 + $0x508] sm:$0xf]  ;;  %v5683_v8 = vor.u32 %v7174_v58, %v5682_v57 }
 0x186   : > { %3907 = vmatpush.bf16.msrb.mxu0 %v5347_v9  ;;  %v7106_v5 = vld [vmem:[%s7988_s7 + $0x514] sm:$0xf0]  ;;  %v5538_v6 = vld [vmem:[%s7988_s7 + $0x608] sm:$0xf]  ;;  %v3681_v7 = vpop.f32.mrf.mxu2  ;;  %v5283_v16 = vor.u32 %v7074_v62, %v5282_v60 }
 0x187   : > { %3920 = vmatpush.bf16.msrb.mxu1 %v5475_v11  ;;  %v7138_v9 = vld [vmem:[%s7988_s7 + $0x614] sm:$0xf0]  ;;  %v5666_v10 = vld [vmem:[%s7988_s7 + $0x708] sm:$0xf]  ;;  %v5411_v24 = vor.u32 %v7106_v5, %v5410_v4 }
 0x188   : > { %3933 = vmatpush.bf16.msrb.mxu2 %v5603_v12  ;;  %v7170_v11 = vld [vmem:[%s7988_s7 + $0x714] sm:$0xf0]  ;;  %v3694_v12 = vpop.f32.mrf.mxu3  ;;  %v5906_v13 = vld [vmem:[%s7988_s7 + $0x8e8] sm:$0xf]  ;;  %v5539_v25 = vor.u32 %v7138_v9, %v5538_v6 }
 0x189   : > { %3946 = vmatpush.bf16.msrb.mxu3 %v5731_v17  ;;  %v7230_v14 = vld [vmem:[%s7988_s7 + $0x8f4] sm:$0xf0]  ;;  %v6034_v15 = vld [vmem:[%s7988_s7 + $0x9e8] sm:$0xf] }
 0x18a   : > { %3908 = vmatpush.bf16.msrb.mxu0 %v5331_v46  ;;  %v7262_v17 = vld [vmem:[%s7988_s7 + $0x9f4] sm:$0xf0]  ;;  %v6162_v18 = vld [vmem:[%s7988_s7 + $0xae8] sm:$0xf]  ;;  %v5667_v46 = vor.u32 %v7170_v11, %v5666_v10 }
 0x18b   : > { %3921 = vmatpush.bf16.msrb.mxu1 %v5459_v49  ;;  %v7294_v19 = vld [vmem:[%s7988_s7 + $0xaf4] sm:$0xf0]  ;;  %v6290_v26 = vld [vmem:[%s7988_s7 + $0xbe8] sm:$0xf]  ;;  %v5907_v49 = vor.u32 %v7230_v14, %v5906_v13 }
 0x18c   : > { %3934 = vmatpush.bf16.msrb.mxu2 %v5587_v29  ;;  %v7326_v28 = vld [vmem:[%s7988_s7 + $0xbf4] sm:$0xf0]  ;;  %v6035_v29 = vor.u32 %v7262_v17, %v6034_v15  ;;  %v6163_v30 = vor.u32 %v7294_v19, %v6162_v18  ;;  %v5890_v31 = vld [vmem:[%s7988_s7 + $0x8c8] sm:$0xf] }
 0x18d   : > { %3947 = vmatpush.bf16.msrb.mxu3 %v5715_v33  ;;  %v7226_v20 = vld [vmem:[%s7988_s7 + $0x8d4] sm:$0xf0]  ;;  %v6018_v32 = vld [vmem:[%s7988_s7 + $0x9c8] sm:$0xf]  ;;  %v6291_v33 = vor.u32 %v7326_v28, %v6290_v26 }
 0x18e   : > { %3909 = vmatpush.bf16.msrb.mxu0 %v5315_v41  ;;  %v7258_v34 = vld [vmem:[%s7988_s7 + $0x9d4] sm:$0xf0]  ;;  %v6146_v35 = vld [vmem:[%s7988_s7 + $0xac8] sm:$0xf]  ;;  %v5891_v39 = vor.u32 %v7226_v20, %v5890_v31 }
 0x18f   : > { %3922 = vmatpush.bf16.msrb.mxu1 %v5443_v44  ;;  %v7290_v36 = vld [vmem:[%s7988_s7 + $0xad4] sm:$0xf0]  ;;  %v6274_v37 = vld [vmem:[%s7988_s7 + $0xbc8] sm:$0xf]  ;;  %v6019_v40 = vor.u32 %v7258_v34, %v6018_v32 }
 0x190   : > { %3935 = vmatpush.bf16.msrb.mxu2 %v5571_v45  ;;  %v7322_v38 = vld [vmem:[%s7988_s7 + $0xbd4] sm:$0xf0]  ;;  %v6147_v41 = vor.u32 %v7290_v36, %v6146_v35  ;;  %v5874_v43 = vld [vmem:[%s7988_s7 + $0x8a8] sm:$0xf] }
 0x191   : > { %3948 = vmatpush.bf16.msrb.mxu3 %v5699_v53  ;;  %v7222_v44 = vld [vmem:[%s7988_s7 + $0x8b4] sm:$0xf0]  ;;  %v6002_v45 = vld [vmem:[%s7988_s7 + $0x9a8] sm:$0xf]  ;;  %v6275_v47 = vor.u32 %v7322_v38, %v6274_v37 }
 0x192   : > { %3910 = vmatpush.bf16.msrb.mxu0 %v5299_v59  ;;  %v7254_v48 = vld [vmem:[%s7988_s7 + $0x9b4] sm:$0xf0]  ;;  %v6130_v51 = vld [vmem:[%s7988_s7 + $0xaa8] sm:$0xf]  ;;  %v5875_v55 = vor.u32 %v7222_v44, %v5874_v43 }
 0x193   : > { %3923 = vmatpush.bf16.msrb.mxu1 %v5427_v63  ;;  %v7286_v52 = vld [vmem:[%s7988_s7 + $0xab4] sm:$0xf0]  ;;  %v6258_v53 = vld [vmem:[%s7988_s7 + $0xba8] sm:$0xf]  ;;  %v6003_v56 = vor.u32 %v7254_v48, %v6002_v45 }
 0x194   : > { %3936 = vmatpush.bf16.msrb.mxu2 %v5555_v0  ;;  %v7318_v54 = vld [vmem:[%s7988_s7 + $0xbb4] sm:$0xf0]  ;;  %v6131_v57 = vor.u32 %v7286_v52, %v6130_v51  ;;  %v5858_v58 = vld [vmem:[%s7988_s7 + $0x888] sm:$0xf] }
 0x195   : > { %3949 = vmatpush.bf16.msrb.mxu3 %v5683_v8  ;;  %v7218_v59 = vld [vmem:[%s7988_s7 + $0x894] sm:$0xf0]  ;;  %v5986_v60 = vld [vmem:[%s7988_s7 + $0x988] sm:$0xf]  ;;  %v6259_v62 = vor.u32 %v7318_v54, %v6258_v53 }
 0x196   : > { %3911 = vmatpush.bf16.msrb.mxu0 %v5283_v16  ;;  %v7250_v63 = vld [vmem:[%s7988_s7 + $0x994] sm:$0xf0]  ;;  %v6114_v0 = vld [vmem:[%s7988_s7 + $0xa88] sm:$0xf]  ;;  %v5859_v7 = vor.u32 %v7218_v59, %v5858_v58  ;;  %v3705_v8 = vpop.f32.mrf.mxu0 }
 0x197   : > { %3924 = vmatpush.bf16.msrb.mxu1 %v5411_v24  ;;  %v7282_v4 = vld [vmem:[%s7988_s7 + $0xa94] sm:$0xf0]  ;;  %v6242_v5 = vld [vmem:[%s7988_s7 + $0xb88] sm:$0xf]  ;;  %v5987_v9 = vor.u32 %v7250_v63, %v5986_v60  ;;  %v3706_v14 = vadd.f32 %v3705_v8, %v8677_v42  ;;  %v3718_v15 = vpop.f32.mrf.mxu1 }
 0x198   : > { %3937 = vmatpush.bf16.msrb.mxu2 %v5539_v25  ;;  %v7314_v6 = vld [vmem:[%s7988_s7 + $0xb94] sm:$0xf0]  ;;  %v6115_v10 = vor.u32 %v7282_v4, %v6114_v0  ;;  %v5842_v11 = vld [vmem:[%s7988_s7 + $0x868] sm:$0xf] }
 0x199   : > { %3950 = vmatpush.bf16.msrb.mxu3 %v5667_v46  ;;  %3912 = vmatmul.bf16.vlgmr.msrb.gmra.mxu0 %v8146_v1  ;;  %v7214_v12 = vld [vmem:[%s7988_s7 + $0x874] sm:$0xf0]  ;;  %v5970_v13 = vld [vmem:[%s7988_s7 + $0x968] sm:$0xf]  ;;  %v6243_v16 = vor.u32 %v7314_v6, %v6242_v5  ;;  %v3719_v26 = vadd.f32 %v3718_v15, %v3706_v14 }
 0x19a   : > { %3956 = vmatpush.bf16.msra.mxu0 %v5907_v49  ;;  %3925 = vmatmul.bf16.vlgmr.msrb.gmra.mxu1 %v8150_v3  ;;  %v7246_v17 = vld [vmem:[%s7988_s7 + $0x974] sm:$0xf0]  ;;  %v6098_v18 = vld [vmem:[%s7988_s7 + $0xa68] sm:$0xf]  ;;  %v5843_v28 = vor.u32 %v7214_v12, %v5842_v11 }
 0x19b   : > { %3969 = vmatpush.bf16.msra.mxu1 %v6035_v29  ;;  %3938 = vmatmul.bf16.vlgmr.msrb.gmra.mxu2 %v8143_v61  ;;  %v7278_v19 = vld [vmem:[%s7988_s7 + $0xa74] sm:$0xf0]  ;;  %v6226_v24 = vld [vmem:[%s7988_s7 + $0xb68] sm:$0xf]  ;;  %v5971_v42 = vor.u32 %v7246_v17, %v5970_v13 }
 0x19c   : > { %3982 = vmatpush.bf16.msra.mxu2 %v6163_v30  ;;  %3951 = vmatmul.bf16.vlgmr.msrb.gmra.mxu3 %v8148_v2  ;;  %v7310_v25 = vld [vmem:[%s7988_s7 + $0xb74] sm:$0xf0]  ;;  %v6099_v46 = vor.u32 %v7278_v19, %v6098_v18  ;;  %v5826_v49 = vld [vmem:[%s7988_s7 + $0x848] sm:$0xf] }
 0x19d   : > { %3995 = vmatpush.bf16.msra.mxu3 %v6291_v33  ;;  %v7210_v29 = vld [vmem:[%s7988_s7 + $0x854] sm:$0xf0]  ;;  %v5954_v30 = vld [vmem:[%s7988_s7 + $0x948] sm:$0xf]  ;;  %v6227_v20 = vor.u32 %v7310_v25, %v6226_v24 }
 0x19e   : > { %3957 = vmatpush.bf16.msra.mxu0 %v5891_v39  ;;  %v3731_v31 = vpop.f32.mrf.mxu2  ;;  %v7242_v32 = vld [vmem:[%s7988_s7 + $0x954] sm:$0xf0]  ;;  %v6082_v33 = vld [vmem:[%s7988_s7 + $0xa48] sm:$0xf]  ;;  %v5827_v39 = vor.u32 %v7210_v29, %v5826_v49 }
 0x19f   : > { %3970 = vmatpush.bf16.msra.mxu1 %v6019_v40  ;;  %v7274_v34 = vld [vmem:[%s7988_s7 + $0xa54] sm:$0xf0]  ;;  %v3732_v35 = vadd.f32 %v3731_v31, %v3719_v26  ;;  %v3744_v36 = vpop.f32.mrf.mxu3  ;;  %v6210_v37 = vld [vmem:[%s7988_s7 + $0xb48] sm:$0xf]  ;;  %v5955_v43 = vor.u32 %v7242_v32, %v5954_v30  ;;  %v3720_v51 = vpop.f32.mrf.mxu1 }
 0x1a0   : > { %3983 = vmatpush.bf16.msra.mxu2 %v6147_v41  ;;  %v7306_v38 = vld [vmem:[%s7988_s7 + $0xb54] sm:$0xf0]  ;;  %v3707_v41 = vpop.f32.mrf.mxu0  ;;  %v6083_v44 = vor.u32 %v7274_v34, %v6082_v33  ;;  %v5810_v45 = vld [vmem:[%s7988_s7 + $0x828] sm:$0xf] }
 0x1a1   : > { %3996 = vmatpush.bf16.msra.mxu3 %v6275_v47  ;;  %v8748_v40 = vadd.f32 %v3744_v36, %v3732_v35  ;;  %v7206_v47 = vld [vmem:[%s7988_s7 + $0x834] sm:$0xf0]  ;;  %v5938_v48 = vld [vmem:[%s7988_s7 + $0x928] sm:$0xf]  ;;  %v6211_v52 = vor.u32 %v7306_v38, %v6210_v37 }
 0x1a2   : > { %3958 = vmatpush.bf16.msra.mxu0 %v5875_v55  ;;  %v7238_v53 = vld [vmem:[%s7988_s7 + $0x934] sm:$0xf0]  ;;  %v6066_v54 = vld [vmem:[%s7988_s7 + $0xa28] sm:$0xf]  ;;  %v5811_v58 = vor.u32 %v7206_v47, %v5810_v45  ;;  %v7582_v45 = vld [vmem:[#allocation1] sm:$0xff] }
 0x1a3   : > { %3971 = vmatpush.bf16.msra.mxu1 %v6003_v56  ;;  %v7270_v55 = vld [vmem:[%s7988_s7 + $0xa34] sm:$0xf0]  ;;  %v6194_v56 = vld [vmem:[%s7988_s7 + $0xb28] sm:$0xf] }
 0x1a4   : > { %3984 = vmatpush.bf16.msra.mxu2 %v6131_v57  ;;  %v7302_v57 = vld [vmem:[%s7988_s7 + $0xb34] sm:$0xf0]  ;;  %v5794_v59 = vld [vmem:[%s7988_s7 + $0x808] sm:$0xf]  ;;  %v6067_v63 = vor.u32 %v7270_v55, %v6066_v54 }
 0x1a5   : > { %3997 = vmatpush.bf16.msra.mxu3 %v6259_v62  ;;  %v7202_v60 = vld [vmem:[%s7988_s7 + $0x814] sm:$0xf0]  ;;  %v5939_v62 = vor.u32 %v7238_v53, %v5938_v48  ;;  %v5922_v0 = vld [vmem:[%s7988_s7 + $0x908] sm:$0xf] }
 0x1a6   : > { %3959 = vmatpush.bf16.msra.mxu0 %v5859_v7  ;;  %v7234_v4 = vld [vmem:[%s7988_s7 + $0x914] sm:$0xf0]  ;;  %v6050_v5 = vld [vmem:[%s7988_s7 + $0xa08] sm:$0xf]  ;;  %v3733_v6 = vpop.f32.mrf.mxu2  ;;  %v6195_v7 = vor.u32 %v7302_v57, %v6194_v56  ;;  %v5795_v15 = vor.u32 %v7202_v60, %v5794_v59 }
 0x1a7   : > { %3972 = vmatpush.bf16.msra.mxu1 %v5987_v9  ;;  %v7266_v8 = vld [vmem:[%s7988_s7 + $0xa14] sm:$0xf0]  ;;  %v6178_v9 = vld [vmem:[%s7988_s7 + $0xb08] sm:$0xf]  ;;  %v3746_v11 = vpop.f32.mrf.mxu3  ;;  %v5923_v19 = vor.u32 %v7234_v4, %v5922_v0 }
 0x1a8   : > { %3985 = vmatpush.bf16.msra.mxu2 %v6115_v10  ;;  %v7298_v10 = vld [vmem:[%s7988_s7 + $0xb14] sm:$0xf0]  ;;  %v6418_v12 = vld [vmem:[%s7988_s7 + $0xce8] sm:$0xf]  ;;  %v6051_v24 = vor.u32 %v7266_v8, %v6050_v5 }
 0x1a9   : > { %3998 = vmatpush.bf16.msra.mxu3 %v6243_v16  ;;  %v7358_v13 = vld [vmem:[%s7988_s7 + $0xcf4] sm:$0xf0]  ;;  %v6546_v14 = vld [vmem:[%s7988_s7 + $0xde8] sm:$0xf] }
 0x1aa   : > { %3960 = vmatpush.bf16.msra.mxu0 %v5843_v28  ;;  %v7390_v16 = vld [vmem:[%s7988_s7 + $0xdf4] sm:$0xf0]  ;;  %v6674_v17 = vld [vmem:[%s7988_s7 + $0xee8] sm:$0xf]  ;;  %v6179_v28 = vor.u32 %v7298_v10, %v6178_v9 }
 0x1ab   : > { %3973 = vmatpush.bf16.msra.mxu1 %v5971_v42  ;;  %v7422_v18 = vld [vmem:[%s7988_s7 + $0xef4] sm:$0xf0]  ;;  %v6802_v25 = vld [vmem:[%s7988_s7 + $0xfe8] sm:$0xf]  ;;  %v6419_v42 = vor.u32 %v7358_v13, %v6418_v12 }
 0x1ac   : > { %3986 = vmatpush.bf16.msra.mxu2 %v6099_v46  ;;  %v7454_v26 = vld [vmem:[%s7988_s7 + $0xff4] sm:$0xf0]  ;;  %v6547_v46 = vor.u32 %v7390_v16, %v6546_v14  ;;  %v6675_v49 = vor.u32 %v7422_v18, %v6674_v17  ;;  %v6402_v29 = vld [vmem:[%s7988_s7 + $0xcc8] sm:$0xf] }
 0x1ad   : > { %3999 = vmatpush.bf16.msra.mxu3 %v6227_v20  ;;  %v7354_v30 = vld [vmem:[%s7988_s7 + $0xcd4] sm:$0xf0]  ;;  %v6530_v31 = vld [vmem:[%s7988_s7 + $0xdc8] sm:$0xf]  ;;  %v6803_v20 = vor.u32 %v7454_v26, %v6802_v25 }
 0x1ae   : > { %3961 = vmatpush.bf16.msra.mxu0 %v5827_v39  ;;  %v7386_v32 = vld [vmem:[%s7988_s7 + $0xdd4] sm:$0xf0]  ;;  %v6658_v33 = vld [vmem:[%s7988_s7 + $0xec8] sm:$0xf]  ;;  %v6403_v37 = vor.u32 %v7354_v30, %v6402_v29 }
 0x1af   : > { %3974 = vmatpush.bf16.msra.mxu1 %v5955_v43  ;;  %v7418_v34 = vld [vmem:[%s7988_s7 + $0xed4] sm:$0xf0]  ;;  %v6786_v35 = vld [vmem:[%s7988_s7 + $0xfc8] sm:$0xf]  ;;  %v6531_v38 = vor.u32 %v7386_v32, %v6530_v31 }
 0x1b0   : > { %3987 = vmatpush.bf16.msra.mxu2 %v6083_v44  ;;  %v7450_v36 = vld [vmem:[%s7988_s7 + $0xfd4] sm:$0xf0]  ;;  %v6659_v39 = vor.u32 %v7418_v34, %v6658_v33  ;;  %v6386_v41 = vld [vmem:[%s7988_s7 + $0xca8] sm:$0xf] }
 0x1b1   : > { %4000 = vmatpush.bf16.msra.mxu3 %v6211_v52  ;;  %v7350_v43 = vld [vmem:[%s7988_s7 + $0xcb4] sm:$0xf0]  ;;  %v6514_v44 = vld [vmem:[%s7988_s7 + $0xda8] sm:$0xf]  ;;  %v6787_v47 = vor.u32 %v7450_v36, %v6786_v35 }
 0x1b2   : > { %3962 = vmatpush.bf16.msra.mxu0 %v5811_v58  ;;  %v7382_v48 = vld [vmem:[%s7988_s7 + $0xdb4] sm:$0xf0]  ;;  %v6642_v51 = vld [vmem:[%s7988_s7 + $0xea8] sm:$0xf]  ;;  %v6387_v58 = vor.u32 %v7350_v43, %v6386_v41 }
 0x1b3   : > { %3975 = vmatpush.bf16.msra.mxu1 %v5939_v62  ;;  %v7414_v52 = vld [vmem:[%s7988_s7 + $0xeb4] sm:$0xf0]  ;;  %v7583_v53 = vld [vmem:[#allocation1 + $0x12] sm:$0xff]  ;;  %v7585_v57 = vld [vmem:[#allocation1 + $0x1b] sm:$0xff]  ;;  %v6515_v59 = vor.u32 %v7382_v48, %v6514_v44 }
 0x1b4   : > { %3988 = vmatpush.bf16.msra.mxu2 %v6067_v63  ;;  %v7584_v54 = vld [vmem:[#allocation1 + $0x9] sm:$0xff]  ;;  %v6770_v55 = vld [vmem:[%s7988_s7 + $0xfa8] sm:$0xf]  ;;  %v6643_v60 = vor.u32 %v7414_v52, %v6642_v51 }
 0x1b5   : > { %4001 = vmatpush.bf16.msra.mxu3 %v6195_v7  ;;  %v7446_v56 = vld [vmem:[%s7988_s7 + $0xfb4] sm:$0xf0]  ;;  %v6370_v62 = vld [vmem:[%s7988_s7 + $0xc88] sm:$0xf] }
 0x1b6   : > { %3963 = vmatpush.bf16.msra.mxu0 %v5795_v15  ;;  %v7346_v63 = vld [vmem:[%s7988_s7 + $0xc94] sm:$0xf0]  ;;  %v6498_v0 = vld [vmem:[%s7988_s7 + $0xd88] sm:$0xf]  ;;  %v6771_v4 = vor.u32 %v7446_v56, %v6770_v55  ;;  %v3757_v8 = vpop.f32.mrf.mxu0 }
 0x1b7   : > { %3976 = vmatpush.bf16.msra.mxu1 %v5923_v19  ;;  %v7378_v5 = vld [vmem:[%s7988_s7 + $0xd94] sm:$0xf0]  ;;  %v6626_v6 = vld [vmem:[%s7988_s7 + $0xe88] sm:$0xf]  ;;  %v3758_v11 = vadd.f32 %v3757_v8, %v8748_v40  ;;  %v6371_v12 = vor.u32 %v7346_v63, %v6370_v62  ;;  %v3770_v13 = vpop.f32.mrf.mxu1 }
 0x1b8   : > { %3989 = vmatpush.bf16.msra.mxu2 %v6051_v24  ;;  %v7410_v7 = vld [vmem:[%s7988_s7 + $0xe94] sm:$0xf0]  ;;  %v6754_v9 = vld [vmem:[%s7988_s7 + $0xf88] sm:$0xf]  ;;  %v6499_v14 = vor.u32 %v7378_v5, %v6498_v0 }
 0x1b9   : > { %4002 = vmatpush.bf16.msra.mxu3 %v6179_v28  ;;  %3964 = vmatmul.bf16.vlgmr.msra.gmra.mxu0 %v7582_v45  ;;  %v7442_v10 = vld [vmem:[%s7988_s7 + $0xf94] sm:$0xf0]  ;;  %v6627_v15 = vor.u32 %v7410_v7, %v6626_v6  ;;  %v6354_v16 = vld [vmem:[%s7988_s7 + $0xc68] sm:$0xf]  ;;  %v3771_v24 = vadd.f32 %v3770_v13, %v3758_v11 }
 0x1ba   : > { %4008 = vmatpush.bf16.msrb.mxu0 %v6419_v42  ;;  %3977 = vmatmul.bf16.vlgmr.msra.gmra.mxu1 %v7584_v54  ;;  %v7342_v17 = vld [vmem:[%s7988_s7 + $0xc74] sm:$0xf0]  ;;  %v6482_v18 = vld [vmem:[%s7988_s7 + $0xd68] sm:$0xf]  ;;  %v6755_v19 = vor.u32 %v7442_v10, %v6754_v9 }
 0x1bb   : > { %4021 = vmatpush.bf16.msrb.mxu1 %v6547_v46  ;;  %3990 = vmatmul.bf16.vlgmr.msra.gmra.mxu2 %v7583_v53  ;;  %v7374_v25 = vld [vmem:[%s7988_s7 + $0xd74] sm:$0xf0]  ;;  %v6610_v26 = vld [vmem:[%s7988_s7 + $0xe68] sm:$0xf]  ;;  %v6355_v46 = vor.u32 %v7342_v17, %v6354_v16  ;;  %v7004_v16 = vld [vmem:[%s7988_s7 + $0x1ec] sm:$0xf] }
 0x1bc   : > { %4034 = vmatpush.bf16.msrb.mxu2 %v6675_v49  ;;  %4003 = vmatmul.bf16.vlgmr.msra.gmra.mxu3 %v7585_v57  ;;  %v7406_v40 = vld [vmem:[%s7988_s7 + $0xe74] sm:$0xf0]  ;;  %v6738_v28 = vld [vmem:[%s7988_s7 + $0xf68] sm:$0xf]  ;;  %v6483_v49 = vor.u32 %v7374_v25, %v6482_v18  ;;  %v5140_v25 = vld [vmem:[%s7988_s7 + $0x2f8] sm:$0xf0] }
 0x1bd   : > { %4047 = vmatpush.bf16.msrb.mxu3 %v6803_v20  ;;  %v7438_v42 = vld [vmem:[%s7988_s7 + $0xf74] sm:$0xf0]  ;;  %v6611_v29 = vor.u32 %v7406_v40, %v6610_v26  ;;  %v6338_v30 = vld [vmem:[%s7988_s7 + $0xc48] sm:$0xf] }
 0x1be   : > { %4009 = vmatpush.bf16.msrb.mxu0 %v6403_v37  ;;  %v7338_v31 = vld [vmem:[%s7988_s7 + $0xc54] sm:$0xf0]  ;;  %v6466_v20 = vld [vmem:[%s7988_s7 + $0xd48] sm:$0xf]  ;;  %v6739_v32 = vor.u32 %v7438_v42, %v6738_v28  ;;  %v3783_v33 = vpop.f32.mrf.mxu2  ;;  %v3759_v43 = vpop.f32.mrf.mxu0  ;;  %v7068_v28 = vld [vmem:[%s7988_s7 + $0x3ec] sm:$0xf] }
 0x1bf   : > { %4022 = vmatpush.bf16.msrb.mxu1 %v6531_v38  ;;  %v7370_v34 = vld [vmem:[%s7988_s7 + $0xd54] sm:$0xf0]  ;;  %v6594_v35 = vld [vmem:[%s7988_s7 + $0xe48] sm:$0xf]  ;;  %v3784_v37 = vadd.f32 %v3783_v33, %v3771_v24  ;;  %v3796_v38 = vpop.f32.mrf.mxu3  ;;  %v6339_v44 = vor.u32 %v7338_v31, %v6338_v30  ;;  %v3772_v45 = vpop.f32.mrf.mxu1  ;;  %v7036_v24 = vld [vmem:[%s7988_s7 + $0x2ec] sm:$0xf] }
 0x1c0   : > { %4035 = vmatpush.bf16.msrb.mxu2 %v6659_v39  ;;  %v7402_v36 = vld [vmem:[%s7988_s7 + $0xe54] sm:$0xf0]  ;;  %v6722_v39 = vld [vmem:[%s7988_s7 + $0xf48] sm:$0xf]  ;;  %v6467_v48 = vor.u32 %v7370_v34, %v6466_v20  ;;  %v5268_v42 = vld [vmem:[%s7988_s7 + $0x3f8] sm:$0xf0]  ;;  %v5143_v30 = vor.u32 %v7036_v24, %v5140_v25 }
 0x1c1   : > { %4048 = vmatpush.bf16.msrb.mxu3 %v6787_v47  ;;  %v7434_v41 = vld [vmem:[%s7988_s7 + $0xf54] sm:$0xf0]  ;;  %v8815_v47 = vadd.f32 %v3796_v38, %v3784_v37  ;;  %v6595_v51 = vor.u32 %v7402_v36, %v6594_v35  ;;  %v6322_v52 = vld [vmem:[%s7988_s7 + $0xc28] sm:$0xf]  ;;  %v6968_v31 = vld [vmem:[%s7988_s7 + $0xcc] sm:$0xf]  ;;  %v5271_v33 = vor.u32 %v7068_v28, %v5268_v42 }
 0x1c2   : > { %4010 = vmatpush.bf16.msrb.mxu0 %v6387_v58  ;;  %v7334_v53 = vld [vmem:[%s7988_s7 + $0xc34] sm:$0xf0]  ;;  %v6450_v54 = vld [vmem:[%s7988_s7 + $0xd28] sm:$0xf]  ;;  %v6723_v55 = vor.u32 %v7434_v41, %v6722_v39  ;;  %v4868_v20 = vld [vmem:[%s7988_s7 + $0xd8] sm:$0xf0] }
 0x1c3   : > { %4023 = vmatpush.bf16.msrb.mxu1 %v6515_v59  ;;  %v7366_v56 = vld [vmem:[%s7988_s7 + $0xd34] sm:$0xf0]  ;;  %v6578_v57 = vld [vmem:[%s7988_s7 + $0xe28] sm:$0xf]  ;;  %v6323_v62 = vor.u32 %v7334_v53, %v6322_v52  ;;  %v4996_v34 = vld [vmem:[%s7988_s7 + $0x1d8] sm:$0xf0]  ;;  %v4871_v39 = vor.u32 %v6968_v31, %v4868_v20 }
 0x1c4   : > { %4036 = vmatpush.bf16.msrb.mxu2 %v6643_v60  ;;  %v7398_v58 = vld [vmem:[%s7988_s7 + $0xe34] sm:$0xf0]  ;;  %v6706_v59 = vld [vmem:[%s7988_s7 + $0xf28] sm:$0xf]  ;;  %v7032_v35 = vld [vmem:[%s7988_s7 + $0x2cc] sm:$0xf] }
 0x1c5   : > { %4049 = vmatpush.bf16.msrb.mxu3 %v6771_v4  ;;  %v7430_v60 = vld [vmem:[%s7988_s7 + $0xf34] sm:$0xf0]  ;;  %v6306_v63 = vld [vmem:[%s7988_s7 + $0xc08] sm:$0xf]  ;;  %v6451_v4 = vor.u32 %v7366_v56, %v6450_v54  ;;  %v6579_v5 = vor.u32 %v7398_v58, %v6578_v57  ;;  %v5124_v36 = vld [vmem:[%s7988_s7 + $0x2d8] sm:$0xf0] }
 0x1c6   : > { %4011 = vmatpush.bf16.msrb.mxu0 %v6371_v12  ;;  %v7330_v0 = vld [vmem:[%s7988_s7 + $0xc14] sm:$0xf0]  ;;  %v6434_v6 = vld [vmem:[%s7988_s7 + $0xd08] sm:$0xf]  ;;  %v6707_v9 = vor.u32 %v7430_v60, %v6706_v59  ;;  %v3785_v13 = vpop.f32.mrf.mxu2  ;;  %v7064_v37 = vld [vmem:[%s7988_s7 + $0x3cc] sm:$0xf]  ;;  %v5127_v43 = vor.u32 %v7032_v35, %v5124_v36 }
 0x1c7   : > { %4024 = vmatpush.bf16.msrb.mxu1 %v6499_v14  ;;  %v7362_v7 = vld [vmem:[%s7988_s7 + $0xd14] sm:$0xf0]  ;;  %v6562_v8 = vld [vmem:[%s7988_s7 + $0xe08] sm:$0xf]  ;;  %v6972_v14 = vld [vmem:[%s7988_s7 + $0xec] sm:$0xf]  ;;  %v3798_v17 = vpop.f32.mrf.mxu3  ;;  %v6307_v18 = vor.u32 %v7330_v0, %v6306_v63 }
 0x1c8   : > { %4037 = vmatpush.bf16.msrb.mxu2 %v6627_v15  ;;  %v7394_v10 = vld [vmem:[%s7988_s7 + $0xe14] sm:$0xf0]  ;;  %v6690_v11 = vld [vmem:[%s7988_s7 + $0xf08] sm:$0xf]  ;;  %v4884_v15 = vld [vmem:[%s7988_s7 + $0xf8] sm:$0xf0]  ;;  %v6435_v26 = vor.u32 %v7362_v7, %v6434_v6 }
 0x1c9   : > { %4050 = vmatpush.bf16.msrb.mxu3 %v6755_v19  ;;  %v7426_v12 = vld [vmem:[%s7988_s7 + $0xf14] sm:$0xf0]  ;;  %v5012_v19 = vld [vmem:[%s7988_s7 + $0x1f8] sm:$0xf0]  ;;  %v6563_v40 = vor.u32 %v7394_v10, %v6562_v8  ;;  %v7028_v54 = vld [vmem:[%s7988_s7 + $0x2ac] sm:$0xf] }
 0x1ca   : > { %4012 = vmatpush.bf16.msrb.mxu0 %v6355_v46  ;;  %v6691_v46 = vor.u32 %v7426_v12, %v6690_v11  ;;  %v5252_v38 = vld [vmem:[%s7988_s7 + $0x3d8] sm:$0xf0]  ;;  %v7587_v56 = vld [vmem:[#allocation1 + $0x36] sm:$0xff]  ;;  %v7589_v60 = vld [vmem:[#allocation1 + $0x3f] sm:$0xff] }
 0x1cb   : > { %4025 = vmatpush.bf16.msrb.mxu1 %v6483_v49  ;;  %v4887_v49 = vor.u32 %v6972_v14, %v4884_v15  ;;  %v4852_v45 = vld [vmem:[%s7988_s7 + $0xb8] sm:$0xf0]  ;;  %v5255_v52 = vor.u32 %v7064_v37, %v5252_v38  ;;  %v7060_v58 = vld [vmem:[%s7988_s7 + $0x3ac] sm:$0xf] }
 0x1cc   : > { %4038 = vmatpush.bf16.msrb.mxu2 %v6611_v29  ;;  %v5015_v29 = vor.u32 %v7004_v16, %v5012_v19  ;;  %v4980_v53 = vld [vmem:[%s7988_s7 + $0x1b8] sm:$0xf0]  ;;  %v6992_v6 = vld [vmem:[%s7988_s7 + $0x18c] sm:$0xf] }
 0x1cd   : > { %4051 = vmatpush.bf16.msrb.mxu3 %v6739_v32  ;;  %v7000_v32 = vld [vmem:[%s7988_s7 + $0x1cc] sm:$0xf]  ;;  %v7588_v57 = vld [vmem:[#allocation1 + $0x2d] sm:$0xff] }
 0x1ce   : > { %4013 = vmatpush.bf16.msrb.mxu0 %v6339_v44  ;;  %v4999_v41 = vor.u32 %v7000_v32, %v4996_v34  ;;  %v6964_v44 = vld [vmem:[%s7988_s7 + $0xac] sm:$0xf]  ;;  %v5236_v59 = vld [vmem:[%s7988_s7 + $0x3b8] sm:$0xf0] }
 0x1cf   : > { %4026 = vmatpush.bf16.msrb.mxu1 %v6467_v48  ;;  %v6996_v48 = vld [vmem:[%s7988_s7 + $0x1ac] sm:$0xf]  ;;  %v5239_v7 = vor.u32 %v7060_v58, %v5236_v59  ;;  %v4964_v8 = vld [vmem:[%s7988_s7 + $0x198] sm:$0xf0] }
 0x1d0   : > { %4039 = vmatpush.bf16.msrb.mxu2 %v6595_v51  ;;  %v7586_v51 = vld [vmem:[#allocation1 + $0x24] sm:$0xff]  ;;  %v4983_v63 = vor.u32 %v6996_v48, %v4980_v53  ;;  %v5092_v10 = vld [vmem:[%s7988_s7 + $0x298] sm:$0xf0]  ;;  %v7056_v12 = vld [vmem:[%s7988_s7 + $0x38c] sm:$0xf]  ;;  %v4967_v17 = vor.u32 %v6992_v6, %v4964_v8 }
 0x1d1   : > { %4052 = vmatpush.bf16.msrb.mxu3 %v6723_v55  ;;  %v5108_v55 = vld [vmem:[%s7988_s7 + $0x2b8] sm:$0xf0]  ;;  %v6956_v19 = vld [vmem:[%s7988_s7 + $0x6c] sm:$0xf] }
 0x1d2   : > { %4014 = vmatpush.bf16.msrb.mxu0 %v6323_v62  ;;  %v4855_v62 = vor.u32 %v6964_v44, %v4852_v45  ;;  %v5111_v0 = vor.u32 %v7028_v54, %v5108_v55  ;;  %v5220_v13 = vld [vmem:[%s7988_s7 + $0x398] sm:$0xf0]  ;;  %v6988_v25 = vld [vmem:[%s7988_s7 + $0x16c] sm:$0xf] }
 0x1d3   : > { %4027 = vmatpush.bf16.msrb.mxu1 %v6451_v4  ;;  %v6960_v4 = vld [vmem:[%s7988_s7 + $0x8c] sm:$0xf]  ;;  %v4820_v24 = vld [vmem:[%s7988_s7 + $0x78] sm:$0xf0] }
 0x1d4   : > { %4040 = vmatpush.bf16.msrb.mxu2 %v6579_v5  ;;  %v4836_v5 = vld [vmem:[%s7988_s7 + $0x98] sm:$0xf0]  ;;  %v7020_v42 = vld [vmem:[%s7988_s7 + $0x26c] sm:$0xf] }
 0x1d5   : > { %4053 = vmatpush.bf16.msrb.mxu3 %v6707_v9  ;;  %v7024_v9 = vld [vmem:[%s7988_s7 + $0x28c] sm:$0xf]  ;;  %v4839_v15 = vor.u32 %v6960_v4, %v4836_v5  ;;  %v4948_v28 = vld [vmem:[%s7988_s7 + $0x178] sm:$0xf0] }
 0x1d6   : > { %4015 = vmatpush.bf16.msrb.mxu0 %v6307_v18  ;;  %v3809_v11 = vpop.f32.mrf.mxu0  ;;  %v5095_v18 = vor.u32 %v7024_v9, %v5092_v10  ;;  %v6952_v20 = vld [vmem:[%s7988_s7 + $0x4c] sm:$0xf]  ;;  %v4804_v32 = vld [vmem:[%s7988_s7 + $0x58] sm:$0xf0] }
 0x1d7   : > { %4028 = vmatpush.bf16.msrb.mxu1 %v6435_v26  ;;  %v3810_v14 = vadd.f32 %v3809_v11, %v8815_v47  ;;  %v3822_v16 = vpop.f32.mrf.mxu1  ;;  %v5223_v26 = vor.u32 %v7056_v12, %v5220_v13  ;;  %v5076_v47 = vld [vmem:[%s7988_s7 + $0x278] sm:$0xf0]  ;;  %v7016_v37 = vld [vmem:[%s7988_s7 + $0x24c] sm:$0xf]  ;;  %v4807_v48 = vor.u32 %v6952_v20, %v4804_v32 }
 0x1d8   : > { %4041 = vmatpush.bf16.msrb.mxu2 %v6563_v40  ;;  %v5079_v31 = vor.u32 %v7020_v42, %v5076_v47  ;;  %v4932_v36 = vld [vmem:[%s7988_s7 + $0x158] sm:$0xf0]  ;;  %v6948_v55 = vld [vmem:[%s7988_s7 + $0x2c] sm:$0xf] }
 0x1d9   : > { %4054 = vmatpush.bf16.msrb.mxu3 %v6691_v46  ;;  %4016 = vmatmul.bf16.vlgmr.msrb.gmra.mxu0 %v7586_v51  ;;  %v3823_v40 = vadd.f32 %v3822_v16, %v3810_v14  ;;  %v7052_v46 = vld [vmem:[%s7988_s7 + $0x36c] sm:$0xf]  ;;  %v5060_v38 = vld [vmem:[%s7988_s7 + $0x258] sm:$0xf0] }
 0x1da   : > { %4060 = vmatpush.bf16.msra.mxu0 %v4887_v49  ;;  %4029 = vmatmul.bf16.vlgmr.msrb.gmra.mxu1 %v7588_v57  ;;  %v5204_v49 = vld [vmem:[%s7988_s7 + $0x378] sm:$0xf0]  ;;  %v5063_v54 = vor.u32 %v7016_v37, %v5060_v38  ;;  %v6980_v57 = vld [vmem:[%s7988_s7 + $0x12c] sm:$0xf] }
 0x1db   : > { %4073 = vmatpush.bf16.msra.mxu1 %v5015_v29  ;;  %4042 = vmatmul.bf16.vlgmr.msrb.gmra.mxu2 %v7587_v56  ;;  %v4823_v29 = vor.u32 %v6956_v19, %v4820_v24  ;;  %v5207_v34 = vor.u32 %v7052_v46, %v5204_v49  ;;  %v5188_v44 = vld [vmem:[%s7988_s7 + $0x358] sm:$0xf0]  ;;  %v6944_v6 = vld [vmem:[%s7988_s7 + $0xc] sm:$0xf] }
 0x1dc   : > { %4086 = vmatpush.bf16.msra.mxu2 %v5143_v30  ;;  %4055 = vmatmul.bf16.vlgmr.msrb.gmra.mxu3 %v7589_v60  ;;  %v4951_v30 = vor.u32 %v6988_v25, %v4948_v28  ;;  %v4788_v56 = vld [vmem:[%s7988_s7 + $0x38] sm:$0xf0]  ;;  %v7012_v60 = vld [vmem:[%s7988_s7 + $0x22c] sm:$0xf] }
 0x1dd   : > { %4099 = vmatpush.bf16.msra.mxu3 %v5271_v33  ;;  %v6984_v33 = vld [vmem:[%s7988_s7 + $0x14c] sm:$0xf]  ;;  %v4916_v59 = vld [vmem:[%s7988_s7 + $0x138] sm:$0xf0]  ;;  %v4791_v5 = vor.u32 %v6948_v55, %v4788_v56 }
 0x1de   : > { %4061 = vmatpush.bf16.msra.mxu0 %v4871_v39  ;;  %v3835_v35 = vpop.f32.mrf.mxu2  ;;  %v3811_v45 = vpop.f32.mrf.mxu0  ;;  %v4935_v53 = vor.u32 %v6984_v33, %v4932_v36  ;;  %v5172_v4 = vld [vmem:[%s7988_s7 + $0x338] sm:$0xf0]  ;;  %v4919_v9 = vor.u32 %v6980_v57, %v4916_v59  ;;  %v6976_v11 = vld [vmem:[%s7988_s7 + $0x10c] sm:$0xf] }
 0x1df   : > { %4074 = vmatpush.bf16.msra.mxu1 %v4999_v41  ;;  %v3836_v39 = vadd.f32 %v3835_v35, %v3823_v40  ;;  %v3848_v41 = vpop.f32.mrf.mxu3  ;;  %v3824_v51 = vpop.f32.mrf.mxu1  ;;  %v4900_v12 = vld [vmem:[%s7988_s7 + $0x118] sm:$0xf0]  ;;  %v7008_v13 = vld [vmem:[%s7988_s7 + $0x20c] sm:$0xf] }
 0x1e0   : > { %4087 = vmatpush.bf16.msra.mxu2 %v5127_v43  ;;  %v7048_v43 = vld [vmem:[%s7988_s7 + $0x34c] sm:$0xf]  ;;  %v5396_v19 = vld [vmem:[%s7988_s7 + $0x4f8] sm:$0xf0]  ;;  %v4903_v47 = vor.u32 %v6976_v11, %v4900_v12 }
 0x1e1   : > { %4100 = vmatpush.bf16.msra.mxu3 %v5255_v52  ;;  %v3849_v52 = vadd.f32 %v3848_v41, %v3836_v39  ;;  %v5191_v58 = vor.u32 %v7048_v43, %v5188_v44  ;;  %v7040_v16 = vld [vmem:[%s7988_s7 + $0x30c] sm:$0xf]  ;;  %v5524_v40 = vld [vmem:[%s7988_s7 + $0x5f8] sm:$0xf0] }
 0x1e2   : > { %4062 = vmatpush.bf16.msra.mxu0 %v4855_v62  ;;  %v5044_v62 = vld [vmem:[%s7988_s7 + $0x238] sm:$0xf0]  ;;  %v7132_v24 = vld [vmem:[%s7988_s7 + $0x5ec] sm:$0xf] }
 0x1e3   : > { %4075 = vmatpush.bf16.msra.mxu1 %v4983_v63  ;;  %v4272_v63 = vrot.slane %v3849_v52, 6  ;;  %v5047_v10 = vor.u32 %v7012_v60, %v5044_v62  ;;  %v7164_v28 = vld [vmem:[%s7988_s7 + $0x6ec] sm:$0xf]  ;;  %v5652_v42 = vld [vmem:[%s7988_s7 + $0x6f8] sm:$0xf0]  ;;  %v5527_v20 = vor.u32 %v7132_v24, %v5524_v40 }
 0x1e4   : > { %4088 = vmatpush.bf16.msra.mxu2 %v5111_v0  ;;  %v7044_v0 = vld [vmem:[%s7988_s7 + $0x32c] sm:$0xf]  ;;  %v5655_v32 = vor.u32 %v7164_v28, %v5652_v42  ;;  %v5508_v37 = vld [vmem:[%s7988_s7 + $0x5d8] sm:$0xf0] }
 0x1e5   : > { %4101 = vmatpush.bf16.msra.mxu3 %v5239_v7  ;;  %v4772_v7 = vld [vmem:[%s7988_s7 + $0x18] sm:$0xf0]  ;;  %v8894_v8 = vsel %vm4275_vm0, %v8607_v50, %v4272_v63  ;;  %v5175_v14 = vor.u32 %v7044_v0, %v5172_v4  ;;  %v7196_v49 = vld [vmem:[%s7988_s7 + $0x7ec] sm:$0xf] }
 0x1e6   : > { %4063 = vmatpush.bf16.msra.mxu0 %v4839_v15  ;;  %v5028_v15 = vld [vmem:[%s7988_s7 + $0x218] sm:$0xf0]  ;;  %v3837_v50 = vpop.f32.mrf.mxu2  ;;  %v7096_v33 = vld [vmem:[%s7988_s7 + $0x4cc] sm:$0xf] }
 0x1e7   : > { %4076 = vmatpush.bf16.msra.mxu1 %v4967_v17  ;;  %v5156_v17 = vld [vmem:[%s7988_s7 + $0x318] sm:$0xf0]  ;;  %v3850_v25 = vpop.f32.mrf.mxu3  ;;  %v5031_v46 = vor.u32 %v7008_v13, %v5028_v15  ;;  %v7128_v35 = vld [vmem:[%s7988_s7 + $0x5cc] sm:$0xf] }
 0x1e8   : > { %4089 = vmatpush.bf16.msra.mxu2 %v5095_v18  ;;  %v7100_v18 = vld [vmem:[%s7988_s7 + $0x4ec] sm:$0xf]  ;;  %v5636_v39 = vld [vmem:[%s7988_s7 + $0x6d8] sm:$0xf0]  ;;  %v5511_v45 = vor.u32 %v7128_v35, %v5508_v37 }
 0x1e9   : > { %4102 = vmatpush.bf16.msra.mxu3 %v5223_v26  ;;  %v4775_v26 = vor.u32 %v6944_v6, %v4772_v7  ;;  %v7160_v38 = vld [vmem:[%s7988_s7 + $0x6cc] sm:$0xf]  ;;  %v5764_v43 = vld [vmem:[%s7988_s7 + $0x7d8] sm:$0xf0] }
 0x1ea   : > { %4064 = vmatpush.bf16.msra.mxu0 %v4823_v29  ;;  %v5780_v29 = vld [vmem:[%s7988_s7 + $0x7f8] sm:$0xf0]  ;;  %v7192_v41 = vld [vmem:[%s7988_s7 + $0x7cc] sm:$0xf] }
 0x1eb   : > { %4077 = vmatpush.bf16.msra.mxu1 %v4951_v30  ;;  %v5159_v30 = vor.u32 %v7040_v16, %v5156_v17  ;;  %v5783_v36 = vor.u32 %v7196_v49, %v5780_v29  ;;  %v7092_v51 = vld [vmem:[%s7988_s7 + $0x4ac] sm:$0xf]  ;;  %v5364_v52 = vld [vmem:[%s7988_s7 + $0x4b8] sm:$0xf0] }
 0x1ec   : > { %4090 = vmatpush.bf16.msra.mxu2 %v5079_v31  ;;  %v5399_v31 = vor.u32 %v7100_v18, %v5396_v19  ;;  %v5492_v55 = vld [vmem:[%s7988_s7 + $0x5b8] sm:$0xf0]  ;;  %v7156_v56 = vld [vmem:[%s7988_s7 + $0x6ac] sm:$0xf]  ;;  %v5367_v60 = vor.u32 %v7092_v51, %v5364_v52 }
 0x1ed   : > { %4103 = vmatpush.bf16.msra.mxu3 %v5207_v34  ;;  %v5380_v34 = vld [vmem:[%s7988_s7 + $0x4d8] sm:$0xf0]  ;;  %v7120_v4 = vld [vmem:[%s7988_s7 + $0x58c] sm:$0xf] }
 0x1ee   : > { %4065 = vmatpush.bf16.msra.mxu0 %v4807_v48  ;;  %v5383_v44 = vor.u32 %v7096_v33, %v5380_v34  ;;  %v5639_v48 = vor.u32 %v7160_v38, %v5636_v39  ;;  %v5620_v57 = vld [vmem:[%s7988_s7 + $0x6b8] sm:$0xf0]  ;;  %v7184_v7 = vld [vmem:[%s7988_s7 + $0x78c] sm:$0xf] }
 0x1ef   : > { %4078 = vmatpush.bf16.msra.mxu1 %v4935_v53  ;;  %v7124_v53 = vld [vmem:[%s7988_s7 + $0x5ac] sm:$0xf]  ;;  %v5748_v59 = vld [vmem:[%s7988_s7 + $0x7b8] sm:$0xf0]  ;;  %v5623_v63 = vor.u32 %v7156_v56, %v5620_v57 }
 0x1f0   : > { %4091 = vmatpush.bf16.msra.mxu2 %v5063_v54  ;;  %v5767_v54 = vor.u32 %v7192_v41, %v5764_v43  ;;  %v5495_v62 = vor.u32 %v7124_v53, %v5492_v55  ;;  %v5348_v0 = vld [vmem:[%s7988_s7 + $0x498] sm:$0xf0]  ;;  %v7084_v13 = vld [vmem:[%s7988_s7 + $0x46c] sm:$0xf] }
 0x1f1   : > { %4104 = vmatpush.bf16.msra.mxu3 %v5191_v58  ;;  %v7188_v58 = vld [vmem:[%s7988_s7 + $0x7ac] sm:$0xf]  ;;  %v5604_v6 = vld [vmem:[%s7988_s7 + $0x698] sm:$0xf0] }
 0x1f2   : > { %4066 = vmatpush.bf16.msra.mxu0 %v4791_v5  ;;  %v5476_v5 = vld [vmem:[%s7988_s7 + $0x598] sm:$0xf0]  ;;  %v7116_v15 = vld [vmem:[%s7988_s7 + $0x56c] sm:$0xf] }
 0x1f3   : > { %4079 = vmatpush.bf16.msra.mxu1 %v4919_v9  ;;  %v5732_v9 = vld [vmem:[%s7988_s7 + $0x798] sm:$0xf0]  ;;  %v5479_v11 = vor.u32 %v7120_v4, %v5476_v5  ;;  %v7148_v18 = vld [vmem:[%s7988_s7 + $0x66c] sm:$0xf] }
 0x1f4   : > { %4092 = vmatpush.bf16.msra.mxu2 %v5047_v10  ;;  %v5735_v17 = vor.u32 %v7184_v7, %v5732_v9  ;;  %v5460_v50 = vld [vmem:[%s7988_s7 + $0x578] sm:$0xf0]  ;;  %v7180_v25 = vld [vmem:[%s7988_s7 + $0x76c] sm:$0xf] }
 0x1f5   : > { %4105 = vmatpush.bf16.msra.mxu3 %v5175_v14  ;;  %v5332_v14 = vld [vmem:[%s7988_s7 + $0x478] sm:$0xf0]  ;;  %v5463_v28 = vor.u32 %v7116_v15, %v5460_v50  ;;  %v7112_v49 = vld [vmem:[%s7988_s7 + $0x54c] sm:$0xf] }
 0x1f6   : > { %4067 = vmatpush.bf16.msra.mxu0 %v4775_v26  ;;  %v3861_v10 = vpop.f32.mrf.mxu0  ;;  %v5588_v19 = vld [vmem:[%s7988_s7 + $0x678] sm:$0xf0]  ;;  %v5335_v40 = vor.u32 %v7084_v13, %v5332_v14  ;;  %v7176_v35 = vld [vmem:[%s7988_s7 + $0x74c] sm:$0xf] }
 0x1f7   : > { %4080 = vmatpush.bf16.msra.mxu1 %v4903_v47  ;;  %v3874_v16 = vpop.f32.mrf.mxu1  ;;  %v5716_v26 = vld [vmem:[%s7988_s7 + $0x778] sm:$0xf0]  ;;  %v5591_v42 = vor.u32 %v7148_v18, %v5588_v19  ;;  %v7080_v47 = vld [vmem:[%s7988_s7 + $0x44c] sm:$0xf] }
 0x1f8   : > { %4093 = vmatpush.bf16.msra.mxu2 %v5031_v46  ;;  %v3875_v24 = vadd.f32 %v3874_v16, %v3861_v10  ;;  %v5316_v46 = vld [vmem:[%s7988_s7 + $0x458] sm:$0xf0]  ;;  %v7172_v56 = vld [vmem:[%s7988_s7 + $0x72c] sm:$0xf] }
 0x1f9   : > { %4106 = vmatpush.bf16.msra.mxu3 %v5159_v30  ;;  %4068 = vmatmul.bf16.vlgmr.msra.gmra.mxu0 %v8107_v22  ;;  %v5751_v22 = vor.u32 %v7188_v58, %v5748_v59  ;;  %v5719_v30 = vor.u32 %v7180_v25, %v5716_v26  ;;  %v5319_v37 = vor.u32 %v7080_v47, %v5316_v46  ;;  %v5428_v53 = vld [vmem:[%s7988_s7 + $0x538] sm:$0xf0]  ;;  %v7072_v59 = vld [vmem:[%s7988_s7 + $0x40c] sm:$0xf] }
 0x1fa   : > { %4112 = vmatpush.bf16.msrb.mxu0 %v5399_v31  ;;  %4081 = vmatmul.bf16.vlgmr.msra.gmra.mxu1 %v8114_v27  ;;  %v5444_v31 = vld [vmem:[%s7988_s7 + $0x558] sm:$0xf0]  ;;  %v7136_v4 = vld [vmem:[%s7988_s7 + $0x60c] sm:$0xf] }
 0x1fb   : > { %4125 = vmatpush.bf16.msrb.mxu1 %v5527_v20  ;;  %4094 = vmatmul.bf16.vlgmr.msra.gmra.mxu2 %v8105_v21  ;;  %v7088_v21 = vld [vmem:[%s7988_s7 + $0x48c] sm:$0xf]  ;;  %v5447_v41 = vor.u32 %v7112_v49, %v5444_v31  ;;  %v5556_v55 = vld [vmem:[%s7988_s7 + $0x638] sm:$0xf0] }
 0x1fc   : > { %4138 = vmatpush.bf16.msrb.mxu2 %v5655_v32  ;;  %4107 = vmatmul.bf16.vlgmr.msra.gmra.mxu3 %v8109_v23  ;;  %v7152_v23 = vld [vmem:[%s7988_s7 + $0x68c] sm:$0xf]  ;;  %v5351_v27 = vor.u32 %v7088_v21, %v5348_v0  ;;  %v5572_v32 = vld [vmem:[%s7988_s7 + $0x658] sm:$0xf0] }
 0x1fd   : > { %4151 = vmatpush.bf16.msrb.mxu3 %v5783_v36  ;;  %v5607_v12 = vor.u32 %v7152_v23, %v5604_v6  ;;  %v7144_v20 = vld [vmem:[%s7988_s7 + $0x64c] sm:$0xf]  ;;  %v5700_v36 = vld [vmem:[%s7988_s7 + $0x758] sm:$0xf0] }
 0x1fe   : > { %4113 = vmatpush.bf16.msrb.mxu0 %v5383_v44  ;;  %v3887_v29 = vpop.f32.mrf.mxu2  ;;  %v3863_v39 = vpop.f32.mrf.mxu0  ;;  %v5575_v43 = vor.u32 %v7144_v20, %v5572_v32  ;;  %v7076_v44 = vld [vmem:[%s7988_s7 + $0x42c] sm:$0xf]  ;;  %v5703_v52 = vor.u32 %v7176_v35, %v5700_v36  ;;  %v5684_v57 = vld [vmem:[%s7988_s7 + $0x738] sm:$0xf0] }
 0x1ff   : > { %4126 = vmatpush.bf16.msrb.mxu1 %v5511_v45  ;;  %v3888_v33 = vadd.f32 %v3887_v29, %v3875_v24  ;;  %v3900_v34 = vpop.f32.mrf.mxu3  ;;  %v5300_v45 = vld [vmem:[%s7988_s7 + $0x438] sm:$0xf0]  ;;  %v3876_v51 = vpop.f32.mrf.mxu1  ;;  %v7104_v21 = vld [vmem:[%s7988_s7 + $0x50c] sm:$0xf]  ;;  %v5687_v5 = vor.u32 %v7172_v56, %v5684_v57 }
 0x200   : > { %4139 = vmatpush.bf16.msrb.mxu2 %v5639_v48  ;;  %v7108_v48 = vld [vmem:[%s7988_s7 + $0x52c] sm:$0xf]  ;;  %v5303_v58 = vor.u32 %v7076_v44, %v5300_v45  ;;  %v5412_v0 = vld [vmem:[%s7988_s7 + $0x518] sm:$0xf0] }
 0x201   : > { %4152 = vmatpush.bf16.msrb.mxu3 %v5767_v54  ;;  %v8954_v38 = vadd.f32 %v3900_v34, %v3888_v33  ;;  %v7140_v54 = vld [vmem:[%s7988_s7 + $0x62c] sm:$0xf]  ;;  %v5540_v23 = vld [vmem:[%s7988_s7 + $0x618] sm:$0xf0]  ;;  %v5415_v16 = vor.u32 %v7104_v21, %v5412_v0 }
 0x202   : > { %4114 = vmatpush.bf16.msrb.mxu0 %v5367_v60  ;;  %v5284_v60 = vld [vmem:[%s7988_s7 + $0x418] sm:$0xf0]  ;;  %v7168_v6 = vld [vmem:[%s7988_s7 + $0x70c] sm:$0xf] }
 0x203   : > { %4127 = vmatpush.bf16.msrb.mxu1 %v5495_v62  ;;  %v5431_v62 = vor.u32 %v7108_v48, %v5428_v53  ;;  %v5668_v7 = vld [vmem:[%s7988_s7 + $0x718] sm:$0xf0]  ;;  %v7292_v14 = vld [vmem:[%s7988_s7 + $0xaec] sm:$0xf] }
 0x204   : > { %4140 = vmatpush.bf16.msrb.mxu2 %v5623_v63  ;;  %v5559_v63 = vor.u32 %v7140_v54, %v5556_v55  ;;  %v5908_v10 = vld [vmem:[%s7988_s7 + $0x8f8] sm:$0xf0]  ;;  %v7324_v50 = vld [vmem:[%s7988_s7 + $0xbec] sm:$0xf]  ;;  %v5671_v19 = vor.u32 %v7168_v6, %v5668_v7 }
 0x205   : > { %4153 = vmatpush.bf16.msrb.mxu3 %v5751_v22  ;;  %v6036_v13 = vld [vmem:[%s7988_s7 + $0x9f8] sm:$0xf0]  ;;  %v7288_v49 = vld [vmem:[%s7988_s7 + $0xacc] sm:$0xf] }
 0x206   : > { %4115 = vmatpush.bf16.msrb.mxu0 %v5351_v27  ;;  %v3889_v22 = vpop.f32.mrf.mxu2  ;;  %v7228_v27 = vld [vmem:[%s7988_s7 + $0x8ec] sm:$0xf]  ;;  %v6164_v15 = vld [vmem:[%s7988_s7 + $0xaf8] sm:$0xf0] }
 0x207   : > { %4128 = vmatpush.bf16.msrb.mxu1 %v5479_v11  ;;  %v3902_v9 = vpop.f32.mrf.mxu3  ;;  %v7260_v11 = vld [vmem:[%s7988_s7 + $0x9ec] sm:$0xf]  ;;  %v6292_v18 = vld [vmem:[%s7988_s7 + $0xbf8] sm:$0xf0]  ;;  %v5911_v24 = vor.u32 %v7228_v27, %v5908_v10  ;;  %v6167_v26 = vor.u32 %v7292_v14, %v6164_v15 }
 0x208   : > { %4141 = vmatpush.bf16.msrb.mxu2 %v5607_v12  ;;  %v5287_v12 = vor.u32 %v7072_v59, %v5284_v60  ;;  %v6039_v25 = vor.u32 %v7260_v11, %v6036_v13  ;;  %v6295_v47 = vor.u32 %v7324_v50, %v6292_v18  ;;  %v6020_v46 = vld [vmem:[%s7988_s7 + $0x9d8] sm:$0xf0]  ;;  %v7220_v34 = vld [vmem:[%s7988_s7 + $0x8ac] sm:$0xf] }
 0x209   : > { %4154 = vmatpush.bf16.msrb.mxu3 %v5735_v17  ;;  %v5543_v17 = vor.u32 %v7136_v4, %v5540_v23  ;;  %v6148_v29 = vld [vmem:[%s7988_s7 + $0xad8] sm:$0xf0]  ;;  %v7252_v36 = vld [vmem:[%s7988_s7 + $0x9ac] sm:$0xf] }
 0x20a   : > { %4116 = vmatpush.bf16.msrb.mxu0 %v5335_v40  ;;  %v7224_v40 = vld [vmem:[%s7988_s7 + $0x8cc] sm:$0xf]  ;;  %v6276_v31 = vld [vmem:[%s7988_s7 + $0xbd8] sm:$0xf0]  ;;  %v6151_v33 = vor.u32 %v7288_v49, %v6148_v29 }
 0x20b   : > { %4129 = vmatpush.bf16.msrb.mxu1 %v5463_v28  ;;  %v5892_v28 = vld [vmem:[%s7988_s7 + $0x8d8] sm:$0xf0]  ;;  %v7316_v44 = vld [vmem:[%s7988_s7 + $0xbac] sm:$0xf] }
 0x20c   : > { %4142 = vmatpush.bf16.msrb.mxu2 %v5591_v42  ;;  %v7256_v42 = vld [vmem:[%s7988_s7 + $0x9cc] sm:$0xf]  ;;  %v5895_v20 = vor.u32 %v7224_v40, %v5892_v28  ;;  %v5876_v35 = vld [vmem:[%s7988_s7 + $0x8b8] sm:$0xf0] }
 0x20d   : > { %4155 = vmatpush.bf16.msrb.mxu3 %v5719_v30  ;;  %v7320_v30 = vld [vmem:[%s7988_s7 + $0xbcc] sm:$0xf]  ;;  %v6023_v32 = vor.u32 %v7256_v42, %v6020_v46  ;;  %v6004_v39 = vld [vmem:[%s7988_s7 + $0x9b8] sm:$0xf0]  ;;  %v5879_v48 = vor.u32 %v7220_v34, %v5876_v35 }
 0x20e   : > { %4117 = vmatpush.bf16.msrb.mxu0 %v5319_v37  ;;  %v6279_v37 = vor.u32 %v7320_v30, %v6276_v31  ;;  %v6260_v45 = vld [vmem:[%s7988_s7 + $0xbb8] sm:$0xf0]  ;;  %v7280_v55 = vld [vmem:[%s7988_s7 + $0xa8c] sm:$0xf] }
 0x20f   : > { %4130 = vmatpush.bf16.msrb.mxu1 %v5447_v41  ;;  %v7284_v41 = vld [vmem:[%s7988_s7 + $0xaac] sm:$0xf]  ;;  %v5860_v53 = vld [vmem:[%s7988_s7 + $0x898] sm:$0xf0] }
 0x210   : > { %4143 = vmatpush.bf16.msrb.mxu2 %v5575_v43  ;;  %v6132_v43 = vld [vmem:[%s7988_s7 + $0xab8] sm:$0xf0]  ;;  %v7312_v57 = vld [vmem:[%s7988_s7 + $0xb8c] sm:$0xf] }
 0x211   : > { %4156 = vmatpush.bf16.msrb.mxu3 %v5703_v52  ;;  %v6135_v51 = vor.u32 %v7284_v41, %v6132_v43  ;;  %v7216_v52 = vld [vmem:[%s7988_s7 + $0x88c] sm:$0xf]  ;;  %v5988_v54 = vld [vmem:[%s7988_s7 + $0x998] sm:$0xf0] }
 0x212   : > { %4118 = vmatpush.bf16.msrb.mxu0 %v5303_v58  ;;  %v6116_v56 = vld [vmem:[%s7988_s7 + $0xa98] sm:$0xf0]  ;;  %v7244_v0 = vld [vmem:[%s7988_s7 + $0x96c] sm:$0xf] }
 0x213   : > { %4131 = vmatpush.bf16.msrb.mxu1 %v5431_v62  ;;  %v6244_v58 = vld [vmem:[%s7988_s7 + $0xb98] sm:$0xf0]  ;;  %v6119_v62 = vor.u32 %v7280_v55, %v6116_v56  ;;  %v7276_v6 = vld [vmem:[%s7988_s7 + $0xa6c] sm:$0xf] }
 0x214   : > { %4144 = vmatpush.bf16.msrb.mxu2 %v5559_v63  ;;  %v7212_v63 = vld [vmem:[%s7988_s7 + $0x86c] sm:$0xf]  ;;  %v5844_v21 = vld [vmem:[%s7988_s7 + $0x878] sm:$0xf0] }
 0x215   : > { %4157 = vmatpush.bf16.msrb.mxu3 %v5687_v5  ;;  %v6247_v5 = vor.u32 %v7312_v57, %v6244_v58  ;;  %v5972_v23 = vld [vmem:[%s7988_s7 + $0x978] sm:$0xf0]  ;;  %v7308_v9 = vld [vmem:[%s7988_s7 + $0xb6c] sm:$0xf]  ;;  %v5847_v11 = vor.u32 %v7212_v63, %v5844_v21 }
 0x216   : > { %4119 = vmatpush.bf16.msrb.mxu0 %v5287_v12  ;;  %v3913_v59 = vpop.f32.mrf.mxu0  ;;  %v6100_v7 = vld [vmem:[%s7988_s7 + $0xa78] sm:$0xf0]  ;;  %v7208_v13 = vld [vmem:[%s7988_s7 + $0x84c] sm:$0xf] }
 0x217   : > { %4132 = vmatpush.bf16.msrb.mxu1 %v5415_v16  ;;  %v3914_v4 = vadd.f32 %v3913_v59, %v8954_v38  ;;  %v3926_v22 = vpop.f32.mrf.mxu1  ;;  %v6228_v27 = vld [vmem:[%s7988_s7 + $0xb78] sm:$0xf0]  ;;  %v5975_v38 = vor.u32 %v7244_v0, %v5972_v23  ;;  %v6103_v12 = vor.u32 %v7276_v6, %v6100_v7  ;;  %v7240_v15 = vld [vmem:[%s7988_s7 + $0x94c] sm:$0xf] }
 0x218   : > { %4145 = vmatpush.bf16.msrb.mxu2 %v5543_v17  ;;  %v5828_v14 = vld [vmem:[%s7988_s7 + $0x858] sm:$0xf0]  ;;  %v6231_v17 = vor.u32 %v7308_v9, %v6228_v27  ;;  %v7272_v18 = vld [vmem:[%s7988_s7 + $0xa4c] sm:$0xf] }
 0x219   : > { %4158 = vmatpush.bf16.msrb.mxu3 %v5671_v19  ;;  %4120 = vmatmul.bf16.vlgmr.msrb.gmra.mxu0 %v8146_v1  ;;  %v7248_v1 = vld [vmem:[%s7988_s7 + $0x98c] sm:$0xf]  ;;  %v3927_v10 = vadd.f32 %v3926_v22, %v3914_v4  ;;  %v5956_v50 = vld [vmem:[%s7988_s7 + $0x958] sm:$0xf0]  ;;  %v5831_v28 = vor.u32 %v7208_v13, %v5828_v14 }
 0x21a   : > { %4164 = vmatpush.bf16.msra.mxu0 %v5911_v24  ;;  %4133 = vmatmul.bf16.vlgmr.msrb.gmra.mxu1 %v8150_v3  ;;  %v5863_v3 = vor.u32 %v7216_v52, %v5860_v53  ;;  %v5991_v60 = vor.u32 %v7248_v1, %v5988_v54  ;;  %v6084_v19 = vld [vmem:[%s7988_s7 + $0xa58] sm:$0xf0]  ;;  %v5959_v46 = vor.u32 %v7240_v15, %v5956_v50  ;;  %v7204_v29 = vld [vmem:[%s7988_s7 + $0x82c] sm:$0xf] }
 0x21b   : > { %4177 = vmatpush.bf16.msra.mxu1 %v6039_v25  ;;  %4146 = vmatmul.bf16.vlgmr.msrb.gmra.mxu2 %v8143_v61  ;;  %v6007_v61 = vor.u32 %v7252_v36, %v6004_v39  ;;  %v6212_v40 = vld [vmem:[%s7988_s7 + $0xb58] sm:$0xf0]  ;;  %v6087_v49 = vor.u32 %v7272_v18, %v6084_v19  ;;  %v7236_v31 = vld [vmem:[%s7988_s7 + $0x92c] sm:$0xf] }
 0x21c   : > { %4190 = vmatpush.bf16.msra.mxu2 %v6167_v26  ;;  %4159 = vmatmul.bf16.vlgmr.msrb.gmra.mxu3 %v8148_v2  ;;  %v6263_v2 = vor.u32 %v7316_v44, %v6260_v45  ;;  %v7304_v26 = vld [vmem:[%s7988_s7 + $0xb4c] sm:$0xf]  ;;  %v5812_v30 = vld [vmem:[%s7988_s7 + $0x838] sm:$0xf0] }
 0x21d   : > { %4203 = vmatpush.bf16.msra.mxu3 %v6295_v47  ;;  %v7268_v34 = vld [vmem:[%s7988_s7 + $0xa2c] sm:$0xf]  ;;  %v6068_v35 = vld [vmem:[%s7988_s7 + $0xa38] sm:$0xf0]  ;;  %v5815_v39 = vor.u32 %v7204_v29, %v5812_v30 }
 0x21e   : > { %4165 = vmatpush.bf16.msra.mxu0 %v5895_v20  ;;  %v3939_v16 = vpop.f32.mrf.mxu2  ;;  %v3915_v47 = vpop.f32.mrf.mxu0  ;;  %v7300_v36 = vld [vmem:[%s7988_s7 + $0xb2c] sm:$0xf]  ;;  %v5796_v43 = vld [vmem:[%s7988_s7 + $0x818] sm:$0xf0]  ;;  %v6071_v45 = vor.u32 %v7268_v34, %v6068_v35 }
 0x21f   : > { %4178 = vmatpush.bf16.msra.mxu1 %v6023_v32  ;;  %v3940_v24 = vadd.f32 %v3939_v16, %v3927_v10  ;;  %v3952_v25 = vpop.f32.mrf.mxu3  ;;  %v3928_v20 = vpop.f32.mrf.mxu1  ;;  %v6215_v32 = vor.u32 %v7304_v26, %v6212_v40  ;;  %v7200_v41 = vld [vmem:[%s7988_s7 + $0x80c] sm:$0xf]  ;;  %v6052_v1 = vld [vmem:[%s7988_s7 + $0xa18] sm:$0xf0]  ;;  %v7591_v47 = vld [vmem:[#allocation1 + $0x12] sm:$0xff] }
 0x220   : > { %4191 = vmatpush.bf16.msra.mxu2 %v6151_v33  ;;  %v5940_v33 = vld [vmem:[%s7988_s7 + $0x938] sm:$0xf0]  ;;  %v7356_v56 = vld [vmem:[%s7988_s7 + $0xcec] sm:$0xf] }
 0x221   : > { %4204 = vmatpush.bf16.msra.mxu3 %v6279_v37  ;;  %v9025_v42 = vadd.f32 %v3952_v25, %v3940_v24  ;;  %v6196_v37 = vld [vmem:[%s7988_s7 + $0xb38] sm:$0xf0]  ;;  %v5943_v44 = vor.u32 %v7236_v31, %v5940_v33  ;;  %v7388_v58 = vld [vmem:[%s7988_s7 + $0xdec] sm:$0xf]  ;;  %v7590_v24 = vld [vmem:[#allocation1] sm:$0xff] }
 0x222   : > { %4166 = vmatpush.bf16.msra.mxu0 %v5879_v48  ;;  %v7232_v48 = vld [vmem:[%s7988_s7 + $0x90c] sm:$0xf]  ;;  %v6199_v53 = vor.u32 %v7300_v36, %v6196_v37  ;;  %v6180_v54 = vld [vmem:[%s7988_s7 + $0xb18] sm:$0xf0] }
 0x223   : > { %4179 = vmatpush.bf16.msra.mxu1 %v6007_v61  ;;  %v5924_v61 = vld [vmem:[%s7988_s7 + $0x918] sm:$0xf0]  ;;  %v7452_v0 = vld [vmem:[%s7988_s7 + $0xfec] sm:$0xf] }
 0x224   : > { %4192 = vmatpush.bf16.msra.mxu2 %v6135_v51  ;;  %v7264_v51 = vld [vmem:[%s7988_s7 + $0xa0c] sm:$0xf]  ;;  %v6420_v57 = vld [vmem:[%s7988_s7 + $0xcf8] sm:$0xf0]  ;;  %v5927_v63 = vor.u32 %v7232_v48, %v5924_v61 }
 0x225   : > { %4205 = vmatpush.bf16.msra.mxu3 %v6263_v2  ;;  %v7296_v2 = vld [vmem:[%s7988_s7 + $0xb0c] sm:$0xf]  ;;  %v6548_v59 = vld [vmem:[%s7988_s7 + $0xdf8] sm:$0xf0]  ;;  %v6055_v21 = vor.u32 %v7264_v51, %v6052_v1 }
 0x226   : > { %4167 = vmatpush.bf16.msra.mxu0 %v5863_v3  ;;  %v3941_v52 = vpop.f32.mrf.mxu2  ;;  %v5799_v3 = vor.u32 %v7200_v41, %v5796_v43  ;;  %v6804_v4 = vld [vmem:[%s7988_s7 + $0xff8] sm:$0xf0]  ;;  %v6183_v22 = vor.u32 %v7296_v2, %v6180_v54  ;;  %v6551_v23 = vor.u32 %v7388_v58, %v6548_v59  ;;  %v7352_v7 = vld [vmem:[%s7988_s7 + $0xccc] sm:$0xf] }
 0x227   : > { %4180 = vmatpush.bf16.msra.mxu1 %v5991_v60  ;;  %v3954_v55 = vpop.f32.mrf.mxu3  ;;  %v7420_v60 = vld [vmem:[%s7988_s7 + $0xeec] sm:$0xf]  ;;  %v6404_v9 = vld [vmem:[%s7988_s7 + $0xcd8] sm:$0xf0]  ;;  %v6807_v10 = vor.u32 %v7452_v0, %v6804_v4 }
 0x228   : > { %4193 = vmatpush.bf16.msra.mxu2 %v6119_v62  ;;  %v6676_v62 = vld [vmem:[%s7988_s7 + $0xef8] sm:$0xf0]  ;;  %v7384_v27 = vld [vmem:[%s7988_s7 + $0xdcc] sm:$0xf]  ;;  %v6407_v15 = vor.u32 %v7352_v7, %v6404_v9 }
 0x229   : > { %4206 = vmatpush.bf16.msra.mxu3 %v6247_v5  ;;  %v6423_v5 = vor.u32 %v7356_v56, %v6420_v57  ;;  %v6679_v6 = vor.u32 %v7420_v60, %v6676_v62  ;;  %v7448_v13 = vld [vmem:[%s7988_s7 + $0xfcc] sm:$0xf]  ;;  %v6788_v14 = vld [vmem:[%s7988_s7 + $0xfd8] sm:$0xf0] }
 0x22a   : > { %4168 = vmatpush.bf16.msra.mxu0 %v5847_v11  ;;  %v6532_v11 = vld [vmem:[%s7988_s7 + $0xdd8] sm:$0xf0]  ;;  %v7348_v50 = vld [vmem:[%s7988_s7 + $0xcac] sm:$0xf]  ;;  %v6791_v25 = vor.u32 %v7448_v13, %v6788_v14 }
 0x22b   : > { %4181 = vmatpush.bf16.msra.mxu1 %v5975_v38  ;;  %v7416_v38 = vld [vmem:[%s7988_s7 + $0xecc] sm:$0xf]  ;;  %v6535_v16 = vor.u32 %v7384_v27, %v6532_v11  ;;  %v6388_v18 = vld [vmem:[%s7988_s7 + $0xcb8] sm:$0xf0] }
 0x22c   : > { %4194 = vmatpush.bf16.msra.mxu2 %v6103_v12  ;;  %v6660_v12 = vld [vmem:[%s7988_s7 + $0xed8] sm:$0xf0]  ;;  %v7380_v19 = vld [vmem:[%s7988_s7 + $0xdac] sm:$0xf]  ;;  %v6391_v31 = vor.u32 %v7348_v50, %v6388_v18 }
 0x22d   : > { %4207 = vmatpush.bf16.msra.mxu3 %v6231_v17  ;;  %v6663_v17 = vor.u32 %v7416_v38, %v6660_v12  ;;  %v6516_v26 = vld [vmem:[%s7988_s7 + $0xdb8] sm:$0xf0]  ;;  %v7412_v40 = vld [vmem:[%s7988_s7 + $0xeac] sm:$0xf] }
 0x22e   : > { %4169 = vmatpush.bf16.msra.mxu0 %v5831_v28  ;;  %v6644_v28 = vld [vmem:[%s7988_s7 + $0xeb8] sm:$0xf0]  ;;  %v7593_v30 = vld [vmem:[#allocation1 + $0x1b] sm:$0xff]  ;;  %v6519_v20 = vor.u32 %v7380_v19, %v6516_v26 }
 0x22f   : > { %4182 = vmatpush.bf16.msra.mxu1 %v5959_v46  ;;  %v7592_v46 = vld [vmem:[#allocation1 + $0x9] sm:$0xff]  ;;  %v7344_v33 = vld [vmem:[%s7988_s7 + $0xc8c] sm:$0xf] }
 0x230   : > { %4195 = vmatpush.bf16.msra.mxu2 %v6087_v49  ;;  %v7444_v49 = vld [vmem:[%s7988_s7 + $0xfac] sm:$0xf]  ;;  %v6772_v29 = vld [vmem:[%s7988_s7 + $0xfb8] sm:$0xf0] }
 0x231   : > { %4208 = vmatpush.bf16.msra.mxu3 %v6215_v32  ;;  %v6647_v32 = vor.u32 %v7412_v40, %v6644_v28  ;;  %v6372_v34 = vld [vmem:[%s7988_s7 + $0xc98] sm:$0xf0]  ;;  %v7376_v35 = vld [vmem:[%s7988_s7 + $0xd8c] sm:$0xf]  ;;  %v6775_v36 = vor.u32 %v7444_v49, %v6772_v29 }
 0x232   : > { %4170 = vmatpush.bf16.msra.mxu0 %v5815_v39  ;;  %v6500_v37 = vld [vmem:[%s7988_s7 + $0xd98] sm:$0xf0]  ;;  %v7408_v39 = vld [vmem:[%s7988_s7 + $0xe8c] sm:$0xf]  ;;  %v6375_v61 = vor.u32 %v7344_v33, %v6372_v34 }
 0x233   : > { %4183 = vmatpush.bf16.msra.mxu1 %v5943_v44  ;;  %v6628_v41 = vld [vmem:[%s7988_s7 + $0xe98] sm:$0xf0]  ;;  %v7440_v44 = vld [vmem:[%s7988_s7 + $0xf8c] sm:$0xf]  ;;  %v6503_v52 = vor.u32 %v7376_v35, %v6500_v37 }
 0x234   : > { %4196 = vmatpush.bf16.msra.mxu2 %v6071_v45  ;;  %v6756_v45 = vld [vmem:[%s7988_s7 + $0xf98] sm:$0xf0]  ;;  %v7340_v1 = vld [vmem:[%s7988_s7 + $0xc6c] sm:$0xf] }
 0x235   : > { %4209 = vmatpush.bf16.msra.mxu3 %v6199_v53  ;;  %v6631_v53 = vor.u32 %v7408_v39, %v6628_v41  ;;  %v6356_v2 = vld [vmem:[%s7988_s7 + $0xc78] sm:$0xf0]  ;;  %v7372_v54 = vld [vmem:[%s7988_s7 + $0xd6c] sm:$0xf]  ;;  %v6759_v55 = vor.u32 %v7440_v44, %v6756_v45 }
 0x236   : > { %4171 = vmatpush.bf16.msra.mxu0 %v5799_v3  ;;  %v3965_v43 = vpop.f32.mrf.mxu0  ;;  %v6484_v57 = vld [vmem:[%s7988_s7 + $0xd78] sm:$0xf0]  ;;  %v7404_v58 = vld [vmem:[%s7988_s7 + $0xe6c] sm:$0xf]  ;;  %v6359_v60 = vor.u32 %v7340_v1, %v6356_v2 }
 0x237   : > { %4184 = vmatpush.bf16.msra.mxu1 %v5927_v63  ;;  %v3966_v48 = vadd.f32 %v3965_v43, %v9025_v42  ;;  %v3978_v51 = vpop.f32.mrf.mxu1  ;;  %v6612_v42 = vld [vmem:[%s7988_s7 + $0xe78] sm:$0xf0]  ;;  %v7436_v3 = vld [vmem:[%s7988_s7 + $0xf6c] sm:$0xf]  ;;  %v6487_v62 = vor.u32 %v7372_v54, %v6484_v57 }
 0x238   : > { %4197 = vmatpush.bf16.msra.mxu2 %v6055_v21  ;;  %v6740_v59 = vld [vmem:[%s7988_s7 + $0xf78] sm:$0xf0]  ;;  %v6615_v63 = vor.u32 %v7404_v58, %v6612_v42  ;;  %v7336_v21 = vld [vmem:[%s7988_s7 + $0xc4c] sm:$0xf] }
 0x239   : > { %4210 = vmatpush.bf16.msra.mxu3 %v6183_v22  ;;  %4172 = vmatmul.bf16.vlgmr.msra.gmra.mxu0 %v7590_v24  ;;  %v3979_v56 = vadd.f32 %v3978_v51, %v3966_v48  ;;  %v6340_v0 = vld [vmem:[%s7988_s7 + $0xc58] sm:$0xf0]  ;;  %v7368_v4 = vld [vmem:[%s7988_s7 + $0xd4c] sm:$0xf]  ;;  %v6743_v22 = vor.u32 %v7436_v3, %v6740_v59  ;;  %v7594_v48 = vld [vmem:[#allocation1 + $0x24] sm:$0xff] }
 0x23a   : > { %4216 = vmatpush.bf16.msrb.mxu0 %v6423_v5  ;;  %4185 = vmatmul.bf16.vlgmr.msra.gmra.mxu1 %v7592_v46  ;;  %v6596_v7 = vld [vmem:[%s7988_s7 + $0xe58] sm:$0xf0]  ;;  %v6343_v12 = vor.u32 %v7336_v21, %v6340_v0  ;;  %v7364_v18 = vld [vmem:[%s7988_s7 + $0xd2c] sm:$0xf] }
 0x23b   : > { %4229 = vmatpush.bf16.msrb.mxu1 %v6551_v23  ;;  %4198 = vmatmul.bf16.vlgmr.msra.gmra.mxu2 %v7591_v47  ;;  %v6468_v23 = vld [vmem:[%s7988_s7 + $0xd58] sm:$0xf0]  ;;  %v7428_v40 = vld [vmem:[%s7988_s7 + $0xf2c] sm:$0xf] }
 0x23c   : > { %4242 = vmatpush.bf16.msrb.mxu2 %v6679_v6  ;;  %4211 = vmatmul.bf16.vlgmr.msra.gmra.mxu3 %v7593_v30  ;;  %v7400_v6 = vld [vmem:[%s7988_s7 + $0xe4c] sm:$0xf]  ;;  %v6724_v11 = vld [vmem:[%s7988_s7 + $0xf58] sm:$0xf0] }
 0x23d   : > { %4255 = vmatpush.bf16.msrb.mxu3 %v6807_v10  ;;  %v7432_v10 = vld [vmem:[%s7988_s7 + $0xf4c] sm:$0xf]  ;;  %v6324_v50 = vld [vmem:[%s7988_s7 + $0xc38] sm:$0xf0] }
 0x23e   : > { %4217 = vmatpush.bf16.msrb.mxu0 %v6407_v15  ;;  %v3991_v5 = vpop.f32.mrf.mxu2  ;;  %v3967_v38 = vpop.f32.mrf.mxu0  ;;  %v6471_v15 = vor.u32 %v7368_v4, %v6468_v23  ;;  %v6727_v19 = vor.u32 %v7432_v10, %v6724_v11  ;;  %v6452_v24 = vld [vmem:[%s7988_s7 + $0xd38] sm:$0xf0]  ;;  %v7328_v29 = vld [vmem:[%s7988_s7 + $0xc0c] sm:$0xf] }
 0x23f   : > { %4230 = vmatpush.bf16.msrb.mxu1 %v6535_v16  ;;  %v3992_v9 = vadd.f32 %v3991_v5, %v3979_v56  ;;  %v4004_v27 = vpop.f32.mrf.mxu3  ;;  %v3980_v13 = vpop.f32.mrf.mxu1  ;;  %v6599_v16 = vor.u32 %v7400_v6, %v6596_v7  ;;  %v6580_v26 = vld [vmem:[%s7988_s7 + $0xe38] sm:$0xf0]  ;;  %v6455_v46 = vor.u32 %v7364_v18, %v6452_v24  ;;  %v7392_v33 = vld [vmem:[%s7988_s7 + $0xe0c] sm:$0xf] }
 0x240   : > { %4243 = vmatpush.bf16.msrb.mxu2 %v6663_v17  ;;  %v7332_v17 = vld [vmem:[%s7988_s7 + $0xc2c] sm:$0xf]  ;;  %v6708_v28 = vld [vmem:[%s7988_s7 + $0xf38] sm:$0xf0] }
 0x241   : > { %4256 = vmatpush.bf16.msrb.mxu3 %v6791_v25  ;;  %v4005_v14 = vadd.f32 %v4004_v27, %v3992_v9  ;;  %v7396_v25 = vld [vmem:[%s7988_s7 + $0xe2c] sm:$0xf]  ;;  %v6327_v47 = vor.u32 %v7332_v17, %v6324_v50  ;;  %v6308_v30 = vld [vmem:[%s7988_s7 + $0xc18] sm:$0xf0] }
 0x242   : > { %4218 = vmatpush.bf16.msrb.mxu0 %v6391_v31  ;;  %v6583_v49 = vor.u32 %v7396_v25, %v6580_v26  ;;  %v7360_v31 = vld [vmem:[%s7988_s7 + $0xd0c] sm:$0xf]  ;;  %v6564_v34 = vld [vmem:[%s7988_s7 + $0xe18] sm:$0xf0]  ;;  %v6311_v41 = vor.u32 %v7328_v29, %v6308_v30 }
 0x243   : > { %4231 = vmatpush.bf16.msrb.mxu1 %v6519_v20  ;;  %v6711_v20 = vor.u32 %v7428_v40, %v6708_v28  ;;  %v6692_v37 = vld [vmem:[%s7988_s7 + $0xf18] sm:$0xf0]  ;;  %v6567_v44 = vor.u32 %v7392_v33, %v6564_v34  ;;  %v7596_v51 = vld [vmem:[#allocation1 + $0x36] sm:$0xff] }
 0x244   : > { %4244 = vmatpush.bf16.msrb.mxu2 %v6647_v32  ;;  %v6436_v32 = vld [vmem:[%s7988_s7 + $0xd18] sm:$0xf0] }
 0x245   : > { %4257 = vmatpush.bf16.msrb.mxu3 %v6775_v36  ;;  %v7424_v36 = vld [vmem:[%s7988_s7 + $0xf0c] sm:$0xf]  ;;  %v6439_v43 = vor.u32 %v7360_v31, %v6436_v32 }
 0x246   : > { %4219 = vmatpush.bf16.msrb.mxu0 %v6375_v61  ;;  %v3993_v35 = vpop.f32.mrf.mxu2  ;;  %v6695_v45 = vor.u32 %v7424_v36, %v6692_v37  ;;  %v7595_v61 = vld [vmem:[#allocation1 + $0x2d] sm:$0xff] }
 0x247   : > { %4232 = vmatpush.bf16.msrb.mxu1 %v6503_v52  ;;  %v4006_v39 = vpop.f32.mrf.mxu3  ;;  %v7597_v52 = vld [vmem:[#allocation1 + $0x3f] sm:$0xff] }
 0x248   : > { %4245 = vmatpush.bf16.msrb.mxu2 %v6631_v53 }
 0x249   : > { %4258 = vmatpush.bf16.msrb.mxu3 %v6759_v55 }
 0x24a   : > { %4220 = vmatpush.bf16.msrb.mxu0 %v6359_v60 }
 0x24b   : > { %4233 = vmatpush.bf16.msrb.mxu1 %v6487_v62 }
 0x24c   : > { %4246 = vmatpush.bf16.msrb.mxu2 %v6615_v63 }
 0x24d   : > { %4259 = vmatpush.bf16.msrb.mxu3 %v6743_v22 }
 0x24e   : > { %4221 = vmatpush.bf16.msrb.mxu0 %v6343_v12 }
 0x24f   : > { %4234 = vmatpush.bf16.msrb.mxu1 %v6471_v15 }
 0x250   : > { %4247 = vmatpush.bf16.msrb.mxu2 %v6599_v16 }
 0x251   : > { %4260 = vmatpush.bf16.msrb.mxu3 %v6727_v19 }
 0x252   : > { %4222 = vmatpush.bf16.msrb.mxu0 %v6327_v47 }
 0x253   : > { %4235 = vmatpush.bf16.msrb.mxu1 %v6455_v46 }
 0x254   : > { %4248 = vmatpush.bf16.msrb.mxu2 %v6583_v49 }
 0x255   : > { %4261 = vmatpush.bf16.msrb.mxu3 %v6711_v20 }
 0x256   : > { %4223 = vmatpush.bf16.msrb.mxu0 %v6311_v41  ;;  %v4017_v53 = vpop.f32.mrf.mxu0 }
 0x257   : > { %4236 = vmatpush.bf16.msrb.mxu1 %v6439_v43  ;;  %v4018_v1 = vadd.f32 %v4017_v53, %v4005_v14  ;;  %v4030_v2 = vpop.f32.mrf.mxu1 }
 0x258   : > { %4249 = vmatpush.bf16.msrb.mxu2 %v6567_v44 }
 0x259   : > { %4262 = vmatpush.bf16.msrb.mxu3 %v6695_v45  ;;  %4224 = vmatmul.bf16.vlgmr.msrb.gmra.mxu0 %v7594_v48  ;;  %v4031_v54 = vadd.f32 %v4030_v2, %v4018_v1  ;;  %v325_v48 = vld [vmem:[#allocation2] sm:$0xff] }
 0x25a   : > { %4237 = vmatmul.bf16.vlgmr.msrb.gmra.mxu1 %v7595_v61 }
 0x25b   : > { %4250 = vmatmul.bf16.vlgmr.msrb.gmra.mxu2 %v7596_v51 }
 0x25c   : > { %4263 = vmatmul.bf16.vlgmr.msrb.gmra.mxu3 %v7597_v52 }
 0x25e   : > { %v4043_v55 = vpop.f32.mrf.mxu2  ;;  %v4019_v58 = vpop.f32.mrf.mxu0 }
 0x25f   : > { %v4044_v56 = vadd.f32 %v4043_v55, %v4031_v54  ;;  %v4056_v57 = vpop.f32.mrf.mxu3  ;;  %v4032_v42 = vpop.f32.mrf.mxu1 }
 0x261   : > { %v4057_v3 = vadd.f32 %v4056_v57, %v4044_v56 }
 0x263   : > { %v4273_v44 = vrot.slane %v4057_v3, 4 }
 0x266   : > { %v4045_v59 = vpop.f32.mrf.mxu2 }
 0x267   : > { %v4058_v60 = vpop.f32.mrf.mxu3 }
 0x276   : > { %v4069_v62 = vpop.f32.mrf.mxu0 }
 0x277   : > { %v4082_v63 = vpop.f32.mrf.mxu1 }
 0x278   : > { %v4083_v21 = vadd.f32 %v4082_v63, %v4069_v62 }
 0x27e   : > { %v4095_v0 = vpop.f32.mrf.mxu2  ;;  %v4071_v23 = vpop.f32.mrf.mxu0 }
 0x27f   : > { %v4096_v4 = vadd.f32 %v4095_v0, %v4083_v21  ;;  %v4108_v22 = vpop.f32.mrf.mxu3  ;;  %v4084_v6 = vpop.f32.mrf.mxu1 }
 0x281   : > { %v4109_v5 = vadd.f32 %v4108_v22, %v4096_v4 }
 0x286   : > { %v4097_v7 = vpop.f32.mrf.mxu2 }
 0x287   : > { %v4110_v9 = vpop.f32.mrf.mxu3 }
 0x296   : > { %v4121_v27 = vpop.f32.mrf.mxu0 }
 0x297   : > { %v4134_v10 = vpop.f32.mrf.mxu1  ;;  %v4122_v50 = vadd.f32 %v4121_v27, %v4109_v5 }
 0x299   : > { %v4135_v25 = vadd.f32 %v4134_v10, %v4122_v50 }
 0x29e   : > { %v4147_v11 = vpop.f32.mrf.mxu2  ;;  %v4123_v12 = vpop.f32.mrf.mxu0 }
 0x29f   : > { %v4160_v38 = vpop.f32.mrf.mxu3  ;;  %v4136_v13 = vpop.f32.mrf.mxu1  ;;  %v4148_v40 = vadd.f32 %v4147_v11, %v4135_v25 }
 0x2a1   : > { %v4161_v46 = vadd.f32 %v4160_v38, %v4148_v40 }
 0x2a6   : > { %v4149_v14 = vpop.f32.mrf.mxu2 }
 0x2a7   : > { %v4162_v15 = vpop.f32.mrf.mxu3 }
 0x2b6   : > { %v4173_v16 = vpop.f32.mrf.mxu0 }
 0x2b7   : > { %v4186_v17 = vpop.f32.mrf.mxu1  ;;  %v4174_v49 = vadd.f32 %v4173_v16, %v4161_v46 }
 0x2b9   : > { %v4187_v29 = vadd.f32 %v4186_v17, %v4174_v49 }
 0x2be   : > { %v4199_v18 = vpop.f32.mrf.mxu2  ;;  %v4175_v24 = vpop.f32.mrf.mxu0 }
 0x2bf   : > { %v4212_v19 = vpop.f32.mrf.mxu3  ;;  %v4188_v26 = vpop.f32.mrf.mxu1  ;;  %v4200_v30 = vadd.f32 %v4199_v18, %v4187_v29 }
 0x2c1   : > { %v4213_v31 = vadd.f32 %v4212_v19, %v4200_v30 }
 0x2c6   : > { %v4201_v28 = vpop.f32.mrf.mxu2 }
 0x2c7   : > { %v4214_v47 = vpop.f32.mrf.mxu3 }
 0x2d6   : > { %v4225_v20 = vpop.f32.mrf.mxu0 }
 0x2d7   : > { %v4238_v32 = vpop.f32.mrf.mxu1  ;;  %v4226_v33 = vadd.f32 %v4225_v20, %v4213_v31 }
 0x2d9   : > { %v4239_v34 = vadd.f32 %v4238_v32, %v4226_v33 }
 0x2de   : > { %v4251_v35 = vpop.f32.mrf.mxu2  ;;  %v4227_v39 = vpop.f32.mrf.mxu0 }
 0x2df   : > { %v4252_v36 = vadd.f32 %v4251_v35, %v4239_v34  ;;  %v4264_v37 = vpop.f32.mrf.mxu3  ;;  %v4240_v41 = vpop.f32.mrf.mxu1 }
 0x2e1   : > { %v4265_v43 = vadd.f32 %v4264_v37, %v4252_v36 }
 0x2e3   : > { %v4274_v45 = vrot.slane %v4265_v43, 2 }
 0x2e5   : > { %v4278_v61 = vsel %vm4277_vm1, %v4273_v44, %v4274_v45  ;;  %4287 = sbr.rel (%p6808_p1) target bundleno = 921 (0x399), region = 68 }
 0x2e6   : > { %v4280_v51 = vsel %vm4279_vm2, %v8894_v8, %v4278_v61  ;;  %v4253_v52 = vpop.f32.mrf.mxu2 }
 0x2e7   : > { %v4282_v53 = vadd.f32 %v4280_v51, %v325_v48  ;;  %v4266_v1 = vpop.f32.mrf.mxu3 }
 0x2e9   : > { %4283 = vst [vmem:[#allocation2] sm:$0xff] %v4282_v53 }
 0x2ea   : > { %v7462_v2 = vld [vmem:[#allocation9 + $0x38] sm:$0xff]  ;;  %v7461_v57 = vld [vmem:[#allocation9 + $0x30] sm:$0xff]  ;;  %v7460_v8 = vld [vmem:[#allocation9 + $0x28] sm:$0xff] }
 0x2eb   : > { %v7470_v54 = vld [vmem:[#allocation9 + $0x78] sm:$0xff]  ;;  %4578 = vmatpush.bf16.msra.mxu0 %v7462_v2  ;;  %v7469_v58 = vld [vmem:[#allocation9 + $0x70] sm:$0xff]  ;;  %v7468_v59 = vld [vmem:[#allocation9 + $0x68] sm:$0xff] }
 0x2ec   : > { %v7478_v55 = vld [vmem:[#allocation9 + $0xb8] sm:$0xff]  ;;  %4591 = vmatpush.bf16.msra.mxu1 %v7470_v54  ;;  %v7477_v42 = vld [vmem:[#allocation9 + $0xb0] sm:$0xff]  ;;  %v7476_v60 = vld [vmem:[#allocation9 + $0xa8] sm:$0xff] }
 0x2ed   : > { %v7486_v56 = vld [vmem:[#allocation9 + $0xf8] sm:$0xff]  ;;  %4604 = vmatpush.bf16.msra.mxu2 %v7478_v55  ;;  %v7485_v3 = vld [vmem:[#allocation9 + $0xf0] sm:$0xff]  ;;  %v7484_v62 = vld [vmem:[#allocation9 + $0xe8] sm:$0xff] }
 0x2ee   : > { %4617 = vmatpush.bf16.msra.mxu3 %v7486_v56  ;;  %v7459_v63 = vld [vmem:[#allocation9 + $0x20] sm:$0xff]  ;;  %v4289_v22 = vld [vmem:[#allocation8] sm:$0xf]  ;;  %v7457_v50 = vld [vmem:[#allocation9 + $0x10] sm:$0xff] }
 0x2ef   : > { %4579 = vmatpush.bf16.msra.mxu0 %v7461_v57  ;;  %v7467_v21 = vld [vmem:[#allocation9 + $0x60] sm:$0xff]  ;;  %v4291_v5 = vperm.slane %v4289_v22, 0  ;;  %v4292_v23 = vperm.slane %v4289_v22, 1  ;;  %v4293_v6 = vperm.slane %v4289_v22, 2  ;;  %v4294_v7 = vperm.slane %v4289_v22, 3  ;;  %v7458_v9 = vld [vmem:[#allocation9 + $0x18] sm:$0xff] }
 0x2f0   : > { %4592 = vmatpush.bf16.msra.mxu1 %v7469_v58  ;;  %v7475_v0 = vld [vmem:[#allocation9 + $0xa0] sm:$0xff]  ;;  %v7466_v27 = vld [vmem:[#allocation9 + $0x58] sm:$0xff]  ;;  %v7465_v18 = vld [vmem:[#allocation9 + $0x50] sm:$0xff] }
 0x2f1   : > { %4605 = vmatpush.bf16.msra.mxu2 %v7477_v42  ;;  %v7483_v4 = vld [vmem:[#allocation9 + $0xe0] sm:$0xff]  ;;  %v4295_v10 = vrot.slane %v4292_v23, 6  ;;  %v4296_v11 = vrot.slane %v4293_v6, 4  ;;  %v4297_v38 = vrot.slane %v4294_v7, 2  ;;  %v7474_v12 = vld [vmem:[#allocation9 + $0x98] sm:$0xff]  ;;  %v7473_v24 = vld [vmem:[#allocation9 + $0x90] sm:$0xff] }
 0x2f2   : > { %4618 = vmatpush.bf16.msra.mxu3 %v7485_v3  ;;  %v7482_v13 = vld [vmem:[#allocation9 + $0xd8] sm:$0xff]  ;;  %v7481_v25 = vld [vmem:[#allocation9 + $0xd0] sm:$0xff]  ;;  %v7456_v40 = vld [vmem:[#allocation9 + $0x8] sm:$0xff] }
 0x2f3   : > { %4580 = vmatpush.bf16.msra.mxu0 %v7460_v8  ;;  %v4288_v14 = vld [vmem:[#allocation2] sm:$0xff]  ;;  %v4298_v15 = vsel %vm4275_vm0, %v4291_v5, %v4295_v10  ;;  %v4299_v16 = vsel %vm4277_vm1, %v4296_v11, %v4297_v38  ;;  %v7464_v28 = vld [vmem:[#allocation9 + $0x48] sm:$0xff]  ;;  %v7455_v49 = vld [vmem:[#allocation9] sm:$0xff] }
 0x2f4   : > { %4593 = vmatpush.bf16.msra.mxu1 %v7468_v59  ;;  %v4300_v17 = vsel %vm4279_vm2, %v4298_v15, %v4299_v16  ;;  %v7472_v47 = vld [vmem:[#allocation9 + $0x88] sm:$0xff]  ;;  %v7463_v29 = vld [vmem:[#allocation9 + $0x40] sm:$0xff] }
 0x2f5   : > { %4606 = vmatpush.bf16.msra.mxu2 %v7476_v60  ;;  %v4302_v19 = vadd.f32 %v4300_v17, %v4288_v14  ;;  %v7480_v46 = vld [vmem:[#allocation9 + $0xc8] sm:$0xff]  ;;  %v7471_v30 = vld [vmem:[#allocation9 + $0x80] sm:$0xff] }
 0x2f6   : > { %4619 = vmatpush.bf16.msra.mxu3 %v7484_v62  ;;  %v7479_v31 = vld [vmem:[#allocation9 + $0xc0] sm:$0xff] }
 0x2f7   : > { %4581 = vmatpush.bf16.msra.mxu0 %v7459_v63  ;;  %v4303_v26 = vmax.f32 %v4302_v19, 0.0  ;;  %v7598_v41 = vld [vmem:[#allocation11] ss:$0 sm:$0xff] }
 0x2f8   : > { %4594 = vmatpush.bf16.msra.mxu1 %v7467_v21 }
 0x2f9   : > { %4607 = vmatpush.bf16.msra.mxu2 %v7475_v0  ;;  %4305 = vst [vmem:[#allocation1] ss:$4 sm:$0xff] %v4303_v26 }
 0x2fa   : > { %4620 = vmatpush.bf16.msra.mxu3 %v7483_v4 }
 0x2fb   : > { %4582 = vmatpush.bf16.msra.mxu0 %v7458_v9 }
 0x2fc   : > { %4595 = vmatpush.bf16.msra.mxu1 %v7466_v27 }
 0x2fd   : > { %4608 = vmatpush.bf16.msra.mxu2 %v7474_v12 }
 0x2fe   : > { %4621 = vmatpush.bf16.msra.mxu3 %v7482_v13 }
 0x2ff   : > { %4583 = vmatpush.bf16.msra.mxu0 %v7457_v50 }
 0x300   : > { %4596 = vmatpush.bf16.msra.mxu1 %v7465_v18  ;;  %v4306_v20 = vld.sshfl [vmem:[#allocation1] sm:$0xff pattern:$0x73625140]  ;;  %v4307_v32 = vld.sshfl [vmem:[#allocation1 + $0x8] sm:$0xff pattern:$0x73625140] }
 0x301   : > { %4609 = vmatpush.bf16.msra.mxu2 %v7473_v24  ;;  %v4314_v33 = vpack.c.bf16 %v4306_v20, %v4306_v20  ;;  %v4315_v34 = vpack.c.bf16 %v4307_v32, %v4307_v32  ;;  %v4308_v35 = vld.sshfl [vmem:[#allocation1 + $0x10] sm:$0xff pattern:$0x73625140]  ;;  %v4309_v36 = vld.sshfl [vmem:[#allocation1 + $0x18] sm:$0xff pattern:$0x73625140] }
 0x302   : > { %4622 = vmatpush.bf16.msra.mxu3 %v7481_v25  ;;  %v4316_v37 = vpack.c.bf16 %v4308_v35, %v4308_v35  ;;  %v4317_v39 = vpack.c.bf16 %v4309_v36, %v4309_v36 }
 0x303   : > { %4584 = vmatpush.bf16.msra.mxu0 %v7456_v40 }
 0x304   : > { %4597 = vmatpush.bf16.msra.mxu1 %v7464_v28 }
 0x305   : > { %4610 = vmatpush.bf16.msra.mxu2 %v7472_v47 }
 0x306   : > { %4623 = vmatpush.bf16.msra.mxu3 %v7480_v46 }
 0x307   : > { %4585 = vmatpush.bf16.msra.mxu0 %v7455_v49 }
 0x308   : > { %4598 = vmatpush.bf16.msra.mxu1 %v7463_v29 }
 0x309   : > { %4611 = vmatpush.bf16.msra.mxu2 %v7471_v30 }
 0x30a   : > { %4624 = vmatpush.bf16.msra.mxu3 %v7479_v31  ;;  %4586 = vmatmul.bf16.vlgmr.msra.gmra.mxu0 %v4314_v33 }
 0x30b   : > { %4599 = vmatmul.bf16.vlgmr.msra.gmra.mxu1 %v4315_v34 }
 0x30c   : > { %4612 = vmatmul.bf16.vlgmr.msra.gmra.mxu2 %v4316_v37 }
 0x30d   : > { %4625 = vmatmul.bf16.vlgmr.msra.gmra.mxu3 %v4317_v39 }
 0x387   : > { %v4587_v43 = vpop.f32.mrf.mxu0 }
 0x388   : > { %v4600_v44 = vpop.f32.mrf.mxu1  ;;  %v4588_v45 = vadd.f32 %v7598_v41, %v4587_v43 }
 0x38a   : > { %v4601_v48 = vadd.f32 %v4600_v44, %v4588_v45 }
 0x38f   : > { %v4613_v61 = vpop.f32.mrf.mxu2  ;;  %v4589_v53 = vpop.f32.mrf.mxu0 }
 0x390   : > { %v4626_v51 = vpop.f32.mrf.mxu3  ;;  %v4614_v52 = vadd.f32 %v4613_v61, %v4601_v48  ;;  %v4602_v1 = vpop.f32.mrf.mxu1 }
 0x392   : > { %v4627_v2 = vadd.f32 %v4626_v51, %v4614_v52 }
 0x394   : > { %4630 = vst [vmem:[#allocation12] sm:$0x3] %v4627_v2 }
 0x397   : > { %v4615_v54 = vpop.f32.mrf.mxu2 }
 0x398   : > { %v4628_v55 = vpop.f32.mrf.mxu3 }
 0x399 PF: > { %p7531_p4 = scmp.eq.s32.totalorder %s7887_s22, 2  ;;  %s7837_s23 = smov [#allocation12]  }
 0x39a   : > { %s4637_s27 = sshll.u32 %s7837_s23, 4  ;;  %s4639_s17 = sshll.u32 %s9137_s5, 4  ;;  %s4638_s27 = int_to_ptr.vmem [resolvable:$true] %s4637_s27  ;;  %s4640_s17 = int_to_ptr.hbm [resolvable:$true] %s4639_s17 }
 0x39b   : > { %7504 = dma.vmem_to_hbm [thread:$0]  (%p7531_p4), %s4638_s27, 32, %s4640_s17, [#allocation5]  }
 0x39c   : > { %7810 = dma.done.wait (%p7531_p4), [#allocation5], 32  }
 0x39d   : > { %7812 = vsyncadd (%p7531_p4), [#allocation5], 4294967264 }
 0x39e PF: > { %s9144_s29 = smov %s7928_s18  ;;  %p20_p5 = scmp.ge.s32.totalorder %s7928_s18, 5  }
 0x39f   : > { %s9145_s18 = smov %s7819_s19  ;;  %s9146_s19 = smov %s7823_s20 }
 0x3a0   : > { %s9147_s20 = smov %s7938_s26  ;;  %s9148_s21 = smov %s9144_s29 }
 0x3a1   :  { %22 = sbr.rel (!%p20_p5) target bundleno = 9 (0x9), region = 110 }
 0x3a6   :  { %4653 = vsyncpa [#allocation4], 1 }
 0x3a7   :  { %4655 = vsyncpa [#allocation4 + $0x1], 1 }
 0x3a8   :  { %4656 = vsyncpa [#allocation7], 1 }
 0x3a9   :  { %4658 = vsyncpa [#allocation7 + $0x1], 1 }
 0x3aa   :  { %4659 = vsyncpa [#allocation10], 1 }
 0x3ab   :  { %4660 = vsyncpa [#allocation5], 1 }
 0x3ac   :  { %4662 = vsyncpa [#allocation5 + $0x1], 1 }

</bundles_post_ra>
